<compile_context>
chip_gen: v7x
topology: tpu7x:2x2x1
jax: 0.10.0
libtpu: 0.0.40
codegen_flags: <defaults>
</compile_context>

<pallas_src>
import functools

import jax
import jax.numpy as jnp
from jax.experimental import pallas as pl
from jax.experimental.pallas import tpu as pltpu


def _round_up(x, m):
    return (x + m - 1) // m * m


# ----------------------------------------------------------------------------
# Fused Pallas kernel: both towers (block-diagonal layer 1, shared layers 2/3)
# + per-tower BatchNorm + cosine-similarity epilogue. Single invocation.
# ----------------------------------------------------------------------------
def _dssm_fused_kernel(x_ref,            # (2*B_pad, 2*K_slot) bf16, block-diagonal
                       w1_ref, b1_ref,   # (2*K_slot, 1024) bf16, (2, 1024) f32
                       w2_ref, b2_ref,   # (1024, 512)  bf16, (1, 512)     f32
                       w3_ref, b3_ref,   # (512, OUTp)  bf16, (1, OUTp)    f32
                       cos_ref,          # (B_pad, 1) f32
                       *, b_pad, n_valid):
    bn_eps = jnp.float32(1e-5)
    rows = 2 * b_pad

    # Tower-membership masks over the stacked rows.
    row_ids = jax.lax.broadcasted_iota(jnp.int32, (rows, 1), 0)
    in_t0 = (row_ids < b_pad).astype(jnp.float32)     # (rows, 1)
    in_t1 = 1.0 - in_t0

    # BatchNorm validity masks: exclude zero-padded batch rows (static gate).
    if n_valid == b_pad:
        v0, v1 = in_t0, in_t1
    else:
        valid = jnp.logical_or(
            row_ids < n_valid,
            jnp.logical_and(row_ids >= b_pad, row_ids < b_pad + n_valid),
        ).astype(jnp.float32)
        v0 = in_t0 * valid
        v1 = in_t1 * valid
    inv_n = jnp.float32(1.0 / n_valid)

    def select_rows(a0, a1):
        # a0/a1: (1, C) -> per-row selection across the two towers: (rows, C)
        return in_t0 * a0 + in_t1 * a1

    def bn_per_tower(h):
        # training-mode BN, single sweep per tower: var = E[h^2] - E[h]^2
        hv0 = h * v0
        hv1 = h * v1
        m0 = jnp.sum(hv0, axis=0, keepdims=True) * inv_n
        m1 = jnp.sum(hv1, axis=0, keepdims=True) * inv_n
        e0 = jnp.sum(hv0 * h, axis=0, keepdims=True) * inv_n
        e1 = jnp.sum(hv1 * h, axis=0, keepdims=True) * inv_n
        s0 = jax.lax.rsqrt(jnp.maximum(e0 - m0 * m0, 0.0) + bn_eps)
        s1 = jax.lax.rsqrt(jnp.maximum(e1 - m1 * m1, 0.0) + bn_eps)
        return (h - select_rows(m0, m1)) * select_rows(s0, s1)

    # ---- layer 1: block-diagonal matmul (both towers in one K=256 pass) ----
    h = jnp.dot(x_ref[...], w1_ref[...],
                preferred_element_type=jnp.float32)          # (rows, 1024) f32
    h = jnp.maximum(h + select_rows(b1_ref[0:1, :], b1_ref[1:2, :]), 0.0)
    h = bn_per_tower(h)

    # ---- layer 2 (shared): Linear -> ReLU -> BN ----
    h = jnp.dot(h.astype(jnp.bfloat16), w2_ref[...],
                preferred_element_type=jnp.float32) + b2_ref[...]
    h = bn_per_tower(jnp.maximum(h, 0.0))                    # (rows, 512) f32

    # ---- layer 3 (shared): Linear -> ReLU ----
    o = jnp.dot(h.astype(jnp.bfloat16), w3_ref[...],
                preferred_element_type=jnp.float32) + b3_ref[...]
    o = jnp.maximum(o, 0.0)                                  # (rows, OUTp) f32

    # ---- cosine-similarity epilogue (padded output columns are exact zeros)
    o1 = o[:b_pad, :]
    o2 = o[b_pad:, :]
    dot = jnp.sum(o1 * o2, axis=1, keepdims=True)
    n1sq = jnp.sum(o1 * o1, axis=1, keepdims=True)
    n2sq = jnp.sum(o2 * o2, axis=1, keepdims=True)
    # torch F.cosine_similarity clamp: dot / max(||o1||*||o2||, eps), eps=1e-8
    cos_ref[...] = dot * jax.lax.rsqrt(jnp.maximum(n1sq * n2sq, jnp.float32(1e-16)))


# ----------------------------------------------------------------------------
# Model container (parameters built deterministically in-script)
# ----------------------------------------------------------------------------
class DSSMModelPallas:
    def __init__(self, input1, input2, pic_embedding_size, batch_size,
                 hidden_size, output_size, key):
        self.input1 = list(input1)
        self.input2 = list(input2)        # stored (unused in forward, as in torch)
        self.hidden_size = hidden_size    # unused in forward, as in torch
        self.output_size = output_size
        self.pic_embedding_size = pic_embedding_size

        keys = iter(jax.random.split(key, 64))

        def normal(shape):
            return (0.02 * jax.random.normal(next(keys), shape)).astype(jnp.float32)

        def bias(shape, fan_in):
            bound = 1.0 / (fan_in ** 0.5)     # torch nn.Linear default bias init
            return jax.random.uniform(next(keys), shape, jnp.float32, -bound, bound)

        # embeddings: embed_size = min((feat_size + 4) // 2, 50)
        self.emb_tables = []
        emb_sizes = []
        for feat_size in self.input1:
            es = min((feat_size + 4) // 2, 50)
            emb_sizes.append(es)
            self.emb_tables.append(normal((feat_size, es)))
        self.sum_emb = sum(emb_sizes)

        k1 = self.sum_emb
        k2 = self.sum_emb + pic_embedding_size
        self.k1, self.k2 = k1, k2
        self.k_slot = _round_up(max(k1, k2), 128)       # one 128-aligned K slot per tower
        self.out_pad = _round_up(output_size, 128)

        # --- logical f32 parameters (Linear stored as (in, out)) ---
        self.w11 = normal((k1, 1024));   self.b11 = bias((1, 1024), k1)
        self.w12 = normal((k2, 1024));   self.b12 = bias((1, 1024), k2)
        self.w2 = normal((1024, 512));   self.b2 = bias((1, 512), 1024)
        self.w3 = normal((512, output_size))
        self.b3 = bias((1, output_size), 512)
        # TODO(synk): self.last_linear (Linear(1,1)+Sigmoid) is never used in
        # the torch forward(), so it is not implemented here.

        # --- kernel-ready parameters: zero-padded, block-diagonal stacked, bf16 ---
        ks = self.k_slot
        w11p = jnp.zeros((ks, 1024), jnp.float32).at[:k1].set(self.w11)
        w12p = jnp.zeros((ks, 1024), jnp.float32).at[:k2].set(self.w12)
        self.w1_cat = jnp.concatenate([w11p, w12p], axis=0).astype(jnp.bfloat16)  # (2*ks, 1024)
        self.b1_stack = jnp.concatenate([self.b11, self.b12], axis=0)             # (2, 1024) f32
        self.w2_bf = self.w2.astype(jnp.bfloat16)                                 # (1024, 512)
        self.w3_bf = (jnp.zeros((512, self.out_pad), jnp.float32)
                      .at[:, :output_size].set(self.w3)).astype(jnp.bfloat16)     # (512, OUTp)
        self.b3_pad = (jnp.zeros((1, self.out_pad), jnp.float32)
                       .at[:, :output_size].set(self.b3))

    def _embed_concat(self, x_idx):
        # glue: data-dependent embedding gathers in plain JAX
        parts = [jnp.take(tbl, x_idx[:, i], axis=0)
                 for i, tbl in enumerate(self.emb_tables)]
        return jnp.concatenate(parts, axis=1)

    @functools.partial(jax.jit, static_argnums=0)
    def __call__(self, input1, input2, pic_embedding):
        x1 = self._embed_concat(input1)                                   # (B, K1) f32
        x2 = jnp.concatenate(
            [self._embed_concat(input2), pic_embedding.astype(jnp.float32)],
            axis=1)                                                       # (B, K2) f32
        B = x1.shape[0]
        b_pad = _round_up(max(B, 8), 8)
        ks = self.k_slot

        # Block-diagonal bf16 input slab (built directly in bf16):
        #   rows [0, b_pad)      use K slot [0, ks)      (tower 1, user side)
        #   rows [b_pad, 2*b_pad) use K slot [ks, 2*ks)  (tower 2, match-user side)
        xs = jnp.zeros((2 * b_pad, 2 * ks), jnp.bfloat16)
        xs = xs.at[:B, :self.k1].set(x1.astype(jnp.bfloat16))
        xs = xs.at[b_pad:b_pad + B, ks:ks + self.k2].set(x2.astype(jnp.bfloat16))

        kernel = functools.partial(_dssm_fused_kernel, b_pad=b_pad, n_valid=B)
        vmem_spec = pl.BlockSpec(memory_space=pltpu.MemorySpace.VMEM)
        cos = pl.pallas_call(
            kernel,
            out_shape=jax.ShapeDtypeStruct((b_pad, 1), jnp.float32),
            in_specs=[vmem_spec] * 7,
            out_specs=vmem_spec,
        )(xs, self.w1_cat, self.b1_stack,
          self.w2_bf, self.b2, self.w3_bf, self.b3_pad)
        return cos[:B, 0]                                                 # (B,)


# ----------------------------------------------------------------------------
# Pure-JAX reference (mirrors the kernel's precision policy for a sanity check)
# ----------------------------------------------------------------------------
def _reference(model, input1, input2, pic_embedding):
    bf16 = jnp.bfloat16

    def lin_relu(h, w, b):
        y = jnp.dot(h.astype(bf16), w.astype(bf16),
                    preferred_element_type=jnp.float32) + b
        return jnp.maximum(y, 0.0)

    def bn(h):
        mean = jnp.mean(h, axis=0, keepdims=True)
        var = jnp.maximum(jnp.mean(h * h, axis=0, keepdims=True) - mean * mean, 0.0)
        return (h - mean) * jax.lax.rsqrt(var + jnp.float32(1e-5))

    x1 = model._embed_concat(input1)
    x2 = jnp.concatenate(
        [model._embed_concat(input2), pic_embedding.astype(jnp.float32)], axis=1)

    def tower(x, w1, b1):
        h = bn(lin_relu(x, w1, b1))
        h = bn(lin_relu(h, model.w2, model.b2))
        return lin_relu(h, model.w3, model.b3)

    o1 = tower(x1, model.w11, model.b11)
    o2 = tower(x2, model.w12, model.b12)
    dot = jnp.sum(o1 * o2, axis=1)
    n1sq = jnp.sum(o1 * o1, axis=1)
    n2sq = jnp.sum(o2 * o2, axis=1)
    return dot * jax.lax.rsqrt(jnp.maximum(n1sq * n2sq, jnp.float32(1e-16)))


# ----------------------------------------------------------------------------
if __name__ == "__main__":
    key = jax.random.PRNGKey(0)
    k_param, k_x1, k_x2, k_pic = jax.random.split(key, 4)

    # small config: 3 categorical features, pic embedding dim 16, output 32
    feat_sizes = [100, 50, 30]
    pic_embedding_size = 16
    batch_size = 8
    hidden_size = 32      # unused by forward (matches torch module)
    output_size = 32

    model = DSSMModelPallas(feat_sizes, feat_sizes, pic_embedding_size,
                            batch_size, hidden_size, output_size, k_param)

    # integer categorical inputs: shape (B, num_feats), column i < feat_sizes[i]
    maxv = jnp.array(feat_sizes, dtype=jnp.int32)[None, :]
    input1 = (jax.random.randint(k_x1, (batch_size, len(feat_sizes)), 0, 10_000)
              % maxv).astype(jnp.int32)
    input2 = (jax.random.randint(k_x2, (batch_size, len(feat_sizes)), 0, 10_000)
              % maxv).astype(jnp.int32)
    pic_embedding = jax.random.normal(
        k_pic, (batch_size, pic_embedding_size), dtype=jnp.float32)

    out = model(input1, input2, pic_embedding)
    jax.block_until_ready(out)

    ref = _reference(model, input1, input2, pic_embedding)
    assert out.shape == (batch_size,)
    # bf16 matmul operands -> slightly looser tolerance than pure f32
    assert jnp.allclose(out, ref, atol=2e-2, rtol=2e-2), (out, ref)

    print("KERNEL_OK")
</pallas_src>

<mosaic_0001>
module attributes {stable_mosaic.version = 11 : i64} {
  func.func @_dssm_fused_kernel(%arg0: memref<16x256xbf16, #tpu.memory_space<vmem>>, %arg1: memref<256x1024xbf16, #tpu.memory_space<vmem>>, %arg2: memref<2x1024xf32, #tpu.memory_space<vmem>>, %arg3: memref<1024x512xbf16, #tpu.memory_space<vmem>>, %arg4: memref<1x512xf32, #tpu.memory_space<vmem>>, %arg5: memref<512x128xbf16, #tpu.memory_space<vmem>>, %arg6: memref<1x128xf32, #tpu.memory_space<vmem>>, %arg7: memref<8x1xf32, #tpu.memory_space<vmem>>) attributes {dimension_semantics = [], scalar_prefetch = 0 : i64, scratch_operands = 0 : i64, tpu.core_type = #tpu.core_type<tc>} {
    %0 = tpu.iota {dimensions = array<i32: 0>} : vector<16x1xi32>
    %c8_i32 = arith.constant 8 : i32
    %1 = vector.broadcast %c8_i32 : i32 to vector<16x1xi32>
    %2 = arith.cmpi slt, %0, %1 : vector<16x1xi32>
    %3 = arith.extui %2 : vector<16x1xi1> to vector<16x1xi32>
    %4 = arith.sitofp %3 : vector<16x1xi32> to vector<16x1xf32>
    %cst = arith.constant 1.000000e+00 : f32
    %5 = vector.broadcast %cst : f32 to vector<16x1xf32>
    %6 = arith.subf %5, %4 : vector<16x1xf32>
    %c0 = arith.constant 0 : index
    %c0_0 = arith.constant 0 : index
    %7 = vector.load %arg0[%c0, %c0_0] : memref<16x256xbf16, #tpu.memory_space<vmem>>, vector<16x256xbf16>
    %c0_1 = arith.constant 0 : index
    %c0_2 = arith.constant 0 : index
    %8 = vector.load %arg1[%c0_1, %c0_2] : memref<256x1024xbf16, #tpu.memory_space<vmem>>, vector<256x1024xbf16>
    %cst_3 = arith.constant dense<0.000000e+00> : vector<16x1024xf32>
    %9 = tpu.matmul %7, %8, %cst_3 {dimension_numbers = #tpu.dot_dimension_numbers<[1], [0], [0], [1], [0, 0, 1, 1], [], []>} : vector<16x256xbf16>, vector<256x1024xbf16>, vector<16x1024xf32> -> vector<16x1024xf32>
    %c0_4 = arith.constant 0 : index
    %c0_5 = arith.constant 0 : index
    %10 = vector.load %arg2[%c0_4, %c0_5] : memref<2x1024xf32, #tpu.memory_space<vmem>>, vector<1x1024xf32>
    %c1 = arith.constant 1 : index
    %c0_6 = arith.constant 0 : index
    %11 = vector.load %arg2[%c1, %c0_6] : memref<2x1024xf32, #tpu.memory_space<vmem>>, vector<1x1024xf32>
    %12 = vector.broadcast %4 : vector<16x1xf32> to vector<16x1024xf32>
    %13 = vector.broadcast %10 : vector<1x1024xf32> to vector<16x1024xf32>
    %14 = arith.mulf %12, %13 : vector<16x1024xf32>
    %15 = vector.broadcast %6 : vector<16x1xf32> to vector<16x1024xf32>
    %16 = vector.broadcast %11 : vector<1x1024xf32> to vector<16x1024xf32>
    %17 = arith.mulf %15, %16 : vector<16x1024xf32>
    %18 = arith.addf %14, %17 : vector<16x1024xf32>
    %19 = arith.addf %9, %18 : vector<16x1024xf32>
    %cst_7 = arith.constant 0.000000e+00 : f32
    %20 = vector.broadcast %cst_7 : f32 to vector<16x1024xf32>
    %21 = arith.maximumf %19, %20 : vector<16x1024xf32>
    %22 = vector.broadcast %4 : vector<16x1xf32> to vector<16x1024xf32>
    %23 = arith.mulf %21, %22 : vector<16x1024xf32>
    %24 = vector.broadcast %6 : vector<16x1xf32> to vector<16x1024xf32>
    %25 = arith.mulf %21, %24 : vector<16x1024xf32>
    %cst_8 = arith.constant dense<0.000000e+00> : vector<1024xf32>
    %26 = vector.multi_reduction <add>, %23, %cst_8 [0] : vector<16x1024xf32> to vector<1024xf32>
    %27 = vector.shape_cast %26 : vector<1024xf32> to vector<1x1024xf32>
    %cst_9 = arith.constant 1.250000e-01 : f32
    %28 = vector.broadcast %cst_9 : f32 to vector<1x1024xf32>
    %29 = arith.mulf %27, %28 : vector<1x1024xf32>
    %cst_10 = arith.constant dense<0.000000e+00> : vector<1024xf32>
    %30 = vector.multi_reduction <add>, %25, %cst_10 [0] : vector<16x1024xf32> to vector<1024xf32>
    %31 = vector.shape_cast %30 : vector<1024xf32> to vector<1x1024xf32>
    %cst_11 = arith.constant 1.250000e-01 : f32
    %32 = vector.broadcast %cst_11 : f32 to vector<1x1024xf32>
    %33 = arith.mulf %31, %32 : vector<1x1024xf32>
    %34 = arith.mulf %23, %21 : vector<16x1024xf32>
    %cst_12 = arith.constant dense<0.000000e+00> : vector<1024xf32>
    %35 = vector.multi_reduction <add>, %34, %cst_12 [0] : vector<16x1024xf32> to vector<1024xf32>
    %36 = vector.shape_cast %35 : vector<1024xf32> to vector<1x1024xf32>
    %cst_13 = arith.constant 1.250000e-01 : f32
    %37 = vector.broadcast %cst_13 : f32 to vector<1x1024xf32>
    %38 = arith.mulf %36, %37 : vector<1x1024xf32>
    %39 = arith.mulf %25, %21 : vector<16x1024xf32>
    %cst_14 = arith.constant dense<0.000000e+00> : vector<1024xf32>
    %40 = vector.multi_reduction <add>, %39, %cst_14 [0] : vector<16x1024xf32> to vector<1024xf32>
    %41 = vector.shape_cast %40 : vector<1024xf32> to vector<1x1024xf32>
    %cst_15 = arith.constant 1.250000e-01 : f32
    %42 = vector.broadcast %cst_15 : f32 to vector<1x1024xf32>
    %43 = arith.mulf %41, %42 : vector<1x1024xf32>
    %44 = arith.mulf %29, %29 : vector<1x1024xf32>
    %45 = arith.subf %38, %44 : vector<1x1024xf32>
    %cst_16 = arith.constant 0.000000e+00 : f32
    %46 = vector.broadcast %cst_16 : f32 to vector<1x1024xf32>
    %47 = arith.maximumf %45, %46 : vector<1x1024xf32>
    %cst_17 = arith.constant 9.99999974E-6 : f32
    %48 = vector.broadcast %cst_17 : f32 to vector<1x1024xf32>
    %49 = arith.addf %47, %48 : vector<1x1024xf32>
    %50 = math.rsqrt %49 : vector<1x1024xf32>
    %51 = arith.mulf %33, %33 : vector<1x1024xf32>
    %52 = arith.subf %43, %51 : vector<1x1024xf32>
    %cst_18 = arith.constant 0.000000e+00 : f32
    %53 = vector.broadcast %cst_18 : f32 to vector<1x1024xf32>
    %54 = arith.maximumf %52, %53 : vector<1x1024xf32>
    %cst_19 = arith.constant 9.99999974E-6 : f32
    %55 = vector.broadcast %cst_19 : f32 to vector<1x1024xf32>
    %56 = arith.addf %54, %55 : vector<1x1024xf32>
    %57 = math.rsqrt %56 : vector<1x1024xf32>
    %58 = vector.broadcast %4 : vector<16x1xf32> to vector<16x1024xf32>
    %59 = vector.broadcast %29 : vector<1x1024xf32> to vector<16x1024xf32>
    %60 = arith.mulf %58, %59 : vector<16x1024xf32>
    %61 = vector.broadcast %6 : vector<16x1xf32> to vector<16x1024xf32>
    %62 = vector.broadcast %33 : vector<1x1024xf32> to vector<16x1024xf32>
    %63 = arith.mulf %61, %62 : vector<16x1024xf32>
    %64 = arith.addf %60, %63 : vector<16x1024xf32>
    %65 = arith.subf %21, %64 : vector<16x1024xf32>
    %66 = vector.broadcast %4 : vector<16x1xf32> to vector<16x1024xf32>
    %67 = vector.broadcast %50 : vector<1x1024xf32> to vector<16x1024xf32>
    %68 = arith.mulf %66, %67 : vector<16x1024xf32>
    %69 = vector.broadcast %6 : vector<16x1xf32> to vector<16x1024xf32>
    %70 = vector.broadcast %57 : vector<1x1024xf32> to vector<16x1024xf32>
    %71 = arith.mulf %69, %70 : vector<16x1024xf32>
    %72 = arith.addf %68, %71 : vector<16x1024xf32>
    %73 = arith.mulf %65, %72 : vector<16x1024xf32>
    %74 = arith.truncf %73 : vector<16x1024xf32> to vector<16x1024xbf16>
    %c0_20 = arith.constant 0 : index
    %c0_21 = arith.constant 0 : index
    %75 = vector.load %arg3[%c0_20, %c0_21] : memref<1024x512xbf16, #tpu.memory_space<vmem>>, vector<1024x512xbf16>
    %cst_22 = arith.constant dense<0.000000e+00> : vector<16x512xf32>
    %76 = tpu.matmul %74, %75, %cst_22 {dimension_numbers = #tpu.dot_dimension_numbers<[1], [0], [0], [1], [0, 0, 1, 1], [], []>} : vector<16x1024xbf16>, vector<1024x512xbf16>, vector<16x512xf32> -> vector<16x512xf32>
    %c0_23 = arith.constant 0 : index
    %c0_24 = arith.constant 0 : index
    %77 = vector.load %arg4[%c0_23, %c0_24] : memref<1x512xf32, #tpu.memory_space<vmem>>, vector<1x512xf32>
    %78 = vector.broadcast %77 : vector<1x512xf32> to vector<16x512xf32>
    %79 = arith.addf %76, %78 : vector<16x512xf32>
    %cst_25 = arith.constant 0.000000e+00 : f32
    %80 = vector.broadcast %cst_25 : f32 to vector<16x512xf32>
    %81 = arith.maximumf %79, %80 : vector<16x512xf32>
    %82 = vector.broadcast %4 : vector<16x1xf32> to vector<16x512xf32>
    %83 = arith.mulf %81, %82 : vector<16x512xf32>
    %84 = vector.broadcast %6 : vector<16x1xf32> to vector<16x512xf32>
    %85 = arith.mulf %81, %84 : vector<16x512xf32>
    %cst_26 = arith.constant dense<0.000000e+00> : vector<512xf32>
    %86 = vector.multi_reduction <add>, %83, %cst_26 [0] : vector<16x512xf32> to vector<512xf32>
    %87 = vector.shape_cast %86 : vector<512xf32> to vector<1x512xf32>
    %cst_27 = arith.constant 1.250000e-01 : f32
    %88 = vector.broadcast %cst_27 : f32 to vector<1x512xf32>
    %89 = arith.mulf %87, %88 : vector<1x512xf32>
    %cst_28 = arith.constant dense<0.000000e+00> : vector<512xf32>
    %90 = vector.multi_reduction <add>, %85, %cst_28 [0] : vector<16x512xf32> to vector<512xf32>
    %91 = vector.shape_cast %90 : vector<512xf32> to vector<1x512xf32>
    %cst_29 = arith.constant 1.250000e-01 : f32
    %92 = vector.broadcast %cst_29 : f32 to vector<1x512xf32>
    %93 = arith.mulf %91, %92 : vector<1x512xf32>
    %94 = arith.mulf %83, %81 : vector<16x512xf32>
    %cst_30 = arith.constant dense<0.000000e+00> : vector<512xf32>
    %95 = vector.multi_reduction <add>, %94, %cst_30 [0] : vector<16x512xf32> to vector<512xf32>
    %96 = vector.shape_cast %95 : vector<512xf32> to vector<1x512xf32>
    %cst_31 = arith.constant 1.250000e-01 : f32
    %97 = vector.broadcast %cst_31 : f32 to vector<1x512xf32>
    %98 = arith.mulf %96, %97 : vector<1x512xf32>
    %99 = arith.mulf %85, %81 : vector<16x512xf32>
    %cst_32 = arith.constant dense<0.000000e+00> : vector<512xf32>
    %100 = vector.multi_reduction <add>, %99, %cst_32 [0] : vector<16x512xf32> to vector<512xf32>
    %101 = vector.shape_cast %100 : vector<512xf32> to vector<1x512xf32>
    %cst_33 = arith.constant 1.250000e-01 : f32
    %102 = vector.broadcast %cst_33 : f32 to vector<1x512xf32>
    %103 = arith.mulf %101, %102 : vector<1x512xf32>
    %104 = arith.mulf %89, %89 : vector<1x512xf32>
    %105 = arith.subf %98, %104 : vector<1x512xf32>
    %cst_34 = arith.constant 0.000000e+00 : f32
    %106 = vector.broadcast %cst_34 : f32 to vector<1x512xf32>
    %107 = arith.maximumf %105, %106 : vector<1x512xf32>
    %cst_35 = arith.constant 9.99999974E-6 : f32
    %108 = vector.broadcast %cst_35 : f32 to vector<1x512xf32>
    %109 = arith.addf %107, %108 : vector<1x512xf32>
    %110 = math.rsqrt %109 : vector<1x512xf32>
    %111 = arith.mulf %93, %93 : vector<1x512xf32>
    %112 = arith.subf %103, %111 : vector<1x512xf32>
    %cst_36 = arith.constant 0.000000e+00 : f32
    %113 = vector.broadcast %cst_36 : f32 to vector<1x512xf32>
    %114 = arith.maximumf %112, %113 : vector<1x512xf32>
    %cst_37 = arith.constant 9.99999974E-6 : f32
    %115 = vector.broadcast %cst_37 : f32 to vector<1x512xf32>
    %116 = arith.addf %114, %115 : vector<1x512xf32>
    %117 = math.rsqrt %116 : vector<1x512xf32>
    %118 = vector.broadcast %4 : vector<16x1xf32> to vector<16x512xf32>
    %119 = vector.broadcast %89 : vector<1x512xf32> to vector<16x512xf32>
    %120 = arith.mulf %118, %119 : vector<16x512xf32>
    %121 = vector.broadcast %6 : vector<16x1xf32> to vector<16x512xf32>
    %122 = vector.broadcast %93 : vector<1x512xf32> to vector<16x512xf32>
    %123 = arith.mulf %121, %122 : vector<16x512xf32>
    %124 = arith.addf %120, %123 : vector<16x512xf32>
    %125 = arith.subf %81, %124 : vector<16x512xf32>
    %126 = vector.broadcast %4 : vector<16x1xf32> to vector<16x512xf32>
    %127 = vector.broadcast %110 : vector<1x512xf32> to vector<16x512xf32>
    %128 = arith.mulf %126, %127 : vector<16x512xf32>
    %129 = vector.broadcast %6 : vector<16x1xf32> to vector<16x512xf32>
    %130 = vector.broadcast %117 : vector<1x512xf32> to vector<16x512xf32>
    %131 = arith.mulf %129, %130 : vector<16x512xf32>
    %132 = arith.addf %128, %131 : vector<16x512xf32>
    %133 = arith.mulf %125, %132 : vector<16x512xf32>
    %134 = arith.truncf %133 : vector<16x512xf32> to vector<16x512xbf16>
    %c0_38 = arith.constant 0 : index
    %c0_39 = arith.constant 0 : index
    %135 = vector.load %arg5[%c0_38, %c0_39] : memref<512x128xbf16, #tpu.memory_space<vmem>>, vector<512x128xbf16>
    %cst_40 = arith.constant dense<0.000000e+00> : vector<16x128xf32>
    %136 = tpu.matmul %134, %135, %cst_40 {dimension_numbers = #tpu.dot_dimension_numbers<[1], [0], [0], [1], [0, 0, 1, 1], [], []>} : vector<16x512xbf16>, vector<512x128xbf16>, vector<16x128xf32> -> vector<16x128xf32>
    %c0_41 = arith.constant 0 : index
    %c0_42 = arith.constant 0 : index
    %137 = vector.load %arg6[%c0_41, %c0_42] : memref<1x128xf32, #tpu.memory_space<vmem>>, vector<1x128xf32>
    %138 = vector.broadcast %137 : vector<1x128xf32> to vector<16x128xf32>
    %139 = arith.addf %136, %138 : vector<16x128xf32>
    %cst_43 = arith.constant 0.000000e+00 : f32
    %140 = vector.broadcast %cst_43 : f32 to vector<16x128xf32>
    %141 = arith.maximumf %139, %140 : vector<16x128xf32>
    %142 = vector.extract_strided_slice %141 {offsets = [0, 0], sizes = [8, 128], strides = [1, 1]} : vector<16x128xf32> to vector<8x128xf32>
    %143 = vector.extract_strided_slice %141 {offsets = [8, 0], sizes = [8, 128], strides = [1, 1]} : vector<16x128xf32> to vector<8x128xf32>
    %144 = arith.mulf %142, %143 : vector<8x128xf32>
    %cst_44 = arith.constant dense<0.000000e+00> : vector<8xf32>
    %145 = vector.multi_reduction <add>, %144, %cst_44 [1] : vector<8x128xf32> to vector<8xf32>
    %146 = vector.shape_cast %145 : vector<8xf32> to vector<8x1xf32>
    %147 = arith.mulf %142, %142 : vector<8x128xf32>
    %cst_45 = arith.constant dense<0.000000e+00> : vector<8xf32>
    %148 = vector.multi_reduction <add>, %147, %cst_45 [1] : vector<8x128xf32> to vector<8xf32>
    %149 = vector.shape_cast %148 : vector<8xf32> to vector<8x1xf32>
    %150 = arith.mulf %143, %143 : vector<8x128xf32>
    %cst_46 = arith.constant dense<0.000000e+00> : vector<8xf32>
    %151 = vector.multi_reduction <add>, %150, %cst_46 [1] : vector<8x128xf32> to vector<8xf32>
    %152 = vector.shape_cast %151 : vector<8xf32> to vector<8x1xf32>
    %153 = arith.mulf %149, %152 : vector<8x1xf32>
    %cst_47 = arith.constant 1.000000e-16 : f32
    %154 = vector.broadcast %cst_47 : f32 to vector<8x1xf32>
    %155 = arith.maximumf %153, %154 : vector<8x1xf32>
    %156 = math.rsqrt %155 : vector<8x1xf32>
    %157 = arith.mulf %146, %156 : vector<8x1xf32>
    %c0_48 = arith.constant 0 : index
    %c0_49 = arith.constant 0 : index
    %158 = vector.load %arg7[%c0_48, %c0_49] : memref<8x1xf32, #tpu.memory_space<vmem>>, vector<8x1xf32>
    tpu.vector_store %arg7[%c0_48, %c0_49], %157 {strides = array<i32>} : memref<8x1xf32, #tpu.memory_space<vmem>>, vector<8x1xf32>,
    return
  }
}

</mosaic_0001>

<bundles_post_ra>
// kernel: a_call__.1
= control target key start
LH: loop header
LB: loop body
LE: loop exit
PB: predicated region body
PF: predicated region fallthrough
CT: control target
= control target key end

     0   :  { %vm4213_vm0 = vcmask 7168   ;;  %s7055_s1 = inlined_call_operand.vmem [shape: bf16[256,1024], index: 1, kind: input, shape index: {}]   ;;  %s7056_s0 = inlined_call_operand.vmem [shape: bf16[16,256], index: 0, kind: input, shape index: {}]   ;;  %s7057_s3 = inlined_call_operand.vmem [shape: bf16[1024,512], index: 3, kind: input, shape index: {}]   ;;  %s7058_s2 = inlined_call_operand.vmem [shape: f32[2,1024], index: 2, kind: input, shape index: {}]   ;;  %s7059_s5 = inlined_call_operand.vmem [shape: bf16[512,128], index: 5, kind: input, shape index: {}]   ;;  %s7060_s4 = inlined_call_operand.vmem [shape: f32[1,512], index: 4, kind: input, shape index: {}]   ;;  %s7061_s6 = inlined_call_operand.vmem [shape: f32[1,128], index: 6, kind: input, shape index: {}]   ;;  %s7062_s7 = inlined_call_operand.vmem [shape: f32[8,1], index: 7, kind: output, shape index: {}]  }
   0x1   :  { %v40_v0 = vld [vmem:[%s7055_s1] sm:$0xff]  ;;  %v41_v10 = vld [vmem:[%s7055_s1 + $0x8] sm:$0xff] }
   0x2   :  { %v44_v1 = vld [vmem:[%s7055_s1 + $0x20] sm:$0xff]  ;;  %v45_v11 = vld [vmem:[%s7055_s1 + $0x28] sm:$0xff] }
   0x3   :  { %v48_v2 = vld [vmem:[%s7055_s1 + $0x40] sm:$0xff]  ;;  %v4223_v3 = vcombine.high %v40_v0, %v44_v1  ;;  %v4222_v4 = vcombine.low %v40_v0, %v44_v1  ;;  %v4225_v13 = vcombine.high %v41_v10, %v45_v11  ;;  %v4224_v14 = vcombine.low %v41_v10, %v45_v11  ;;  %v49_v15 = vld [vmem:[%s7055_s1 + $0x48] sm:$0xff] }
   0x4   :  { %v52_v5 = vld [vmem:[%s7055_s1 + $0x60] sm:$0xff]  ;;  %v53_v16 = vld [vmem:[%s7055_s1 + $0x68] sm:$0xff] }
   0x5   :  { %v4231_v6 = vcombine.high %v48_v2, %v52_v5  ;;  %v56_v7 = vld [vmem:[%s7055_s1 + $0x80] sm:$0xff]  ;;  %951 = vmatprep.subr.bf16.mxu0 %v4223_v3  ;;  %v4230_v9 = vcombine.low %v48_v2, %v52_v5  ;;  %v4233_v19 = vcombine.high %v49_v15, %v53_v16  ;;  %v57_v20 = vld [vmem:[%s7055_s1 + $0x88] sm:$0xff]  ;;  %994 = vmatprep.subr.bf16.mxu1 %v4225_v13 }
   0x6   :  { %v60_v8 = vld [vmem:[%s7055_s1 + $0xa0] sm:$0xff]  ;;  %952 = vmatpush1.bf16.msra.mxu0 %v4222_v4  ;;  %v61_v21 = vld [vmem:[%s7055_s1 + $0xa8] sm:$0xff]  ;;  %995 = vmatpush1.bf16.msra.mxu1 %v4224_v14  ;;  %v4232_v23 = vcombine.low %v49_v15, %v53_v16 }
   0x7   :  { %953 = vmatprep.subr.bf16.mxu0 %v4231_v6  ;;  %v4239_v12 = vcombine.high %v56_v7, %v60_v8  ;;  %v64_v17 = vld [vmem:[%s7055_s1 + $0xc0] sm:$0xff]  ;;  %v4238_v22 = vcombine.low %v56_v7, %v60_v8  ;;  %996 = vmatprep.subr.bf16.mxu1 %v4233_v19  ;;  %v4241_v26 = vcombine.high %v57_v20, %v61_v21  ;;  %v65_v28 = vld [vmem:[%s7055_s1 + $0xc8] sm:$0xff] }
   0x8   :  { %v68_v18 = vld [vmem:[%s7055_s1 + $0xe0] sm:$0xff]  ;;  %v69_v29 = vld [vmem:[%s7055_s1 + $0xe8] sm:$0xff]  ;;  %v4240_v31 = vcombine.low %v57_v20, %v61_v21 }
   0x9   :  { %v4247_v24 = vcombine.high %v64_v17, %v68_v18  ;;  %v72_v25 = vld [vmem:[%s7055_s1 + $0x100] sm:$0xff]  ;;  %v4246_v30 = vcombine.low %v64_v17, %v68_v18  ;;  %v4249_v34 = vcombine.high %v65_v28, %v69_v29  ;;  %v73_v36 = vld [vmem:[%s7055_s1 + $0x108] sm:$0xff]  ;;  %v4248_v40 = vcombine.low %v65_v28, %v69_v29 }
   0xa   :  { %954 = vmatpush1.bf16.msra.mxu0 %v4230_v9  ;;  %v76_v27 = vld [vmem:[%s7055_s1 + $0x120] sm:$0xff]  ;;  %997 = vmatpush1.bf16.msra.mxu1 %v4232_v23  ;;  %v77_v37 = vld [vmem:[%s7055_s1 + $0x128] sm:$0xff] }
   0xb   :  { %955 = vmatprep.subr.bf16.mxu0 %v4239_v12  ;;  %v4255_v32 = vcombine.high %v72_v25, %v76_v27  ;;  %v80_v33 = vld [vmem:[%s7055_s1 + $0x140] sm:$0xff]  ;;  %998 = vmatprep.subr.bf16.mxu1 %v4241_v26  ;;  %v4254_v38 = vcombine.low %v72_v25, %v76_v27  ;;  %v4257_v43 = vcombine.high %v73_v36, %v77_v37  ;;  %v81_v44 = vld [vmem:[%s7055_s1 + $0x148] sm:$0xff] }
   0xc   :  { %v84_v35 = vld [vmem:[%s7055_s1 + $0x160] sm:$0xff]  ;;  %v85_v45 = vld [vmem:[%s7055_s1 + $0x168] sm:$0xff]  ;;  %v4256_v48 = vcombine.low %v73_v36, %v77_v37 }
   0xd   :  { %v88_v39 = vld [vmem:[%s7055_s1 + $0x180] sm:$0xff]  ;;  %v4263_v41 = vcombine.high %v80_v33, %v84_v35  ;;  %v4262_v47 = vcombine.low %v80_v33, %v84_v35  ;;  %v4265_v51 = vcombine.high %v81_v44, %v85_v45  ;;  %v89_v53 = vld [vmem:[%s7055_s1 + $0x188] sm:$0xff]  ;;  %v4264_v56 = vcombine.low %v81_v44, %v85_v45 }
   0xe   :  { %956 = vmatpush1.bf16.msra.mxu0 %v4238_v22  ;;  %999 = vmatpush1.bf16.msra.mxu1 %v4240_v31  ;;  %v92_v42 = vld [vmem:[%s7055_s1 + $0x1a0] sm:$0xff]  ;;  %v93_v54 = vld [vmem:[%s7055_s1 + $0x1a8] sm:$0xff] }
   0xf   :  { %957 = vmatprep.subr.bf16.mxu0 %v4247_v24  ;;  %1000 = vmatprep.subr.bf16.mxu1 %v4249_v34  ;;  %v5305_v46 = vld [vmem:[%s7056_s0 + $0x4] ss:$8 sps:$4 sm:$0xff]   ;;  %v4271_v49 = vcombine.high %v88_v39, %v92_v42  ;;  %v4270_v55 = vcombine.low %v88_v39, %v92_v42  ;;  %v4273_v59 = vcombine.high %v89_v53, %v93_v54 }
  0x10   :  { %v96_v50 = vld [vmem:[%s7055_s1 + $0x1c0] sm:$0xff]  ;;  %983 = vmatprep.mubr.bf16.mxu0 %v5305_v46  ;;  %1026 = vmatprep.mubr.bf16.mxu1 %v5305_v46  ;;  %v97_v61 = vld [vmem:[%s7055_s1 + $0x1c8] sm:$0xff]  ;;  %v4272_v0 = vcombine.low %v89_v53, %v93_v54 }
  0x11   :  { %v100_v52 = vld [vmem:[%s7055_s1 + $0x1e0] sm:$0xff]  ;;  %v101_v62 = vld [vmem:[%s7055_s1 + $0x1e8] sm:$0xff] }
  0x12   :  { %958 = vmatpush1.bf16.msra.mxu0 %v4246_v30  ;;  %1001 = vmatpush1.bf16.msra.mxu1 %v4248_v40  ;;  %v4279_v57 = vcombine.high %v96_v50, %v100_v52  ;;  %v104_v58 = vld [vmem:[%s7055_s1 + $0x200] sm:$0xff]  ;;  %v4278_v63 = vcombine.low %v96_v50, %v100_v52  ;;  %v4281_v3 = vcombine.high %v97_v61, %v101_v62  ;;  %v105_v5 = vld [vmem:[%s7055_s1 + $0x208] sm:$0xff] }
  0x13   :  { %959 = vmatprep.subr.bf16.mxu0 %v4255_v32  ;;  %1002 = vmatprep.subr.bf16.mxu1 %v4257_v43  ;;  %v108_v60 = vld [vmem:[%s7055_s1 + $0x220] sm:$0xff]  ;;  %v109_v6 = vld [vmem:[%s7055_s1 + $0x228] sm:$0xff]  ;;  %v4280_v8 = vcombine.low %v97_v61, %v101_v62  ;;  %v46_v61 = vld [vmem:[%s7055_s1 + $0x30] sm:$0xff] }
  0x14   :  { %v4287_v1 = vcombine.high %v104_v58, %v108_v60  ;;  %v112_v2 = vld [vmem:[%s7055_s1 + $0x240] sm:$0xff]  ;;  %v4286_v7 = vcombine.low %v104_v58, %v108_v60  ;;  %v4289_v11 = vcombine.high %v105_v5, %v109_v6  ;;  %v113_v13 = vld [vmem:[%s7055_s1 + $0x248] sm:$0xff]  ;;  %v4288_v16 = vcombine.low %v105_v5, %v109_v6  ;;  %v42_v60 = vld [vmem:[%s7055_s1 + $0x10] sm:$0xff] }
  0x15   :  { %v116_v4 = vld [vmem:[%s7055_s1 + $0x260] sm:$0xff]  ;;  %v117_v14 = vld [vmem:[%s7055_s1 + $0x268] sm:$0xff]  ;;  %v4227_v6 = vcombine.high %v42_v60, %v46_v61 }
  0x16   :  { %960 = vmatpush1.bf16.msra.mxu0 %v4254_v38  ;;  %1003 = vmatpush1.bf16.msra.mxu1 %v4256_v48  ;;  %v4295_v9 = vcombine.high %v112_v2, %v116_v4  ;;  %v120_v10 = vld [vmem:[%s7055_s1 + $0x280] sm:$0xff]  ;;  %v4294_v15 = vcombine.low %v112_v2, %v116_v4  ;;  %v4297_v19 = vcombine.high %v113_v13, %v117_v14  ;;  %v121_v21 = vld [vmem:[%s7055_s1 + $0x288] sm:$0xff]  ;;  %v50_v2 = vld [vmem:[%s7055_s1 + $0x50] sm:$0xff] }
  0x17   :  { %961 = vmatprep.subr.bf16.mxu0 %v4263_v41  ;;  %1004 = vmatprep.subr.bf16.mxu1 %v4265_v51  ;;  %v124_v12 = vld [vmem:[%s7055_s1 + $0x2a0] sm:$0xff]  ;;  %v125_v22 = vld [vmem:[%s7055_s1 + $0x2a8] sm:$0xff]  ;;  %v4296_v24 = vcombine.low %v113_v13, %v117_v14  ;;  %v51_v13 = vld [vmem:[%s7055_s1 + $0x58] sm:$0xff] }
  0x18   :  { %v4303_v17 = vcombine.high %v120_v10, %v124_v12  ;;  %v128_v18 = vld [vmem:[%s7055_s1 + $0x2c0] sm:$0xff]  ;;  %v4302_v23 = vcombine.low %v120_v10, %v124_v12  ;;  %v4305_v27 = vcombine.high %v121_v21, %v125_v22  ;;  %v129_v29 = vld [vmem:[%s7055_s1 + $0x2c8] sm:$0xff]  ;;  %v4304_v33 = vcombine.low %v121_v21, %v125_v22  ;;  %v62_v12 = vld [vmem:[%s7055_s1 + $0xb0] sm:$0xff] }
  0x19   :  { %v132_v20 = vld [vmem:[%s7055_s1 + $0x2e0] sm:$0xff]  ;;  %v133_v30 = vld [vmem:[%s7055_s1 + $0x2e8] sm:$0xff]  ;;  %v4226_v10 = vcombine.low %v42_v60, %v46_v61  ;;  %v55_v14 = vld [vmem:[%s7055_s1 + $0x78] sm:$0xff] }
  0x1a   :  { %962 = vmatpush1.bf16.msra.mxu0 %v4262_v47  ;;  %1005 = vmatpush1.bf16.msra.mxu1 %v4264_v56  ;;  %v4311_v25 = vcombine.high %v128_v18, %v132_v20  ;;  %v136_v26 = vld [vmem:[%s7055_s1 + $0x300] sm:$0xff]  ;;  %v4310_v31 = vcombine.low %v128_v18, %v132_v20  ;;  %v4313_v36 = vcombine.high %v129_v29, %v133_v30  ;;  %v137_v37 = vld [vmem:[%s7055_s1 + $0x308] sm:$0xff]  ;;  %v66_v18 = vld [vmem:[%s7055_s1 + $0xd0] sm:$0xff] }
  0x1b   :  { %963 = vmatprep.subr.bf16.mxu0 %v4271_v49  ;;  %1006 = vmatprep.subr.bf16.mxu1 %v4273_v59  ;;  %v140_v28 = vld [vmem:[%s7055_s1 + $0x320] sm:$0xff]  ;;  %v141_v38 = vld [vmem:[%s7055_s1 + $0x328] sm:$0xff]  ;;  %v4312_v41 = vcombine.low %v129_v29, %v133_v30  ;;  %v59_v21 = vld [vmem:[%s7055_s1 + $0x98] sm:$0xff] }
  0x1c   :  { %v144_v32 = vld [vmem:[%s7055_s1 + $0x340] sm:$0xff]  ;;  %v4319_v34 = vcombine.high %v136_v26, %v140_v28  ;;  %v4318_v39 = vcombine.low %v136_v26, %v140_v28  ;;  %v4321_v44 = vcombine.high %v137_v37, %v141_v38  ;;  %v145_v45 = vld [vmem:[%s7055_s1 + $0x348] sm:$0xff]  ;;  %v4320_v51 = vcombine.low %v137_v37, %v141_v38  ;;  %v63_v22 = vld [vmem:[%s7055_s1 + $0xb8] sm:$0xff] }
  0x1d   :  { %v148_v35 = vld [vmem:[%s7055_s1 + $0x360] sm:$0xff]  ;;  %v149_v47 = vld [vmem:[%s7055_s1 + $0x368] sm:$0xff]  ;;  %v74_v26 = vld [vmem:[%s7055_s1 + $0x110] sm:$0xff]  ;;  %v4236_v28 = vcombine.low %v51_v13, %v55_v14 }
  0x1e   :  { %964 = vmatpush1.bf16.msra.mxu0 %v4270_v55  ;;  %1007 = vmatpush1.bf16.msra.mxu1 %v4272_v0  ;;  %v152_v40 = vld [vmem:[%s7055_s1 + $0x380] sm:$0xff]  ;;  %v4327_v42 = vcombine.high %v144_v32, %v148_v35  ;;  %v4326_v48 = vcombine.low %v144_v32, %v148_v35  ;;  %v153_v52 = vld [vmem:[%s7055_s1 + $0x388] sm:$0xff]  ;;  %v4329_v55 = vcombine.high %v145_v45, %v149_v47  ;;  %v67_v29 = vld [vmem:[%s7055_s1 + $0xd8] sm:$0xff] }
  0x1f   :  { %965 = vmatprep.subr.bf16.mxu0 %v4279_v57  ;;  %1008 = vmatprep.subr.bf16.mxu1 %v4281_v3  ;;  %v156_v43 = vld [vmem:[%s7055_s1 + $0x3a0] sm:$0xff]  ;;  %v157_v53 = vld [vmem:[%s7055_s1 + $0x3a8] sm:$0xff]  ;;  %v4328_v57 = vcombine.low %v145_v45, %v149_v47  ;;  %v54_v3 = vld [vmem:[%s7055_s1 + $0x70] sm:$0xff]  ;;  %v4245_v32 = vcombine.high %v59_v21, %v63_v22 }
  0x20   :  { %v160_v49 = vld [vmem:[%s7055_s1 + $0x3c0] sm:$0xff]  ;;  %v4335_v54 = vcombine.high %v152_v40, %v156_v43  ;;  %v4334_v56 = vcombine.low %v152_v40, %v156_v43  ;;  %v161_v58 = vld [vmem:[%s7055_s1 + $0x3c8] sm:$0xff]  ;;  %v71_v30 = vld [vmem:[%s7055_s1 + $0xf8] sm:$0xff] }
  0x21   :  { %v164_v50 = vld [vmem:[%s7055_s1 + $0x3e0] sm:$0xff]  ;;  %v165_v59 = vld [vmem:[%s7055_s1 + $0x3e8] sm:$0xff]  ;;  %v86_v35 = vld [vmem:[%s7055_s1 + $0x170] sm:$0xff]  ;;  %v4252_v43 = vcombine.low %v67_v29, %v71_v30 }
  0x22   :  { %966 = vmatpush1.bf16.msra.mxu0 %v4278_v63  ;;  %1009 = vmatpush1.bf16.msra.mxu1 %v4280_v8  ;;  %v4343_v62 = vcombine.high %v160_v49, %v164_v50  ;;  %v4337_v63 = vcombine.high %v153_v52, %v157_v53  ;;  %v4342_v0 = vcombine.low %v160_v49, %v164_v50  ;;  %v5438_v4 = vld [vmem:[%s7056_s0] ss:$8 sps:$4 sm:$0xff]   ;;  %v47_v8 = vld [vmem:[%s7055_s1 + $0x38] sm:$0xff]  ;;  %v98_v50 = vld [vmem:[%s7055_s1 + $0x1d0] sm:$0xff] }
  0x23   :  { %967 = vmatprep.subr.bf16.mxu0 %v4287_v1  ;;  %1010 = vmatprep.subr.bf16.mxu1 %v4289_v11  ;;  %v4336_v1 = vcombine.low %v153_v52, %v157_v53  ;;  %v4345_v5 = vcombine.high %v161_v58, %v165_v59  ;;  %v58_v11 = vld [vmem:[%s7055_s1 + $0x90] sm:$0xff]  ;;  %v75_v37 = vld [vmem:[%s7055_s1 + $0x118] sm:$0xff] }
  0x24   :  { %v87_v45 = vld [vmem:[%s7055_s1 + $0x178] sm:$0xff] }
  0x25   :  { %v91_v53 = vld [vmem:[%s7055_s1 + $0x198] sm:$0xff] }
  0x26   :  { %968 = vmatpush1.bf16.msra.mxu0 %v4286_v7  ;;  %1011 = vmatpush1.bf16.msra.mxu1 %v4288_v16  ;;  %v43_v7 = vld [vmem:[%s7055_s1 + $0x18] sm:$0xff] }
  0x27   :  { %969 = vmatprep.subr.bf16.mxu0 %v4295_v9  ;;  %1012 = vmatprep.subr.bf16.mxu1 %v4297_v19  ;;  %v4344_v9 = vcombine.low %v161_v58, %v165_v59  ;;  %v4229_v16 = vcombine.high %v43_v7, %v47_v8  ;;  %v70_v19 = vld [vmem:[%s7055_s1 + $0xf0] sm:$0xff]  ;;  %v4228_v20 = vcombine.low %v43_v7, %v47_v8  ;;  %v99_v61 = vld [vmem:[%s7055_s1 + $0x1d8] sm:$0xff] }
  0x28   :  { %v106_v58 = vld [vmem:[%s7055_s1 + $0x210] sm:$0xff]  ;;  %v111_v7 = vld [vmem:[%s7055_s1 + $0x238] sm:$0xff] }
  0x29   :  { %v110_v59 = vld [vmem:[%s7055_s1 + $0x230] sm:$0xff] }
  0x2a   :  { %970 = vmatpush1.bf16.msra.mxu0 %v4294_v15  ;;  %1013 = vmatpush1.bf16.msra.mxu1 %v4296_v24  ;;  %v4235_v15 = vcombine.high %v50_v2, %v54_v3  ;;  %v4237_v24 = vcombine.high %v51_v13, %v55_v14  ;;  %v4291_v8 = vcombine.high %v106_v58, %v110_v59  ;;  %v115_v14 = vld [vmem:[%s7055_s1 + $0x258] sm:$0xff] }
  0x2b   :  { %971 = vmatprep.subr.bf16.mxu0 %v4303_v17  ;;  %1014 = vmatprep.subr.bf16.mxu1 %v4305_v27  ;;  %v4234_v17 = vcombine.low %v50_v2, %v54_v3  ;;  %v78_v27 = vld [vmem:[%s7055_s1 + $0x130] sm:$0xff] }
  0x2c   :  { %v4259_v38 = vcombine.high %v74_v26, %v78_v27  ;;  %v4258_v40 = vcombine.low %v74_v26, %v78_v27  ;;  %v114_v2 = vld [vmem:[%s7055_s1 + $0x250] sm:$0xff] }
  0x2d   :  { %v118_v3 = vld [vmem:[%s7055_s1 + $0x270] sm:$0xff] }
  0x2e   :  { %972 = vmatpush1.bf16.msra.mxu0 %v4302_v23  ;;  %1015 = vmatpush1.bf16.msra.mxu1 %v4304_v33  ;;  %v4243_v23 = vcombine.high %v58_v11, %v62_v12  ;;  %v4250_v33 = vcombine.low %v66_v18, %v70_v19  ;;  %v138_v27 = vld [vmem:[%s7055_s1 + $0x310] sm:$0xff] }
  0x2f   :  { %973 = vmatprep.subr.bf16.mxu0 %v4311_v25  ;;  %1016 = vmatprep.subr.bf16.mxu1 %v4313_v36  ;;  %v4242_v25 = vcombine.low %v58_v11, %v62_v12  ;;  %v4244_v36 = vcombine.low %v59_v21, %v63_v22  ;;  %v122_v11 = vld [vmem:[%s7055_s1 + $0x290] sm:$0xff]  ;;  %v123_v22 = vld [vmem:[%s7055_s1 + $0x298] sm:$0xff] }
  0x30   :  { %v126_v12 = vld [vmem:[%s7055_s1 + $0x2b0] sm:$0xff] }
  0x31   :  { %v4306_v26 = vcombine.low %v122_v11, %v126_v12 }
  0x32   :  { %974 = vmatpush1.bf16.msra.mxu0 %v4310_v31  ;;  %1017 = vmatpush1.bf16.msra.mxu1 %v4312_v41  ;;  %v4251_v31 = vcombine.high %v66_v18, %v70_v19  ;;  %v90_v41 = vld [vmem:[%s7055_s1 + $0x190] sm:$0xff]  ;;  %v4298_v18 = vcombine.low %v114_v2, %v118_v3 }
  0x33   :  { %975 = vmatprep.subr.bf16.mxu0 %v4319_v34  ;;  %1018 = vmatprep.subr.bf16.mxu1 %v4321_v44  ;;  %v82_v34 = vld [vmem:[%s7055_s1 + $0x150] sm:$0xff]  ;;  %v83_v44 = vld [vmem:[%s7055_s1 + $0x158] sm:$0xff] }
  0x34   :  { %v4267_v47 = vcombine.high %v82_v34, %v86_v35  ;;  %v4266_v49 = vcombine.low %v82_v34, %v86_v35  ;;  %v4268_v60 = vcombine.low %v83_v44, %v87_v45  ;;  %v130_v19 = vld [vmem:[%s7055_s1 + $0x2d0] sm:$0xff] }
  0x35   :  { %v146_v35 = vld [vmem:[%s7055_s1 + $0x350] sm:$0xff] }
  0x36   :  { %976 = vmatpush1.bf16.msra.mxu0 %v4318_v39  ;;  %1019 = vmatpush1.bf16.msra.mxu1 %v4320_v51  ;;  %v4253_v39 = vcombine.high %v67_v29, %v71_v30  ;;  %v102_v51 = vld [vmem:[%s7055_s1 + $0x1f0] sm:$0xff]  ;;  %v131_v30 = vld [vmem:[%s7055_s1 + $0x2d8] sm:$0xff] }
  0x37   :  { %977 = vmatprep.subr.bf16.mxu0 %v4327_v42  ;;  %1020 = vmatprep.subr.bf16.mxu1 %v4329_v55  ;;  %v94_v42 = vld [vmem:[%s7055_s1 + $0x1b0] sm:$0xff] }
  0x38   :  { %v4275_v55 = vcombine.high %v90_v41, %v94_v42 }
  0x3a   :  { %978 = vmatpush1.bf16.msra.mxu0 %v4326_v48  ;;  %1021 = vmatpush1.bf16.msra.mxu1 %v4328_v57  ;;  %v4274_v57 = vcombine.low %v90_v41, %v94_v42  ;;  %v154_v42 = vld [vmem:[%s7055_s1 + $0x390] sm:$0xff] }
  0x3b   :  { %979 = vmatprep.subr.bf16.mxu0 %v4335_v54  ;;  %1022 = vmatprep.subr.bf16.mxu1 %v4337_v63  ;;  %v95_v54 = vld [vmem:[%s7055_s1 + $0x1b8] sm:$0xff]  ;;  %v4283_v63 = vcombine.high %v98_v50, %v102_v51 }
  0x3e   :  { %980 = vmatpush1.bf16.msra.mxu0 %v4334_v56  ;;  %1023 = vmatpush1.bf16.msra.mxu1 %v4336_v1  ;;  %v4269_v56 = vcombine.high %v83_v44, %v87_v45  ;;  %v4282_v1 = vcombine.low %v98_v50, %v102_v51  ;;  %v147_v45 = vld [vmem:[%s7055_s1 + $0x358] sm:$0xff]  ;;  %v162_v51 = vld [vmem:[%s7055_s1 + $0x3d0] sm:$0xff] }
  0x3f   :  { %981 = vmatprep.subr.bf16.mxu0 %v4343_v62  ;;  %1024 = vmatprep.subr.bf16.mxu1 %v4345_v5  ;;  %v103_v62 = vld [vmem:[%s7055_s1 + $0x1f8] sm:$0xff]  ;;  %v4276_v5 = vcombine.low %v91_v53, %v95_v54 }
  0x40   :  { %v4284_v13 = vcombine.low %v99_v61, %v103_v62 }
  0x42   :  { %982 = vmatpush1.bf16.msra.mxu0 %v4342_v0  ;;  %1025 = vmatpush1.bf16.msra.mxu1 %v4344_v9  ;;  %v4277_v0 = vcombine.high %v91_v53, %v95_v54  ;;  %v4285_v9 = vcombine.high %v99_v61, %v103_v62  ;;  %v155_v54 = vld [vmem:[%s7055_s1 + $0x398] sm:$0xff] }
  0x43   :  { %1037 = vmatprep.subr.bf16.mxu0 %v4227_v6  ;;  %1080 = vmatprep.subr.bf16.mxu1 %v4229_v16  ;;  %v107_v6 = vld [vmem:[%s7055_s1 + $0x218] sm:$0xff]  ;;  %v4299_v16 = vcombine.high %v114_v2, %v118_v3 }
  0x44   :  { %v4292_v21 = vcombine.low %v107_v6, %v111_v7  ;;  %v167_v61 = vld [vmem:[%s7055_s1 + $0x3f8] sm:$0xff] }
  0x45   :  { %984 = vmatmul.mubr.bf16.vlgmr.msra.gmra.mrb[0].mxu0 %v5438_v4  ;;  %1027 = vmatmul.mubr.bf16.vlgmr.msra.gmra.mrb[0].mxu1 %v5438_v4 }
  0x46   :  { %1038 = vmatpush1.bf16.msra.mxu0 %v4226_v10  ;;  %1069 = vmatprep.mubr.bf16.mxu0 %v5305_v46  ;;  %v4290_v10 = vcombine.low %v106_v58, %v110_v59 }
  0x47   :  { %1039 = vmatprep.subr.bf16.mxu0 %v4235_v15  ;;  %1081 = vmatpush1.bf16.msra.mxu1 %v4228_v20  ;;  %v119_v15 = vld [vmem:[%s7055_s1 + $0x278] sm:$0xff]  ;;  %v134_v20 = vld [vmem:[%s7055_s1 + $0x2f0] sm:$0xff] }
  0x48   :  { %1082 = vmatprep.subr.bf16.mxu1 %v4237_v24  ;;  %1112 = vmatprep.mubr.bf16.mxu1 %v5305_v46  ;;  %v79_v46 = vld [vmem:[%s7055_s1 + $0x138] sm:$0xff]  ;;  %v4307_v24 = vcombine.high %v122_v11, %v126_v12  ;;  %v4300_v29 = vcombine.low %v115_v14, %v119_v15  ;;  %v4314_v34 = vcombine.low %v130_v19, %v134_v20  ;;  %v4732_v12 = vld [vmem:[%s7057_s3 + $0x44] ss:$16 sps:$4 sm:$0xff]  }
  0x49   :  { %v4261_v48 = vcombine.high %v75_v37, %v79_v46  ;;  %v4260_v52 = vcombine.low %v75_v37, %v79_v46  ;;  %v139_v46 = vld [vmem:[%s7055_s1 + $0x318] sm:$0xff] }
  0x4a   :  { %1040 = vmatpush1.bf16.msra.mxu0 %v4234_v17  ;;  %v4293_v17 = vcombine.high %v107_v6, %v111_v7  ;;  %v4723_v6 = vld [vmem:[%s7057_s3 + $0xc] ss:$16 sps:$4 sm:$0xff]   ;;  %v4726_v7 = vld [vmem:[%s7057_s3 + $0x24] ss:$16 sps:$4 sm:$0xff]  }
  0x4b   :  { %1041 = vmatprep.subr.bf16.mxu0 %v4243_v23  ;;  %1083 = vmatpush1.bf16.msra.mxu1 %v4236_v28  ;;  %v127_v23 = vld [vmem:[%s7055_s1 + $0x2b8] sm:$0xff]  ;;  %v142_v28 = vld [vmem:[%s7055_s1 + $0x330] sm:$0xff] }
  0x4c   :  { %1084 = vmatprep.subr.bf16.mxu1 %v4245_v32  ;;  %v4315_v32 = vcombine.high %v130_v19, %v134_v20  ;;  %v4308_v37 = vcombine.low %v123_v22, %v127_v23  ;;  %v4322_v41 = vcombine.low %v138_v27, %v142_v28  ;;  %v4729_v11 = vld [vmem:[%s7057_s3 + $0x2c] ss:$16 sps:$4 sm:$0xff]   ;;  %v4739_v19 = vld [vmem:[%s7057_s3 + $0x68] ss:$16 sps:$4 sm:$0xff]   ;;  %v4744_v20 = vld [vmem:[%s7057_s3 + $0x84] ss:$16 sps:$4 sm:$0xff]  }
  0x4e   :  { %1042 = vmatpush1.bf16.msra.mxu0 %v4242_v25  ;;  %v4301_v25 = vcombine.high %v115_v14, %v119_v15  ;;  %v4730_v14 = vld [vmem:[%s7057_s3 + $0x40] ss:$16 sps:$4 sm:$0xff]   ;;  %v4735_v15 = vld [vmem:[%s7057_s3 + $0x4c] ss:$16 sps:$4 sm:$0xff]  }
  0x4f   :  { %1043 = vmatprep.subr.bf16.mxu0 %v4251_v31  ;;  %1085 = vmatpush1.bf16.msra.mxu1 %v4244_v36  ;;  %v135_v31 = vld [vmem:[%s7055_s1 + $0x2f8] sm:$0xff]  ;;  %v150_v36 = vld [vmem:[%s7055_s1 + $0x370] sm:$0xff] }
  0x50   :  { %1086 = vmatprep.subr.bf16.mxu1 %v4253_v39  ;;  %v4323_v39 = vcombine.high %v138_v27, %v142_v28  ;;  %v4316_v44 = vcombine.low %v131_v30, %v135_v31  ;;  %v4330_v50 = vcombine.low %v146_v35, %v150_v36  ;;  %v4751_v27 = vld [vmem:[%s7057_s3 + $0xa8] ss:$16 sps:$4 sm:$0xff]   ;;  %v4756_v28 = vld [vmem:[%s7057_s3 + $0xc4] ss:$16 sps:$4 sm:$0xff]  }
  0x52   :  { %1044 = vmatpush1.bf16.msra.mxu0 %v4250_v33  ;;  %v4309_v33 = vcombine.high %v123_v22, %v127_v23  ;;  %v4742_v22 = vld [vmem:[%s7057_s3 + $0x80] ss:$16 sps:$4 sm:$0xff]   ;;  %v4745_v23 = vld [vmem:[%s7057_s3 + $0x88] ss:$16 sps:$4 sm:$0xff]  }
  0x53   :  { %1045 = vmatprep.subr.bf16.mxu0 %v4259_v38  ;;  %1087 = vmatpush1.bf16.msra.mxu1 %v4252_v43  ;;  %v143_v38 = vld [vmem:[%s7055_s1 + $0x338] sm:$0xff]  ;;  %v158_v43 = vld [vmem:[%s7055_s1 + $0x3b0] sm:$0xff] }
  0x54   :  { %1088 = vmatprep.subr.bf16.mxu1 %v4261_v48  ;;  %v4331_v48 = vcombine.high %v146_v35, %v150_v36  ;;  %v4324_v53 = vcombine.low %v139_v46, %v143_v38  ;;  %v4338_v58 = vcombine.low %v154_v42, %v158_v43  ;;  %v4763_v35 = vld [vmem:[%s7057_s3 + $0xe8] ss:$16 sps:$4 sm:$0xff]   ;;  %v4768_v36 = vld [vmem:[%s7057_s3 + $0x104] ss:$16 sps:$4 sm:$0xff]  }
  0x56   :  { %1046 = vmatpush1.bf16.msra.mxu0 %v4258_v40  ;;  %v4317_v40 = vcombine.high %v131_v30, %v135_v31  ;;  %v4754_v30 = vld [vmem:[%s7057_s3 + $0xc0] ss:$16 sps:$4 sm:$0xff]   ;;  %v4757_v31 = vld [vmem:[%s7057_s3 + $0xc8] ss:$16 sps:$4 sm:$0xff]  }
  0x57   :  { %1047 = vmatprep.subr.bf16.mxu0 %v4267_v47  ;;  %1089 = vmatpush1.bf16.msra.mxu1 %v4260_v52  ;;  %v151_v47 = vld [vmem:[%s7055_s1 + $0x378] sm:$0xff]  ;;  %v166_v52 = vld [vmem:[%s7055_s1 + $0x3f0] sm:$0xff] }
  0x58   :  { %1090 = vmatprep.subr.bf16.mxu1 %v4269_v56  ;;  %v4339_v56 = vcombine.high %v154_v42, %v158_v43  ;;  %v4332_v59 = vcombine.low %v147_v45, %v151_v47  ;;  %v4347_v62 = vcombine.high %v162_v51, %v166_v52  ;;  %v4775_v42 = vld [vmem:[%s7057_s3 + $0x128] ss:$16 sps:$4 sm:$0xff]   ;;  %v4780_v43 = vld [vmem:[%s7057_s3 + $0x144] ss:$16 sps:$4 sm:$0xff]  }
  0x5a   :  { %1048 = vmatpush1.bf16.msra.mxu0 %v4266_v49  ;;  %v4325_v49 = vcombine.high %v139_v46, %v143_v38  ;;  %v4766_v46 = vld [vmem:[%s7057_s3 + $0x100] ss:$16 sps:$4 sm:$0xff]   ;;  %v4769_v38 = vld [vmem:[%s7057_s3 + $0x108] ss:$16 sps:$4 sm:$0xff]  }
  0x5b   :  { %1049 = vmatprep.subr.bf16.mxu0 %v4275_v55  ;;  %1091 = vmatpush1.bf16.msra.mxu1 %v4268_v60  ;;  %v159_v55 = vld [vmem:[%s7055_s1 + $0x3b8] sm:$0xff] }
  0x5c   :  { %1092 = vmatprep.subr.bf16.mxu1 %v4277_v0  ;;  %v163_v60 = vld [vmem:[%s7055_s1 + $0x3d8] sm:$0xff]  ;;  %v4720_v0 = vld [vmem:[%s7057_s3 + $0x4] ss:$16 sps:$4 sm:$0xff]   ;;  %v4340_v2 = vcombine.low %v155_v54, %v159_v55 }
  0x5d   :  { %v4349_v3 = vcombine.high %v163_v60, %v167_v61 }
  0x5e   :  { %1050 = vmatpush1.bf16.msra.mxu0 %v4274_v57  ;;  %v4333_v57 = vcombine.high %v147_v45, %v151_v47  ;;  %v4778_v45 = vld [vmem:[%s7057_s3 + $0x140] ss:$16 sps:$4 sm:$0xff]   ;;  %v4781_v47 = vld [vmem:[%s7057_s3 + $0x148] ss:$16 sps:$4 sm:$0xff]  }
  0x5f   :  { %1051 = vmatprep.subr.bf16.mxu0 %v4283_v63  ;;  %1093 = vmatpush1.bf16.msra.mxu1 %v4276_v5  ;;  %v4341_v63 = vcombine.high %v155_v54, %v159_v55  ;;  %v4718_v5 = vld [vmem:[%s7057_s3] ss:$16 sps:$4 sm:$0xff]   ;;  %v4793_v55 = vld [vmem:[%s7057_s3 + $0x188] ss:$16 sps:$4 sm:$0xff]  }
  0x60   :  { %1094 = vmatprep.subr.bf16.mxu1 %v4285_v9  ;;  %v4721_v9 = vld [vmem:[%s7057_s3 + $0x8] ss:$16 sps:$4 sm:$0xff]   ;;  %v4790_v54 = vld [vmem:[%s7057_s3 + $0x180] ss:$16 sps:$4 sm:$0xff]  }
  0x62   :  { %1052 = vmatpush1.bf16.msra.mxu0 %v4282_v1  ;;  %v4346_v1 = vcombine.low %v162_v51, %v166_v52  ;;  %v4787_v51 = vld [vmem:[%s7057_s3 + $0x168] ss:$16 sps:$4 sm:$0xff]   ;;  %v4792_v52 = vld [vmem:[%s7057_s3 + $0x184] ss:$16 sps:$4 sm:$0xff]  }
  0x63   :  { %1053 = vmatprep.subr.bf16.mxu0 %v4291_v8  ;;  %1095 = vmatpush1.bf16.msra.mxu1 %v4284_v13  ;;  %v4348_v8 = vcombine.low %v163_v60, %v167_v61  ;;  %v4727_v13 = vld [vmem:[%s7057_s3 + $0x28] ss:$16 sps:$4 sm:$0xff]   ;;  %v4804_v60 = vld [vmem:[%s7057_s3 + $0x1c4] ss:$16 sps:$4 sm:$0xff]   ;;  %v4807_v61 = vld [vmem:[%s7057_s3 + $0x1cc] ss:$16 sps:$4 sm:$0xff]  }
  0x64   :  { %1096 = vmatprep.subr.bf16.mxu1 %v4293_v17  ;;  %v4741_v17 = vld [vmem:[%s7057_s3 + $0x6c] ss:$16 sps:$4 sm:$0xff]  }
  0x66   :  { %1054 = vmatpush1.bf16.msra.mxu0 %v4290_v10  ;;  %v4724_v10 = vld [vmem:[%s7057_s3 + $0x20] ss:$16 sps:$4 sm:$0xff]  }
  0x67   :  { %1055 = vmatprep.subr.bf16.mxu0 %v4299_v16  ;;  %1097 = vmatpush1.bf16.msra.mxu1 %v4292_v21  ;;  %v4738_v16 = vld [vmem:[%s7057_s3 + $0x64] ss:$16 sps:$4 sm:$0xff]   ;;  %v4747_v21 = vld [vmem:[%s7057_s3 + $0x8c] ss:$16 sps:$4 sm:$0xff]  }
  0x68   :  { %1098 = vmatprep.subr.bf16.mxu1 %v4301_v25  ;;  %v4753_v25 = vld [vmem:[%s7057_s3 + $0xac] ss:$16 sps:$4 sm:$0xff]  }
  0x6a   :  { %1056 = vmatpush1.bf16.msra.mxu0 %v4298_v18  ;;  %v4736_v18 = vld [vmem:[%s7057_s3 + $0x60] ss:$16 sps:$4 sm:$0xff]  }
  0x6b   :  { %1057 = vmatprep.subr.bf16.mxu0 %v4307_v24  ;;  %1099 = vmatpush1.bf16.msra.mxu1 %v4300_v29  ;;  %v4750_v24 = vld [vmem:[%s7057_s3 + $0xa4] ss:$16 sps:$4 sm:$0xff]   ;;  %v4759_v29 = vld [vmem:[%s7057_s3 + $0xcc] ss:$16 sps:$4 sm:$0xff]  }
  0x6c   :  { %1100 = vmatprep.subr.bf16.mxu1 %v4309_v33  ;;  %v4765_v33 = vld [vmem:[%s7057_s3 + $0xec] ss:$16 sps:$4 sm:$0xff]  }
  0x6e   :  { %1058 = vmatpush1.bf16.msra.mxu0 %v4306_v26  ;;  %v4748_v26 = vld [vmem:[%s7057_s3 + $0xa0] ss:$16 sps:$4 sm:$0xff]  }
  0x6f   :  { %1059 = vmatprep.subr.bf16.mxu0 %v4315_v32  ;;  %1101 = vmatpush1.bf16.msra.mxu1 %v4308_v37  ;;  %v4762_v32 = vld [vmem:[%s7057_s3 + $0xe4] ss:$16 sps:$4 sm:$0xff]   ;;  %v4771_v37 = vld [vmem:[%s7057_s3 + $0x10c] ss:$16 sps:$4 sm:$0xff]  }
  0x70   :  { %1102 = vmatprep.subr.bf16.mxu1 %v4317_v40  ;;  %v4777_v40 = vld [vmem:[%s7057_s3 + $0x12c] ss:$16 sps:$4 sm:$0xff]  }
  0x72   :  { %1060 = vmatpush1.bf16.msra.mxu0 %v4314_v34  ;;  %v4760_v34 = vld [vmem:[%s7057_s3 + $0xe0] ss:$16 sps:$4 sm:$0xff]  }
  0x73   :  { %1061 = vmatprep.subr.bf16.mxu0 %v4323_v39  ;;  %1103 = vmatpush1.bf16.msra.mxu1 %v4316_v44  ;;  %v4774_v39 = vld [vmem:[%s7057_s3 + $0x124] ss:$16 sps:$4 sm:$0xff]   ;;  %v4783_v44 = vld [vmem:[%s7057_s3 + $0x14c] ss:$16 sps:$4 sm:$0xff]  }
  0x74   :  { %1104 = vmatprep.subr.bf16.mxu1 %v4325_v49  ;;  %v4789_v49 = vld [vmem:[%s7057_s3 + $0x16c] ss:$16 sps:$4 sm:$0xff]  }
  0x76   :  { %1062 = vmatpush1.bf16.msra.mxu0 %v4322_v41  ;;  %v4772_v41 = vld [vmem:[%s7057_s3 + $0x120] ss:$16 sps:$4 sm:$0xff]  }
  0x77   :  { %1063 = vmatprep.subr.bf16.mxu0 %v4331_v48  ;;  %1105 = vmatpush1.bf16.msra.mxu1 %v4324_v53  ;;  %v4786_v48 = vld [vmem:[%s7057_s3 + $0x164] ss:$16 sps:$4 sm:$0xff]   ;;  %v4795_v53 = vld [vmem:[%s7057_s3 + $0x18c] ss:$16 sps:$4 sm:$0xff]  }
  0x78   :  { %1106 = vmatprep.subr.bf16.mxu1 %v4333_v57  ;;  %v4801_v57 = vld [vmem:[%s7057_s3 + $0x1ac] ss:$16 sps:$4 sm:$0xff]  }
  0x7a   :  { %1064 = vmatpush1.bf16.msra.mxu0 %v4330_v50  ;;  %v4784_v50 = vld [vmem:[%s7057_s3 + $0x160] ss:$16 sps:$4 sm:$0xff]  }
  0x7b   :  { %1065 = vmatprep.subr.bf16.mxu0 %v4339_v56  ;;  %1107 = vmatpush1.bf16.msra.mxu1 %v4332_v59  ;;  %v4798_v56 = vld [vmem:[%s7057_s3 + $0x1a4] ss:$16 sps:$4 sm:$0xff]   ;;  %v4799_v59 = vld [vmem:[%s7057_s3 + $0x1a8] ss:$16 sps:$4 sm:$0xff]  }
  0x7c   :  { %1108 = vmatprep.subr.bf16.mxu1 %v4341_v63  ;;  %v4805_v63 = vld [vmem:[%s7057_s3 + $0x1c8] ss:$16 sps:$4 sm:$0xff]  }
  0x7e   :  { %1066 = vmatpush1.bf16.msra.mxu0 %v4338_v58  ;;  %v4796_v58 = vld [vmem:[%s7057_s3 + $0x1a0] ss:$16 sps:$4 sm:$0xff]  }
  0x7f   :  { %1067 = vmatprep.subr.bf16.mxu0 %v4347_v62  ;;  %1109 = vmatpush1.bf16.msra.mxu1 %v4340_v2  ;;  %v4802_v62 = vld [vmem:[%s7057_s3 + $0x1c0] ss:$16 sps:$4 sm:$0xff]  }
  0x80   :  { %1110 = vmatprep.subr.bf16.mxu1 %v4349_v3  ;;  %v4808_v2 = vld [vmem:[%s7057_s3 + $0x1e0] ss:$16 sps:$4 sm:$0xff]   ;;  %v4811_v3 = vld [vmem:[%s7057_s3 + $0x1e8] ss:$16 sps:$4 sm:$0xff]  }
  0x82   :  { %1068 = vmatpush1.bf16.msra.mxu0 %v4346_v1  ;;  %v4813_v1 = vld [vmem:[%s7057_s3 + $0x1ec] ss:$16 sps:$4 sm:$0xff]  }
  0x83   :  { %3233 = vmatprep.subr.bf16.mxu0 %v4720_v0  ;;  %1111 = vmatpush1.bf16.msra.mxu1 %v4348_v8  ;;  %v4810_v0 = vld [vmem:[%s7057_s3 + $0x1e4] ss:$16 sps:$4 sm:$0xff]  }
  0x84   :  { %3405 = vmatprep.subr.bf16.mxu1 %v4723_v6  ;;  %v4819_v6 = vld [vmem:[%s7057_s3 + $0x20c] ss:$16 sps:$4 sm:$0xff]  }
  0x85   :  { %1070 = vmatmul.mubr.bf16.vlgmr.msra.gmra.mrb[4].mxu0 %v5438_v4 }
  0x86   :  { %3234 = vmatpush1.bf16.msra.mxu0 %v4718_v5  ;;  %1113 = vmatmul.mubr.bf16.vlgmr.msra.gmra.mrb[4].mxu1 %v5438_v4  ;;  %v4733_v4 = vld [vmem:[%s7057_s3 + $0x48] ss:$16 sps:$4 sm:$0xff]   ;;  %v4816_v5 = vld [vmem:[%s7057_s3 + $0x204] ss:$16 sps:$4 sm:$0xff]  }
  0x87   :  { %3235 = vmatprep.subr.bf16.mxu0 %v4726_v7  ;;  %3406 = vmatpush1.bf16.msra.mxu1 %v4721_v9  ;;  %v172_v7 = vlaneseq }
  0x88   :  { %3407 = vmatprep.subr.bf16.mxu1 %v4729_v11 }
  0x89   :  { %v5824_v8 = vshrl.u32 %v172_v7, 7 }
  0x8a   :  { %3236 = vmatpush1.bf16.msra.mxu0 %v4724_v10  ;;  %v5832_v10 = vld [vmem:[%s7058_s2 + $0x1] ss:$2 sm:$0xff] }
  0x8b   :  { %3237 = vmatprep.subr.bf16.mxu0 %v4732_v12  ;;  %3408 = vmatpush1.bf16.msra.mxu1 %v4727_v13  ;;  %v5827_v9 = vsub.s32 0, %v5824_v8  ;;  %v5835_v11 = vsub.s32 1, %v5824_v8  ;;  %v5840_v12 = vld [vmem:[%s7058_s2] ss:$2 sm:$0xff] }
  0x8c   :  { %3409 = vmatprep.subr.bf16.mxu1 %v4735_v15  ;;  %v5847_v15 = vsub.s32 2, %v5824_v8 }
  0x8d   :  { %v232_v13 = vrot.slane %v5832_v10, %v5827_v9 }
  0x8e   :  { %3238 = vmatpush1.bf16.msra.mxu0 %v4730_v14  ;;  %v236_v14 = vrot.slane %v5832_v10, %v5835_v11 }
  0x8f   :  { %3410 = vmatpush1.bf16.msra.mxu1 %v4733_v4  ;;  %3239 = vmatprep.subr.bf16.mxu0 %v4738_v16  ;;  %v5850_v4 = vsub.s32 3, %v5824_v8  ;;  %v175_v16 = vrot.slane %v5840_v12, %v5827_v9 }
  0x90   :  { %3411 = vmatprep.subr.bf16.mxu1 %v4741_v17  ;;  %v190_v17 = vsub.s32 4, %v5824_v8 }
  0x92   :  { %3240 = vmatpush1.bf16.msra.mxu0 %v4736_v18  ;;  %v179_v18 = vrot.slane %v5840_v12, %v5835_v11 }
  0x93   :  { %3412 = vmatpush1.bf16.msra.mxu1 %v4739_v19  ;;  %3241 = vmatprep.subr.bf16.mxu0 %v4744_v20  ;;  %v269_v19 = vmul.f32 0.0, %v232_v13  ;;  %v270_v20 = vmul.f32 0.0, %v236_v14 }
  0x94   :  { %3413 = vmatprep.subr.bf16.mxu1 %v4747_v21  ;;  %v183_v21 = vrot.slane %v5840_v12, %v5847_v15 }
  0x96   :  { %3242 = vmatpush1.bf16.msra.mxu0 %v4742_v22  ;;  %v240_v22 = vrot.slane %v5832_v10, %v5847_v15 }
  0x97   :  { %3414 = vmatpush1.bf16.msra.mxu1 %v4745_v23  ;;  %3243 = vmatprep.subr.bf16.mxu0 %v4750_v24  ;;  %v244_v23 = vrot.slane %v5832_v10, %v5850_v4  ;;  %v220_v24 = vmul.f32 0.0, %v175_v16 }
  0x98   :  { %3415 = vmatprep.subr.bf16.mxu1 %v4753_v25  ;;  %v187_v25 = vrot.slane %v5840_v12, %v5850_v4 }
  0x9a   :  { %3244 = vmatpush1.bf16.msra.mxu0 %v4748_v26  ;;  %v248_v26 = vrot.slane %v5832_v10, %v190_v17 }
  0x9b   :  { %3416 = vmatpush1.bf16.msra.mxu1 %v4751_v27  ;;  %3245 = vmatprep.subr.bf16.mxu0 %v4756_v28  ;;  %v221_v27 = vmul.f32 0.0, %v179_v18  ;;  %v191_v28 = vrot.slane %v5840_v12, %v190_v17 }
  0x9c   :  { %3417 = vmatprep.subr.bf16.mxu1 %v4759_v29  ;;  %v194_v29 = vsub.s32 5, %v5824_v8 }
  0x9e   :  { %3246 = vmatpush1.bf16.msra.mxu0 %v4754_v30  ;;  %v285_v30 = vadd.f32 %v269_v19, %v175_v16 }
  0x9f   :  { %3418 = vmatpush1.bf16.msra.mxu1 %v4757_v31  ;;  %3247 = vmatprep.subr.bf16.mxu0 %v4762_v32  ;;  %v286_v31 = vadd.f32 %v270_v20, %v179_v18  ;;  %v271_v32 = vmul.f32 0.0, %v240_v22 }
  0xa0   :  { %3419 = vmatprep.subr.bf16.mxu1 %v4765_v33  ;;  %v272_v33 = vmul.f32 0.0, %v244_v23 }
  0xa2   :  { %3248 = vmatpush1.bf16.msra.mxu0 %v4760_v34  ;;  %v222_v34 = vmul.f32 0.0, %v183_v21 }
  0xa3   :  { %3420 = vmatpush1.bf16.msra.mxu1 %v4763_v35  ;;  %3249 = vmatprep.subr.bf16.mxu0 %v4768_v36  ;;  %v293_v35 = vadd.f32 %v232_v13, %v220_v24  ;;  %v223_v36 = vmul.f32 0.0, %v187_v25 }
  0xa4   :  { %3421 = vmatprep.subr.bf16.mxu1 %v4771_v37  ;;  %v273_v37 = vmul.f32 0.0, %v248_v26 }
  0xa6   :  { %3250 = vmatpush1.bf16.msra.mxu0 %v4766_v46 }
  0xa7   :  { %3422 = vmatpush1.bf16.msra.mxu1 %v4769_v38  ;;  %3251 = vmatprep.subr.bf16.mxu0 %v4774_v39  ;;  %v294_v38 = vadd.f32 %v236_v14, %v221_v27  ;;  %v5869_v39 = vrot.slane %v5832_v10, %v194_v29 }
  0xa8   :  { %3423 = vmatprep.subr.bf16.mxu1 %v4777_v40  ;;  %v224_v40 = vmul.f32 0.0, %v191_v28 }
  0xaa   :  { %3252 = vmatpush1.bf16.msra.mxu0 %v4772_v41 }
  0xab   :  { %3424 = vmatpush1.bf16.msra.mxu1 %v4775_v42  ;;  %3253 = vmatprep.subr.bf16.mxu0 %v4780_v43  ;;  %v195_v43 = vrot.slane %v5840_v12, %v194_v29 }
  0xac   :  { %3425 = vmatprep.subr.bf16.mxu1 %v4783_v44 }
  0xae   :  { %3254 = vmatpush1.bf16.msra.mxu0 %v4778_v45 }
  0xaf   :  { %3426 = vmatpush1.bf16.msra.mxu1 %v4781_v47  ;;  %3255 = vmatprep.subr.bf16.mxu0 %v4786_v48  ;;  %v287_v47 = vadd.f32 %v271_v32, %v183_v21  ;;  %v288_v48 = vadd.f32 %v272_v33, %v187_v25 }
  0xb0   :  { %3427 = vmatprep.subr.bf16.mxu1 %v4789_v49  ;;  %v5872_v49 = vadd.f32 %v240_v22, %v222_v34 }
  0xb2   :  { %3256 = vmatpush1.bf16.msra.mxu0 %v4784_v50 }
  0xb3   :  { %3428 = vmatpush1.bf16.msra.mxu1 %v4787_v51  ;;  %3257 = vmatprep.subr.bf16.mxu0 %v4792_v52 }
  0xb4   :  { %3429 = vmatprep.subr.bf16.mxu1 %v4795_v53  ;;  %v5876_v53 = vadd.f32 %v244_v23, %v223_v36 }
  0xb6   :  { %3258 = vmatpush1.bf16.msra.mxu0 %v4790_v54  ;;  %v5878_v54 = vadd.f32 %v273_v37, %v191_v28 }
  0xb7   :  { %3430 = vmatpush1.bf16.msra.mxu1 %v4793_v55  ;;  %3259 = vmatprep.subr.bf16.mxu0 %v4798_v56 }
  0xb8   :  { %3431 = vmatprep.subr.bf16.mxu1 %v4801_v57 }
  0xba   :  { %3260 = vmatpush1.bf16.msra.mxu0 %v4796_v58  ;;  %v274_v58 = vmul.f32 0.0, %v5869_v39 }
  0xbb   :  { %3432 = vmatpush1.bf16.msra.mxu1 %v4799_v59  ;;  %3261 = vmatprep.subr.bf16.mxu0 %v4804_v60  ;;  %v5883_v59 = vadd.f32 %v248_v26, %v224_v40 }
  0xbc   :  { %3433 = vmatprep.subr.bf16.mxu1 %v4807_v61 }
  0xbe   :  { %3262 = vmatpush1.bf16.msra.mxu0 %v4802_v62 }
  0xbf   :  { %3434 = vmatpush1.bf16.msra.mxu1 %v4805_v63  ;;  %3263 = vmatprep.subr.bf16.mxu0 %v4810_v0  ;;  %v225_v0 = vmul.f32 0.0, %v195_v43 }
  0xc0   :  { %3435 = vmatprep.subr.bf16.mxu1 %v4813_v1 }
  0xc2   :  { %3264 = vmatpush1.bf16.msra.mxu0 %v4808_v2 }
  0xc3   :  { %3436 = vmatpush1.bf16.msra.mxu1 %v4811_v3  ;;  %3276 = vmatprep.subr.bf16.mxu0 %v4816_v5 }
  0xc4   :  { %3448 = vmatprep.subr.bf16.mxu1 %v4819_v6 }
 0x118   :  { %v985_v46 = vpop.f32.mrb[0].mxu0  ;;  %v1028_v57 = vpop.f32.mrb[0].mxu1 }
 0x119   :  { %v986_v41 = vadd.f32 %v985_v46, %v285_v30  ;;  %v987_v42 = vpop.f32.mrb[1].mxu0  ;;  %v1030_v63 = vpop.f32.mrb[1].mxu1  ;;  %v1029_v5 = vadd.f32 %v1028_v57, %v287_v47  ;;  %v5909_v47 = vadd.f32 %v274_v58, %v195_v43 }
 0x11a   :  { %v988_v44 = vadd.f32 %v987_v42, %v286_v31  ;;  %v989_v45 = vpop.f32.mrb[2].mxu0  ;;  %v1032_v6 = vpop.f32.mrb[2].mxu1  ;;  %v1031_v37 = vadd.f32 %v1030_v63, %v288_v48 }
 0x11b   :  { %v5874_v50 = vmax.f32 %v986_v41, 0.0  ;;  %v990_v51 = vadd.f32 %v989_v45, %v293_v35  ;;  %v991_v52 = vpop.f32.mrb[3].mxu0  ;;  %v1034_v17 = vpop.f32.mrb[3].mxu1 }
 0x11c   :  { %v5880_v55 = vmax.f32 %v988_v44, 0.0  ;;  %v992_v56 = vadd.f32 %v991_v52, %v294_v38 }
 0x11d   :  { %v1155_v60 = vmul.f32 0.0, %v5874_v50  ;;  %v1299_v61 = vmul.f32 %v5874_v50, %v5874_v50  ;;  %v5888_v62 = vmax.f32 %v990_v51, 0.0 }
 0x11e   :  { %v1156_v1 = vmul.f32 0.0, %v5880_v55  ;;  %v1300_v2 = vmul.f32 %v5880_v55, %v5880_v55  ;;  %v5893_v3 = vmax.f32 %v992_v56, 0.0 }
 0x11f   :  { %v1379_v7 = vmul.f32 %v1155_v60, %v5874_v50  ;;  %v1147_v13 = vmul.f32 0.0, %v5888_v62  ;;  %v1235_v14 = vadd.f32 %v1155_v60, %v5888_v62  ;;  %v1387_v16 = vmul.f32 %v5888_v62, %v5888_v62 }
 0x120   :  { %v1380_v18 = vmul.f32 %v1156_v1, %v5880_v55  ;;  %v1148_v19 = vmul.f32 0.0, %v5893_v3  ;;  %v1242_v20 = vadd.f32 %v1156_v1, %v5893_v3  ;;  %v1388_v21 = vmul.f32 %v5893_v3, %v5893_v3 }
 0x121   :  { %v1171_v22 = vadd.f32 %v1147_v13, %v5874_v50  ;;  %v1236_v23 = vrot.slane %v1235_v14, 4  ;;  %v1307_v24 = vmul.f32 %v1147_v13, %v5888_v62  ;;  %v1395_v25 = vadd.f32 %v1387_v16, %v1379_v7 }
 0x122   :  { %v1178_v26 = vadd.f32 %v1148_v19, %v5880_v55  ;;  %v1243_v27 = vrot.slane %v1242_v20, 4  ;;  %v1308_v28 = vmul.f32 %v1148_v19, %v5893_v3  ;;  %v1402_v29 = vadd.f32 %v1388_v21, %v1380_v18 }
 0x123   :  { %v1172_v30 = vrot.slane %v1171_v22, 4  ;;  %v1237_v31 = vadd.f32 %v1236_v23, %v1235_v14  ;;  %v1315_v32 = vadd.f32 %v1307_v24, %v1299_v61  ;;  %v1396_v33 = vrot.slane %v1395_v25, 4 }
 0x124   :  { %v1179_v34 = vrot.slane %v1178_v26, 4  ;;  %v1322_v35 = vadd.f32 %v1308_v28, %v1300_v2  ;;  %v1403_v36 = vrot.slane %v1402_v29, 4  ;;  %v1244_v42 = vadd.f32 %v1243_v27, %v1242_v20 }
 0x125   :  { %v1173_v46 = vadd.f32 %v1172_v30, %v1171_v22  ;;  %v1238_v38 = vrot.slane %v1237_v31, 2  ;;  %v1316_v40 = vrot.slane %v1315_v32, 4  ;;  %v1397_v41 = vadd.f32 %v1396_v33, %v1395_v25 }
 0x126   :  { %v1323_v44 = vrot.slane %v1322_v35, 4  ;;  %v1404_v45 = vadd.f32 %v1403_v36, %v1402_v29  ;;  %v5913_v1 = vmax.f32 %v1029_v5, 0.0  ;;  %v5915_v2 = vmax.f32 %v1031_v37, 0.0 }
 0x127   :  { %v1174_v51 = vrot.slane %v1173_v46, 2  ;;  %v5911_v52 = vadd.f32 %v1238_v38, %v1237_v31  ;;  %v1317_v56 = vadd.f32 %v1316_v40, %v1315_v32  ;;  %v1398_v57 = vrot.slane %v1397_v41, 2 }
 0x128   :  { %v1324_v60 = vadd.f32 %v1323_v44, %v1322_v35  ;;  %v1405_v61 = vrot.slane %v1404_v45, 2  ;;  %v5917_v7 = vadd.f32 %v1179_v34, %v1178_v26  ;;  %v5920_v13 = vadd.f32 %v5869_v39, %v225_v0 }
 0x129   :  { %v1318_v48 = vrot.slane %v1317_v56, 2  ;;  %v1399_v63 = vadd.f32 %v1398_v57, %v1397_v41  ;;  %v1245_v43 = vrot.slane %v1244_v42, 2  ;;  %v1157_v16 = vmul.f32 0.0, %v5913_v1 }
 0x12a   :  { %v1325_v58 = vrot.slane %v1324_v60, 2  ;;  %v1406_v14 = vadd.f32 %v1405_v61, %v1404_v45  ;;  %v5923_v18 = vadd.f32 %v1174_v51, %v1173_v46  ;;  %v1158_v5 = vmul.f32 0.0, %v5915_v2 }
 0x12b   :  { %v1319_v19 = vadd.f32 %v1318_v48, %v1317_v56  ;;  %v1400_v20 = vrot.slane %v1399_v63, 1  ;;  %v1240_v21 = vrot.slane %v5911_v52, 1  ;;  %v1033_v24 = vadd.f32 %v1032_v6, %v5872_v49 }
 0x12c   :  { %v1326_v22 = vadd.f32 %v1325_v58, %v1324_v60  ;;  %v1407_v23 = vrot.slane %v1406_v14, 1  ;;  %v1301_v0 = vmul.f32 %v5913_v1, %v5913_v1  ;;  %v1035_v26 = vadd.f32 %v1034_v17, %v5876_v53 }
 0x12d   :  { %v1320_v25 = vrot.slane %v1319_v19, 1  ;;  %v1401_v39 = vadd.f32 %v1400_v20, %v1399_v63  ;;  %v1381_v28 = vmul.f32 %v1157_v16, %v5913_v1  ;;  %v1302_v29 = vmul.f32 %v5915_v2, %v5915_v2 }
 0x12e   :  { %v1327_v27 = vrot.slane %v1326_v22, 1  ;;  %v5934_v30 = vmax.f32 %v1033_v24, 0.0  ;;  %v1408_v31 = vadd.f32 %v1407_v23, %v1406_v14  ;;  %v1382_v32 = vmul.f32 %v1158_v5, %v5915_v2 }
 0x12f   :  { %v5937_v33 = vmax.f32 %v1035_v26, 0.0  ;;  %v1181_v49 = vrot.slane %v5917_v7, 2  ;;  %v1321_v6 = vadd.f32 %v1320_v25, %v1319_v19  ;;  %v5940_v34 = vmul.f32 0.125, %v1401_v39 }
 0x130   :  { %v1149_v53 = vmul.f32 0.0, %v5934_v30  ;;  %v1249_v17 = vadd.f32 %v1157_v16, %v5934_v30  ;;  %v1389_v35 = vmul.f32 %v5934_v30, %v5934_v30  ;;  %v1246_v46 = vadd.f32 %v1245_v43, %v1244_v42 }
 0x131   :  { %v1150_v36 = vmul.f32 0.0, %v5937_v33  ;;  %v1256_v37 = vadd.f32 %v1158_v5, %v5937_v33  ;;  %v1328_v38 = vadd.f32 %v1327_v27, %v1326_v22  ;;  %v1390_v63 = vmul.f32 %v5937_v33, %v5937_v33 }
 0x132   :  { %v1185_v40 = vadd.f32 %v1149_v53, %v5913_v1  ;;  %v1250_v41 = vrot.slane %v1249_v17, 4  ;;  %v1309_v44 = vmul.f32 %v1149_v53, %v5934_v30  ;;  %v1409_v45 = vadd.f32 %v1389_v35, %v1381_v28 }
 0x133   :  { %v1192_v51 = vadd.f32 %v1150_v36, %v5915_v2  ;;  %v1257_v56 = vrot.slane %v1256_v37, 4  ;;  %v1310_v57 = vmul.f32 %v1150_v36, %v5937_v33  ;;  %v1452_v58 = vmul.f32 0.125, %v1408_v31 }
 0x134   :  { %v1186_v60 = vrot.slane %v1185_v40, 4  ;;  %v1251_v61 = vadd.f32 %v1250_v41, %v1249_v17  ;;  %v1329_v48 = vadd.f32 %v1309_v44, %v1301_v0  ;;  %v1410_v42 = vrot.slane %v1409_v45, 4 }
 0x135   :  { %v1193_v43 = vrot.slane %v1192_v51, 4  ;;  %v1336_v14 = vadd.f32 %v1310_v57, %v1302_v29  ;;  %v1416_v5 = vadd.f32 %v1390_v63, %v1382_v32  ;;  %v5954_v22 = vmul.f32 0.125, %v1321_v6 }
 0x136   :  { %v1187_v16 = vadd.f32 %v1186_v60, %v1185_v40  ;;  %v1252_v19 = vrot.slane %v1251_v61, 2  ;;  %v1330_v20 = vrot.slane %v1329_v48, 4  ;;  %v1372_v23 = vmul.f32 0.125, %v1328_v38 }
 0x137   :  { %v1411_v24 = vadd.f32 %v1410_v42, %v1409_v45  ;;  %v1337_v25 = vrot.slane %v1336_v14, 4  ;;  %v5956_v26 = vadd.f32 %v1193_v43, %v1192_v51  ;;  %v5958_v0 = vadd.f32 %v1257_v56, %v1256_v37 }
 0x138   :  { %v1331_v39 = vadd.f32 %v1330_v20, %v1329_v48  ;;  %v1417_v27 = vrot.slane %v1416_v5, 4  ;;  %v1182_v53 = vadd.f32 %v1181_v49, %v5917_v7  ;;  %v1247_v29 = vrot.slane %v1246_v46, 1 }
 0x139   :  { %v1412_v28 = vrot.slane %v1411_v24, 2  ;;  %v1338_v31 = vadd.f32 %v1337_v25, %v1336_v14  ;;  %v1188_v17 = vrot.slane %v1187_v16, 2  ;;  %v5961_v35 = vadd.f32 %v1252_v19, %v1251_v61 }
 0x13a   :  { %v1332_v32 = vrot.slane %v1331_v39, 2  ;;  %v1418_v6 = vadd.f32 %v1417_v27, %v1416_v5  ;;  %v1183_v40 = vrot.slane %v1182_v53, 1  ;;  %v1248_v41 = vadd.f32 %v1247_v29, %v1246_v46 }
 0x13b   :  { %v1413_v36 = vadd.f32 %v1412_v28, %v1411_v24  ;;  %v1339_v38 = vrot.slane %v1338_v31, 2  ;;  %v1176_v37 = vrot.slane %v5923_v18, 1  ;;  %v1241_v51 = vadd.f32 %v1240_v21, %v5911_v52 }
 0x13c   :  { %v1333_v44 = vadd.f32 %v1332_v32, %v1331_v39  ;;  %v1419_v45 = vrot.slane %v1418_v6, 2  ;;  %v1184_v49 = vadd.f32 %v1183_v40, %v1182_v53  ;;  %v1292_v57 = vmul.f32 0.125, %v1248_v41 }
 0x13d   :  { %v1414_v56 = vrot.slane %v1413_v36, 1  ;;  %v1340_v7 = vadd.f32 %v1339_v38, %v1338_v31  ;;  %v1259_v61 = vrot.slane %v5958_v0, 2  ;;  %v1177_v63 = vadd.f32 %v1176_v37, %v5923_v18 }
 0x13e   :  { %v1334_v60 = vrot.slane %v1333_v44, 1  ;;  %v1420_v48 = vadd.f32 %v1419_v45, %v1418_v6  ;;  %v1228_v43 = vmul.f32 0.125, %v1184_v49  ;;  %v1500_v14 = vmul.f32 %v1292_v57, %v1292_v57 }
 0x13f   :  { %v1415_v42 = vadd.f32 %v1414_v56, %v1413_v36  ;;  %v1341_v46 = vrot.slane %v1340_v7, 1  ;;  %v1556_v20 = vmul.f32 0.0, %v1292_v57  ;;  %v1227_v5 = vmul.f32 0.125, %v1177_v63 }
 0x140   :  { %v1421_v19 = vrot.slane %v1420_v48, 1  ;;  %v1291_v24 = vmul.f32 0.125, %v1241_v51  ;;  %v1189_v25 = vadd.f32 %v1188_v17, %v1187_v16  ;;  %v1254_v52 = vrot.slane %v5961_v35, 1 }
 0x141   :  { %v1460_v21 = vmul.f32 %v1228_v43, %v1228_v43  ;;  %v1508_v39 = vsub.f32 %v1452_v58, %v1500_v14  ;;  %v1335_v27 = vadd.f32 %v1334_v60, %v1333_v44  ;;  %v5970_v28 = vmul.f32 0.125, %v1415_v42 }
 0x142   :  { %v1548_v31 = vmul.f32 0.0, %v1228_v43  ;;  %v5972_v53 = vadd.f32 %v1556_v20, %v1228_v43  ;;  %v1342_v18 = vadd.f32 %v1341_v46, %v1340_v7  ;;  %v1459_v6 = vmul.f32 %v1227_v5, %v1227_v5 }
 0x143   :  { %v1468_v29 = vsub.f32 %v1372_v23, %v1460_v21  ;;  %v1516_v32 = vmax.f32 %v1508_v39, 0.0  ;;  %v1422_v36 = vadd.f32 %v1421_v19, %v1420_v48  ;;  %v1499_v17 = vmul.f32 %v1291_v24, %v1291_v24 }
 0x144   :  { %v5974_v38 = vadd.f32 %v1548_v31, %v1292_v57  ;;  %v1588_v16 = vsub.f32 %v5880_v55, %v5972_v53  ;;  %v1467_v58 = vsub.f32 %v5954_v22, %v1459_v6  ;;  %v1547_v44 = vmul.f32 0.0, %v1227_v5 }
 0x145   :  { %v1476_v40 = vmax.f32 %v1468_v29, 0.0  ;;  %v1524_v41 = vadd.f32 1e-05, %v1516_v32  ;;  %v1507_v37 = vsub.f32 %v5940_v34, %v1499_v17  ;;  %v1555_v23 = vmul.f32 0.0, %v1291_v24 }
 0x146   :  { %v1596_v45 = vsub.f32 %v5893_v3, %v5974_v38  ;;  %v1195_v51 = vrot.slane %v5956_v26, 2  ;;  %v1475_v7 = vmax.f32 %v1467_v58, 0.0  ;;  %v5983_v49 = vadd.f32 %v1547_v44, %v1291_v24 }
 0x147   :  { %v1484_v56 = vadd.f32 1e-05, %v1476_v40  ;;  %5134 = vrsqrt.f32 %v1524_v41  ;;  %v1515_v57 = vmax.f32 %v1507_v37, 0.0  ;;  %v5985_v60 = vadd.f32 %v1555_v23, %v1227_v5 }
 0x148   :  { %v1196_v48 = vadd.f32 %v1195_v51, %v5956_v26  ;;  %v1260_v22 = vadd.f32 %v1259_v61, %v5958_v0  ;;  %v1483_v63 = vadd.f32 1e-05, %v1475_v7  ;;  %v1595_v34 = vsub.f32 %v5888_v62, %v5983_v49 }
 0x149   :  { %5136 = vrsqrt.f32 %v1484_v56  ;;  %v1190_v42 = vrot.slane %v1189_v25, 1  ;;  %v1523_v46 = vadd.f32 1e-05, %v1515_v57  ;;  %v1587_v43 = vsub.f32 %v5874_v50, %v5985_v60 }
 0x14a   :  { %v1197_v14 = vrot.slane %v1196_v48, 1  ;;  %v1261_v19 = vrot.slane %v1260_v22, 1  ;;  %5138 = vrsqrt.f32 %v1483_v63  ;;  %v1255_v5 = vadd.f32 %v1254_v52, %v5961_v35 }
 0x14b   :  { %v1191_v20 = vadd.f32 %v1190_v42, %v1189_v25  ;;  %v198_v26 = vsub.s32 6, %v5824_v8  ;;  %v1373_v24 = vmul.f32 0.125, %v1335_v27  ;;  %5140 = vrsqrt.f32 %v1523_v46 }
 0x14c   :  { %v1198_v0 = vadd.f32 %v1197_v14, %v1196_v48  ;;  %v1262_v61 = vadd.f32 %v1261_v19, %v1260_v22  ;;  %v1374_v21 = vmul.f32 0.125, %v1342_v18  ;;  %v1454_v39 = vmul.f32 0.125, %v1422_v36 }
 0x14d   :  { %v1229_v31 = vmul.f32 0.125, %v1191_v20  ;;  %v1293_v29 = vmul.f32 0.125, %v1255_v5  ;;  %v5996_v17 = vrot.slane %v5840_v12, %v198_v26  ;;  %v202_v40 = vsub.s32 7, %v5824_v8 }
 0x14e   :  { %v1230_v32 = vmul.f32 0.125, %v1198_v0  ;;  %v1294_v6 = vmul.f32 0.125, %v1262_v61 }
 0x14f   :  { %v1461_v25 = vmul.f32 %v1229_v31, %v1229_v31  ;;  %v1501_v41 = vmul.f32 %v1293_v29, %v1293_v29  ;;  %v1549_v35 = vmul.f32 0.0, %v1229_v31  ;;  %v1557_v52 = vmul.f32 0.0, %v1293_v29 }
 0x150   :  { %v1462_v58 = vmul.f32 %v1230_v32, %v1230_v32  ;;  %v1502_v27 = vmul.f32 %v1294_v6, %v1294_v6  ;;  %v1550_v44 = vmul.f32 0.0, %v1230_v32  ;;  %v1558_v37 = vmul.f32 0.0, %v1294_v6 }
 0x151   :  { %v5135_v23 = vpop.eup %5134  ;;  %v1469_v18 = vsub.f32 %v1373_v24, %v1461_v25  ;;  %v1509_v36 = vsub.f32 %v5970_v28, %v1501_v41  ;;  %v6000_v51 = vadd.f32 %v1557_v52, %v1229_v31  ;;  %v6002_v56 = vadd.f32 %v1549_v35, %v1293_v29 }
 0x152   :  { %v1620_v7 = vmul.f32 0.0, %v5135_v23  ;;  %v1470_v57 = vsub.f32 %v1374_v21, %v1462_v58  ;;  %v1510_v48 = vsub.f32 %v1454_v39, %v1502_v27  ;;  %v6004_v8 = vadd.f32 %v1558_v37, %v1230_v32 }
 0x153   :  { %v5137_v22 = vpop.eup %5136  ;;  %v6006_v63 = vadd.f32 %v1550_v44, %v1294_v6  ;;  %v1477_v42 = vmax.f32 %v1469_v18, 0.0  ;;  %v1517_v46 = vmax.f32 %v1509_v36, 0.0  ;;  %v1589_v14 = vsub.f32 %v5913_v1, %v6000_v51  ;;  %v4852_v1 = vld [vmem:[%s7057_s3 + $0x2c4] ss:$16 sps:$4 sm:$0xff]   ;;  %v4855_v51 = vld [vmem:[%s7057_s3 + $0x2cc] ss:$16 sps:$4 sm:$0xff]  }
 0x154   :  { %v1612_v19 = vmul.f32 0.0, %v5137_v22  ;;  %v1636_v20 = vadd.f32 %v5137_v22, %v1620_v7  ;;  %v1478_v28 = vmax.f32 %v1470_v57, 0.0  ;;  %v1518_v5 = vmax.f32 %v1510_v48, 0.0  ;;  %v5139_v24 = vpop.eup %5138 }
 0x155   :  { %v1590_v0 = vsub.f32 %v5915_v2, %v6004_v8  ;;  %v1598_v61 = vsub.f32 %v5937_v33, %v6006_v63  ;;  %v6015_v21 = vrot.slane %v5832_v10, %v198_v26  ;;  %v6018_v39 = vrot.slane %v5832_v10, %v202_v40  ;;  %v5141_v31 = vpop.eup %5140 }
 0x156   :  { %v1644_v29 = vadd.f32 %v5135_v23, %v1612_v19  ;;  %v1652_v32 = vmul.f32 %v1636_v20, %v1588_v16  ;;  %v1611_v6 = vmul.f32 0.0, %v5139_v24  ;;  %v1486_v25 = vadd.f32 1e-05, %v1478_v28 }
 0x157   :  { %v1619_v41 = vmul.f32 0.0, %v5141_v31  ;;  %v1526_v35 = vadd.f32 1e-05, %v1518_v5  ;;  %v1485_v52 = vadd.f32 1e-05, %v1477_v42  ;;  %v1597_v58 = vsub.f32 %v5934_v30, %v6002_v56 }
 0x158   :  { %v1660_v26 = vmul.f32 %v1644_v29, %v1596_v45  ;;  %v1643_v10 = vadd.f32 %v5141_v31, %v1611_v6  ;;  %5142 = vrsqrt.f32 %v1486_v25  ;;  %v1071_v27 = vpop.f32.mrb[4].mxu0  ;;  %v1525_v44 = vadd.f32 1e-05, %v1517_v46  ;;  %v4814_v45 = vld [vmem:[%s7057_s3 + $0x200] ss:$16 sps:$4 sm:$0xff]  }
 0x159   :  { %v1635_v37 = vadd.f32 %v5139_v24, %v1619_v41  ;;  %5144 = vrsqrt.f32 %v1526_v35  ;;  %v1072_v55 = vadd.f32 %v1071_v27, %v5878_v54  ;;  %v1073_v53 = vpop.f32.mrb[5].mxu0  ;;  %v275_v16 = vmul.f32 0.0, %v6015_v21  ;;  %v4817_v54 = vld [vmem:[%s7057_s3 + $0x208] ss:$16 sps:$4 sm:$0xff]   ;;  %v6055_v57 = vpop.f32.mrb[4].mxu1 }
 0x15a   :  { %v1668_v23 = vpack.c.bf16 %v1660_v26, %v1652_v32  ;;  %v1659_v18 = vmul.f32 %v1643_v10, %v1595_v34  ;;  %v1074_v36 = vadd.f32 %v1073_v53, %v5909_v47  ;;  %v1075_v3 = vpop.f32.mrb[6].mxu0  ;;  %v6035_v38 = vrot.slane %v5840_v12, %v202_v40  ;;  %v4822_v12 = vld [vmem:[%s7057_s3 + $0x224] ss:$16 sps:$4 sm:$0xff]   ;;  %v6067_v42 = vpop.f32.mrb[5].mxu1  ;;  %v4820_v6 = vld [vmem:[%s7057_s3 + $0x220] ss:$16 sps:$4 sm:$0xff]  }
 0x15b   :  { %v1651_v7 = vmul.f32 %v1635_v37, %v1587_v43  ;;  %v6046_v62 = vmax.f32 %v1072_v55, 0.0  ;;  %v1076_v47 = vadd.f32 %v1075_v3, %v5883_v59  ;;  %v1077_v49 = vpop.f32.mrb[7].mxu0  ;;  %5146 = vrsqrt.f32 %v1485_v52  ;;  %v4825_v59 = vld [vmem:[%s7057_s3 + $0x22c] ss:$16 sps:$4 sm:$0xff]   ;;  %v6078_v28 = vpop.f32.mrb[6].mxu1 }
 0x15c   :  { %3265 = vmatprep.mubr.bf16.mxu0 %v1668_v23  ;;  %3437 = vmatprep.mubr.bf16.mxu1 %v1668_v23  ;;  %v6052_v34 = vmax.f32 %v1074_v36, 0.0  ;;  %v1078_v40 = vadd.f32 %v1077_v49, %v5920_v13  ;;  %5148 = vrsqrt.f32 %v1525_v44  ;;  %v6058_v50 = vmul.f32 0.0, %v6018_v39  ;;  %v6085_v32 = vpop.f32.mrb[7].mxu1  ;;  %v4823_v25 = vld [vmem:[%s7057_s3 + $0x228] ss:$16 sps:$4 sm:$0xff]  }
 0x15d   :  { %v1667_v60 = vpack.c.bf16 %v1659_v18, %v1651_v7  ;;  %v1159_v43 = vmul.f32 0.0, %v6046_v62  ;;  %v6064_v48 = vmax.f32 %v1076_v47, 0.0  ;;  %v291_v22 = vadd.f32 %v275_v16, %v5996_v17  ;;  %v4828_v10 = vld [vmem:[%s7057_s3 + $0x244] ss:$16 sps:$4 sm:$0xff]   ;;  %v4831_v27 = vld [vmem:[%s7057_s3 + $0x24c] ss:$16 sps:$4 sm:$0xff]  }
 0x15e   :  { %v1303_v13 = vmul.f32 %v6046_v62, %v6046_v62  ;;  %v1160_v46 = vmul.f32 0.0, %v6052_v34  ;;  %v6074_v19 = vmul.f32 %v6052_v34, %v6052_v34  ;;  %v6076_v20 = vmax.f32 %v1078_v40, 0.0  ;;  %v4829_v40 = vld [vmem:[%s7057_s3 + $0x248] ss:$16 sps:$4 sm:$0xff]   ;;  %v4844_v30 = vld [vmem:[%s7057_s3 + $0x2a0] ss:$16 sps:$4 sm:$0xff]  }
 0x15f   :  { %3266 = vmatmul.mubr.bf16.vlgmr.msra.gmra.mrb[8].mxu0 %v1667_v60  ;;  %3438 = vmatmul.mubr.bf16.vlgmr.msra.gmra.mrb[8].mxu1 %v1667_v60  ;;  %v1383_v5 = vmul.f32 %v1159_v43, %v6046_v62  ;;  %v1151_v24 = vmul.f32 0.0, %v6064_v48  ;;  %v1263_v31 = vadd.f32 %v1159_v43, %v6064_v48  ;;  %v1391_v29 = vmul.f32 %v6064_v48, %v6064_v48  ;;  %v4847_v56 = vld [vmem:[%s7057_s3 + $0x2a8] ss:$16 sps:$4 sm:$0xff]  }
 0x160   :  { %3277 = vmatpush1.bf16.msra.mxu0 %v4814_v45  ;;  %3449 = vmatpush1.bf16.msra.mxu1 %v4817_v54  ;;  %v1384_v41 = vmul.f32 %v1160_v46, %v6052_v34  ;;  %v1152_v35 = vmul.f32 0.0, %v6076_v20  ;;  %v1270_v52 = vadd.f32 %v1160_v46, %v6076_v20  ;;  %v1392_v26 = vmul.f32 %v6076_v20, %v6076_v20  ;;  %v4826_v54 = vld [vmem:[%s7057_s3 + $0x240] ss:$16 sps:$4 sm:$0xff]  }
 0x161   :  { %3278 = vmatprep.subr.bf16.mxu0 %v4822_v12  ;;  %3450 = vmatprep.subr.bf16.mxu1 %v4825_v59  ;;  %v1199_v44 = vadd.f32 %v1151_v24, %v6046_v62  ;;  %v1264_v37 = vrot.slane %v1263_v31, 4  ;;  %v1311_v55 = vmul.f32 %v1151_v24, %v6064_v48  ;;  %v1423_v53 = vadd.f32 %v1391_v29, %v1383_v5  ;;  %v4834_v24 = vld [vmem:[%s7057_s3 + $0x264] ss:$16 sps:$4 sm:$0xff]  }
 0x162   :  { %v5143_v16 = vpop.eup %5142  ;;  %v1206_v23 = vadd.f32 %v1152_v35, %v6052_v34  ;;  %v1271_v18 = vrot.slane %v1270_v52, 4  ;;  %v1312_v36 = vmul.f32 %v1152_v35, %v6076_v20  ;;  %v1430_v3 = vadd.f32 %v1392_v26, %v1384_v41 }
 0x163   :  { %v5145_v45 = vpop.eup %5144  ;;  %v1614_v7 = vmul.f32 0.0, %v5143_v16  ;;  %v1200_v47 = vrot.slane %v1199_v44, 4  ;;  %v1265_v49 = vadd.f32 %v1264_v37, %v1263_v31  ;;  %v1343_v12 = vadd.f32 %v1311_v55, %v1303_v13  ;;  %v4837_v13 = vld [vmem:[%s7057_s3 + $0x26c] ss:$16 sps:$4 sm:$0xff]  }
 0x164   :  { %3279 = vmatpush1.bf16.msra.mxu0 %v4820_v6  ;;  %3451 = vmatpush1.bf16.msra.mxu1 %v4823_v25  ;;  %v1622_v60 = vmul.f32 0.0, %v5145_v45  ;;  %v1424_v59 = vrot.slane %v1423_v53, 4  ;;  %v1207_v43 = vrot.slane %v1206_v23, 4  ;;  %v1272_v46 = vadd.f32 %v1271_v18, %v1270_v52 }
 0x165   :  { %v5147_v5 = vpop.eup %5146  ;;  %3280 = vmatprep.subr.bf16.mxu0 %v4828_v10  ;;  %3452 = vmatprep.subr.bf16.mxu1 %v4831_v27  ;;  %v1646_v31 = vadd.f32 %v5145_v45, %v1614_v7  ;;  %v1201_v29 = vadd.f32 %v1200_v47, %v1199_v44  ;;  %v1266_v6 = vrot.slane %v1265_v49, 2  ;;  %v1344_v25 = vrot.slane %v1343_v12, 4  ;;  %v4832_v27 = vld [vmem:[%s7057_s3 + $0x260] ss:$16 sps:$4 sm:$0xff]  }
 0x166   :  { %v5149_v41 = vpop.eup %5148  ;;  %v1638_v35 = vadd.f32 %v5143_v16, %v1622_v60  ;;  %v1425_v26 = vadd.f32 %v1424_v59, %v1423_v53  ;;  %v1115_v52 = vadd.f32 %v6055_v57, %v291_v22  ;;  %v6123_v10 = vadd.f32 %v6058_v50, %v6035_v38  ;;  %v4835_v57 = vld [vmem:[%s7057_s3 + $0x268] ss:$16 sps:$4 sm:$0xff]   ;;  %v4840_v50 = vld [vmem:[%s7057_s3 + $0x284] ss:$16 sps:$4 sm:$0xff]  }
 0x167   :  { %v1662_v37 = vmul.f32 %v1646_v31, %v1598_v61  ;;  %v1345_v44 = vadd.f32 %v1344_v25, %v1343_v12  ;;  %v1208_v55 = vadd.f32 %v1207_v43, %v1206_v23  ;;  %v1273_v18 = vrot.slane %v1272_v46, 2  ;;  %v4843_v61 = vld [vmem:[%s7057_s3 + $0x28c] ss:$16 sps:$4 sm:$0xff]  }
 0x168   :  { %3281 = vmatpush1.bf16.msra.mxu0 %v4826_v54  ;;  %3453 = vmatpush1.bf16.msra.mxu1 %v4829_v40  ;;  %v1654_v22 = vmul.f32 %v1638_v35, %v1590_v0  ;;  %v1426_v53 = vrot.slane %v1425_v26, 2  ;;  %v1350_v33 = vadd.f32 %v1312_v36, %v6074_v19  ;;  %v1431_v63 = vrot.slane %v1430_v3, 4  ;;  %v4838_v36 = vld [vmem:[%s7057_s3 + $0x280] ss:$16 sps:$4 sm:$0xff]  }
 0x169   :  { %3282 = vmatprep.subr.bf16.mxu0 %v4834_v24  ;;  %3454 = vmatprep.subr.bf16.mxu1 %v4837_v13  ;;  %v1202_v16 = vrot.slane %v1201_v29, 2  ;;  %v6144_v23 = vadd.f32 %v1266_v6, %v1265_v49  ;;  %v1346_v45 = vrot.slane %v1345_v44, 2  ;;  %v1613_v54 = vmul.f32 0.0, %v5147_v5  ;;  %v4841_v49 = vld [vmem:[%s7057_s3 + $0x288] ss:$16 sps:$4 sm:$0xff]  }
 0x16a   :  { %v1670_v7 = vpack.c.bf16 %v1662_v37, %v1654_v22  ;;  %v1427_v47 = vadd.f32 %v1426_v53, %v1425_v26  ;;  %v1351_v12 = vrot.slane %v1350_v33, 4  ;;  %v1432_v2 = vadd.f32 %v1431_v63, %v1430_v3  ;;  %v4846_v3 = vld [vmem:[%s7057_s3 + $0x2a4] ss:$16 sps:$4 sm:$0xff]   ;;  %v4849_v13 = vld [vmem:[%s7057_s3 + $0x2ac] ss:$16 sps:$4 sm:$0xff]  }
 0x16b   :  { %v1347_v8 = vadd.f32 %v1346_v45, %v1345_v44  ;;  %v1621_v0 = vmul.f32 0.0, %v5149_v41  ;;  %v1645_v40 = vadd.f32 %v5149_v41, %v1613_v54  ;;  %v1209_v19 = vrot.slane %v1208_v55, 2 }
 0x16c   :  { %3283 = vmatpush1.bf16.msra.mxu0 %v4832_v27  ;;  %3455 = vmatpush1.bf16.msra.mxu1 %v4835_v57  ;;  %v1428_v60 = vrot.slane %v1427_v47, 1  ;;  %v1352_v59 = vadd.f32 %v1351_v12, %v1350_v33  ;;  %v1433_v43 = vrot.slane %v1432_v2, 2  ;;  %v1274_v24 = vadd.f32 %v1273_v18, %v1272_v46 }
 0x16d   :  { %3284 = vmatprep.subr.bf16.mxu0 %v4840_v50  ;;  %3456 = vmatprep.subr.bf16.mxu1 %v4843_v61  ;;  %v1348_v31 = vrot.slane %v1347_v8, 1  ;;  %v1637_v6 = vadd.f32 %v5147_v5, %v1621_v0  ;;  %v1661_v25 = vmul.f32 %v1645_v40, %v1597_v58  ;;  %v1210_v41 = vadd.f32 %v1209_v19, %v1208_v55 }
 0x16e   :  { %3308 = vmatprep.mubr.bf16.mxu0 %v1670_v7  ;;  %3480 = vmatprep.mubr.bf16.mxu1 %v1670_v7  ;;  %v1353_v46 = vrot.slane %v1352_v59, 2  ;;  %v1434_v35 = vadd.f32 %v1433_v43, %v1432_v2  ;;  %v1275_v26 = vrot.slane %v1274_v24, 1  ;;  %v226_v27 = vmul.f32 0.0, %v5996_v17  ;;  %v4850_v7 = vld [vmem:[%s7057_s3 + $0x2c0] ss:$16 sps:$4 sm:$0xff]  }
 0x16f   :  { %v6162_v37 = vadd.f32 %v1202_v16, %v1201_v29  ;;  %v1653_v44 = vmul.f32 %v1637_v6, %v1589_v14  ;;  %v1211_v18 = vrot.slane %v1210_v41, 1  ;;  %v6167_v5 = vmax.f32 %v1115_v52, 0.0  ;;  %v4859_v6 = vld [vmem:[%s7057_s3 + $0x2e8] ss:$16 sps:$4 sm:$0xff]  }
 0x170   :  { %3285 = vmatpush1.bf16.msra.mxu0 %v4838_v36  ;;  %3457 = vmatpush1.bf16.msra.mxu1 %v4841_v49  ;;  %v6175_v17 = vadd.f32 %v1428_v60, %v1427_v47  ;;  %v1354_v58 = vadd.f32 %v1353_v46, %v1352_v59  ;;  %v1435_v29 = vrot.slane %v1434_v35, 1  ;;  %v1276_v55 = vadd.f32 %v1275_v26, %v1274_v24  ;;  %v4853_v47 = vld [vmem:[%s7057_s3 + $0x2c8] ss:$16 sps:$4 sm:$0xff]   ;;  %v4867_v26 = vld [vmem:[%s7057_s3 + $0x30c] ss:$16 sps:$4 sm:$0xff]  }
 0x171   :  { %3286 = vmatprep.subr.bf16.mxu0 %v4846_v3  ;;  %3458 = vmatprep.subr.bf16.mxu1 %v4849_v13  ;;  %v1268_v14 = vrot.slane %v6144_v23, 1  ;;  %v6184_v52 = vadd.f32 %v1348_v31, %v1347_v8  ;;  %v6186_v57 = vpack.c.bf16 %v1661_v25, %v1653_v44  ;;  %v1212_v50 = vadd.f32 %v1211_v18, %v1210_v41 }
 0x172   :  { %v1355_v22 = vrot.slane %v1354_v58, 1  ;;  %v1436_v53 = vadd.f32 %v1435_v29, %v1434_v35  ;;  %v1296_v33 = vmul.f32 0.125, %v1276_v55  ;;  %v1161_v63 = vmul.f32 0.0, %v6167_v5  ;;  %v4864_v35 = vld [vmem:[%s7057_s3 + $0x304] ss:$16 sps:$4 sm:$0xff]  }
 0x173   :  { %v1232_v61 = vmul.f32 0.125, %v1212_v50  ;;  %v6191_v16 = vmul.f32 %v6167_v5, %v6167_v5  ;;  %v1117_v45 = vadd.f32 %v6067_v42, %v6123_v10  ;;  %v299_v54 = vadd.f32 %v6015_v21, %v226_v27  ;;  %v4858_v21 = vld [vmem:[%s7057_s3 + $0x2e4] ss:$16 sps:$4 sm:$0xff]   ;;  %v4861_v42 = vld [vmem:[%s7057_s3 + $0x2ec] ss:$16 sps:$4 sm:$0xff]  }
 0x174   :  { %3287 = vmatpush1.bf16.msra.mxu0 %v4844_v30  ;;  %3459 = vmatpush1.bf16.msra.mxu1 %v4847_v56  ;;  %v1356_v12 = vadd.f32 %v1355_v22, %v1354_v58  ;;  %v1456_v2 = vmul.f32 0.125, %v1436_v53  ;;  %v1504_v8 = vmul.f32 %v1296_v33, %v1296_v33  ;;  %v1560_v0 = vmul.f32 0.0, %v1296_v33  ;;  %v4862_v55 = vld [vmem:[%s7057_s3 + $0x300] ss:$16 sps:$4 sm:$0xff]   ;;  %v4865_v53 = vld [vmem:[%s7057_s3 + $0x308] ss:$16 sps:$4 sm:$0xff]  }
 0x175   :  { %3288 = vmatprep.subr.bf16.mxu0 %v4852_v1  ;;  %3460 = vmatprep.subr.bf16.mxu1 %v4855_v51  ;;  %v1464_v10 = vmul.f32 %v1232_v61, %v1232_v61  ;;  %v1552_v40 = vmul.f32 0.0, %v1232_v61  ;;  %v6208_v19 = vmax.f32 %v1117_v45, 0.0  ;;  %v1119_v36 = vadd.f32 %v6078_v28, %v299_v54  ;;  %v4856_v28 = vld [vmem:[%s7057_s3 + $0x2e0] ss:$16 sps:$4 sm:$0xff]   ;;  %v4873_v45 = vld [vmem:[%s7057_s3 + $0x32c] ss:$16 sps:$4 sm:$0xff]  }
 0x176   :  { %v1376_v49 = vmul.f32 0.125, %v1356_v12  ;;  %v1512_v60 = vsub.f32 %v1456_v2, %v1504_v8  ;;  %v6211_v59 = vadd.f32 %v1560_v0, %v1232_v61  ;;  %v227_v43 = vmul.f32 0.0, %v6035_v38  ;;  %v4870_v61 = vld [vmem:[%s7057_s3 + $0x324] ss:$16 sps:$4 sm:$0xff]  }
 0x177   :  { %v6214_v24 = vadd.f32 %v1552_v40, %v1296_v33  ;;  %v1385_v3 = vmul.f32 %v1161_v63, %v6167_v5  ;;  %v1162_v13 = vmul.f32 0.0, %v6208_v19  ;;  %v6218_v31 = vmax.f32 %v1119_v36, 0.0  ;;  %v4871_v36 = vld [vmem:[%s7057_s3 + $0x328] ss:$16 sps:$4 sm:$0xff]  }
 0x178   :  { %3289 = vmatpush1.bf16.msra.mxu0 %v4850_v7  ;;  %3461 = vmatpush1.bf16.msra.mxu1 %v4853_v47  ;;  %v1472_v25 = vsub.f32 %v1376_v49, %v1464_v10  ;;  %v1520_v38 = vmax.f32 %v1512_v60, 0.0  ;;  %v1592_v41 = vsub.f32 %v6052_v34, %v6211_v59  ;;  %v300_v46 = vadd.f32 %v6018_v39, %v227_v43  ;;  %v4894_v34 = vld [vmem:[%s7057_s3 + $0x3a4] ss:$16 sps:$4 sm:$0xff]   ;;  %v4897_v59 = vld [vmem:[%s7057_s3 + $0x3ac] ss:$16 sps:$4 sm:$0xff]  }
 0x179   :  { %3290 = vmatprep.subr.bf16.mxu0 %v4858_v21  ;;  %3462 = vmatprep.subr.bf16.mxu1 %v4861_v42  ;;  %v1600_v27 = vsub.f32 %v6076_v20, %v6214_v24  ;;  %v1306_v44 = vmul.f32 %v6208_v19, %v6208_v19  ;;  %v1153_v18 = vmul.f32 0.0, %v6218_v31  ;;  %v1277_v39 = vadd.f32 %v1161_v63, %v6218_v31  ;;  %v4892_v20 = vld [vmem:[%s7057_s3 + $0x3a0] ss:$16 sps:$4 sm:$0xff]   ;;  %v4895_v24 = vld [vmem:[%s7057_s3 + $0x3a8] ss:$16 sps:$4 sm:$0xff]  }
 0x17a   :  { %v1480_v30 = vmax.f32 %v1472_v25, 0.0  ;;  %v1528_v56 = vadd.f32 1e-05, %v1520_v38  ;;  %v1393_v58 = vmul.f32 %v6218_v31, %v6218_v31  ;;  %v1121_v29 = vadd.f32 %v6085_v32, %v300_v46 }
 0x17b   :  { %v1386_v1 = vmul.f32 %v1162_v13, %v6208_v19  ;;  %v1213_v51 = vadd.f32 %v1153_v18, %v6167_v5  ;;  %v1278_v50 = vrot.slane %v1277_v39, 4  ;;  %v1313_v22 = vmul.f32 %v1153_v18, %v6218_v31 }
 0x17c   :  { %3291 = vmatpush1.bf16.msra.mxu0 %v4856_v28  ;;  %3463 = vmatpush1.bf16.msra.mxu1 %v4859_v6  ;;  %v1488_v33 = vadd.f32 1e-05, %v1480_v30  ;;  %5150 = vrsqrt.f32 %v1528_v56  ;;  %v1437_v32 = vadd.f32 %v1393_v58, %v1385_v3  ;;  %v6253_v63 = vmax.f32 %v1121_v29, 0.0  ;;  %v4879_v28 = vld [vmem:[%s7057_s3 + $0x34c] ss:$16 sps:$4 sm:$0xff]  }
 0x17d   :  { %3292 = vmatprep.subr.bf16.mxu0 %v4864_v35  ;;  %3464 = vmatprep.subr.bf16.mxu1 %v4867_v26  ;;  %v1214_v54 = vrot.slane %v1213_v51, 4  ;;  %v1279_v7 = vadd.f32 %v1278_v50, %v1277_v39  ;;  %v1357_v47 = vadd.f32 %v1313_v22, %v6191_v16  ;;  %v1204_v12 = vrot.slane %v6162_v37, 1  ;;  %v4868_v16 = vld [vmem:[%s7057_s3 + $0x320] ss:$16 sps:$4 sm:$0xff]   ;;  %v4882_v50 = vld [vmem:[%s7057_s3 + $0x364] ss:$16 sps:$4 sm:$0xff]  }
 0x17e   :  { %5152 = vrsqrt.f32 %v1488_v33  ;;  %v1438_v2 = vrot.slane %v1437_v32, 4  ;;  %v1154_v8 = vmul.f32 0.0, %v6253_v63  ;;  %v1284_v0 = vadd.f32 %v1162_v13, %v6253_v63  ;;  %v4876_v13 = vld [vmem:[%s7057_s3 + $0x344] ss:$16 sps:$4 sm:$0xff]   ;;  %v4874_v30 = vld [vmem:[%s7057_s3 + $0x340] ss:$16 sps:$4 sm:$0xff]  }
 0x17f   :  { %v1215_v21 = vadd.f32 %v1214_v54, %v1213_v51  ;;  %v1280_v42 = vrot.slane %v1279_v7, 2  ;;  %v1358_v10 = vrot.slane %v1357_v47, 4  ;;  %v1394_v40 = vmul.f32 %v6253_v63, %v6253_v63 }
 0x180   :  { %3293 = vmatpush1.bf16.msra.mxu0 %v4862_v55  ;;  %3465 = vmatpush1.bf16.msra.mxu1 %v4865_v53  ;;  %v1439_v49 = vadd.f32 %v1438_v2, %v1437_v32  ;;  %v1220_v60 = vadd.f32 %v1154_v8, %v6208_v19  ;;  %v1285_v43 = vrot.slane %v1284_v0, 4  ;;  %v1314_v3 = vmul.f32 %v1154_v8, %v6253_v63 }
 0x181   :  { %3294 = vmatprep.subr.bf16.mxu0 %v4870_v61  ;;  %3466 = vmatprep.subr.bf16.mxu1 %v4873_v45  ;;  %v1216_v6 = vrot.slane %v1215_v21, 2  ;;  %v1359_v25 = vadd.f32 %v1358_v10, %v1357_v47  ;;  %v1444_v38 = vadd.f32 %v1394_v40, %v1386_v1  ;;  %v1205_v46 = vadd.f32 %v1204_v12, %v6162_v37  ;;  %v4877_v37 = vld [vmem:[%s7057_s3 + $0x348] ss:$16 sps:$4 sm:$0xff]   ;;  %v4888_v40 = vld [vmem:[%s7057_s3 + $0x384] ss:$16 sps:$4 sm:$0xff]  }
 0x182   :  { %v6282_v35 = vadd.f32 %v1280_v42, %v1279_v7  ;;  %v1440_v26 = vrot.slane %v1439_v49, 2  ;;  %v1286_v18 = vadd.f32 %v1285_v43, %v1284_v0  ;;  %v1364_v39 = vadd.f32 %v1314_v3, %v1306_v44  ;;  %v4880_v0 = vld [vmem:[%s7057_s3 + $0x360] ss:$16 sps:$4 sm:$0xff]  }
 0x183   :  { %v1221_v56 = vrot.slane %v1220_v60, 4  ;;  %v1445_v58 = vrot.slane %v1444_v38, 4  ;;  %v6288_v29 = vmul.f32 0.125, %v6175_v17  ;;  %v1360_v55 = vrot.slane %v1359_v25, 2  ;;  %v4885_v17 = vld [vmem:[%s7057_s3 + $0x36c] ss:$16 sps:$4 sm:$0xff]  }
 0x184   :  { %3295 = vmatpush1.bf16.msra.mxu0 %v4868_v16  ;;  %3467 = vmatpush1.bf16.msra.mxu1 %v4871_v36  ;;  %v1287_v1 = vrot.slane %v1286_v18, 2  ;;  %v1365_v51 = vrot.slane %v1364_v39, 4  ;;  %v1375_v44 = vmul.f32 0.125, %v6184_v52  ;;  %v1231_v53 = vmul.f32 0.125, %v1205_v46  ;;  %v4891_v16 = vld [vmem:[%s7057_s3 + $0x38c] ss:$16 sps:$4 sm:$0xff]  }
 0x185   :  { %3296 = vmatprep.subr.bf16.mxu0 %v4876_v13  ;;  %3468 = vmatprep.subr.bf16.mxu1 %v4879_v28  ;;  %v1446_v22 = vadd.f32 %v1445_v58, %v1444_v38  ;;  %v1269_v33 = vadd.f32 %v1268_v14, %v6144_v23  ;;  %v6303_v61 = vadd.f32 %v1216_v6, %v1215_v21  ;;  %v1282_v52 = vrot.slane %v6282_v35, 1  ;;  %v4883_v23 = vld [vmem:[%s7057_s3 + $0x368] ss:$16 sps:$4 sm:$0xff]  }
 0x186   :  { %v5151_v32 = vpop.eup %5150  ;;  %v1441_v45 = vadd.f32 %v1440_v26, %v1439_v49  ;;  %v1366_v54 = vadd.f32 %v1365_v51, %v1364_v39  ;;  %v1222_v47 = vadd.f32 %v1221_v56, %v1220_v60  ;;  %v1361_v14 = vadd.f32 %v1360_v55, %v1359_v25  ;;  %v4886_v25 = vld [vmem:[%s7057_s3 + $0x380] ss:$16 sps:$4 sm:$0xff]   ;;  %v4889_v39 = vld [vmem:[%s7057_s3 + $0x388] ss:$16 sps:$4 sm:$0xff]  }
 0x187   :  { %v1624_v7 = vmul.f32 0.0, %v5151_v32  ;;  %v1447_v12 = vrot.slane %v1446_v22, 2  ;;  %v1295_v2 = vmul.f32 0.125, %v1269_v33  ;;  %v1463_v42 = vmul.f32 %v1231_v53, %v1231_v53 }
 0x188   :  { %v5153_v8 = vpop.eup %5152  ;;  %3297 = vmatpush1.bf16.msra.mxu0 %v4874_v30  ;;  %3469 = vmatpush1.bf16.msra.mxu1 %v4877_v37  ;;  %v1367_v21 = vrot.slane %v1366_v54, 2  ;;  %v1288_v10 = vadd.f32 %v1287_v1, %v1286_v18  ;;  %v1551_v43 = vmul.f32 0.0, %v1231_v53  ;;  %v1442_v3 = vrot.slane %v1441_v45, 1 }
 0x189   :  { %3298 = vmatprep.subr.bf16.mxu0 %v4882_v50  ;;  %3470 = vmatprep.subr.bf16.mxu1 %v4885_v17  ;;  %v1616_v36 = vmul.f32 0.0, %v5153_v8  ;;  %v1640_v49 = vadd.f32 %v5153_v8, %v1624_v7  ;;  %v1448_v60 = vadd.f32 %v1447_v12, %v1446_v22  ;;  %v1471_v28 = vsub.f32 %v1375_v44, %v1463_v42  ;;  %v4900_v7 = vld [vmem:[%s7057_s3 + $0x3c4] ss:$16 sps:$4 sm:$0xff]  }
 0x18a   :  { %v1368_v13 = vadd.f32 %v1367_v21, %v1366_v54  ;;  %v1503_v6 = vmul.f32 %v1295_v2, %v1295_v2  ;;  %v1223_v18 = vrot.slane %v1222_v47, 2  ;;  %v1559_v37 = vmul.f32 0.0, %v1295_v2 }
 0x18b   :  { %v1648_v38 = vadd.f32 %v5151_v32, %v1616_v36  ;;  %v1656_v46 = vmul.f32 %v1640_v49, %v1592_v41  ;;  %v1449_v26 = vrot.slane %v1448_v60, 1  ;;  %v1479_v56 = vmax.f32 %v1471_v28, 0.0  ;;  %v4901_v49 = vld [vmem:[%s7057_s3 + $0x3c8] ss:$16 sps:$4 sm:$0xff]  }
 0x18c   :  { %3299 = vmatpush1.bf16.msra.mxu0 %v4880_v0  ;;  %3471 = vmatpush1.bf16.msra.mxu1 %v4883_v23  ;;  %v1369_v30 = vrot.slane %v1368_v13, 1  ;;  %v1511_v58 = vsub.f32 %v6288_v29, %v1503_v6  ;;  %v1362_v55 = vrot.slane %v1361_v14, 1  ;;  %v6337_v1 = vadd.f32 %v1551_v43, %v1295_v2 }
 0x18d   :  { %3300 = vmatprep.subr.bf16.mxu0 %v4888_v40  ;;  %3472 = vmatprep.subr.bf16.mxu1 %v4891_v16  ;;  %v1664_v41 = vmul.f32 %v1648_v38, %v1600_v27  ;;  %v1289_v51 = vrot.slane %v1288_v10, 1  ;;  %v1450_v29 = vadd.f32 %v1449_v26, %v1448_v60  ;;  %v1487_v44 = vadd.f32 1e-05, %v1479_v56 }
 0x18e   :  { %v1519_v50 = vmax.f32 %v1511_v58, 0.0  ;;  %v6339_v17 = vadd.f32 %v1559_v37, %v1231_v53  ;;  %v1443_v33 = vadd.f32 %v1442_v3, %v1441_v45  ;;  %v1599_v32 = vsub.f32 %v6064_v48, %v6337_v1  ;;  %v4927_v48 = vld [vmem:[%s7057_s3 + $0x44c] ss:$16 sps:$4 sm:$0xff]  }
 0x18f   :  { %v6341_v22 = vpack.c.bf16 %v1664_v41, %v1656_v46  ;;  %v1224_v54 = vadd.f32 %v1223_v18, %v1222_v47  ;;  %v1370_v27 = vadd.f32 %v1369_v30, %v1368_v13  ;;  %5154 = vrsqrt.f32 %v1487_v44  ;;  %v4903_v47 = vld [vmem:[%s7057_s3 + $0x3cc] ss:$16 sps:$4 sm:$0xff]   ;;  %v4907_v30 = vld [vmem:[%s7057_s3 + $0x3e8] ss:$16 sps:$4 sm:$0xff]  }
 0x190   :  { %3301 = vmatpush1.bf16.msra.mxu0 %v4886_v25  ;;  %3473 = vmatpush1.bf16.msra.mxu1 %v4889_v39  ;;  %v1527_v53 = vadd.f32 1e-05, %v1519_v50  ;;  %v1591_v45 = vsub.f32 %v6046_v62, %v6339_v17  ;;  %v1290_v2 = vadd.f32 %v1289_v51, %v1288_v10  ;;  %v1218_v8 = vrot.slane %v6303_v61, 1  ;;  %v4898_v10 = vld [vmem:[%s7057_s3 + $0x3c0] ss:$16 sps:$4 sm:$0xff]  }
 0x191   :  { %3302 = vmatprep.subr.bf16.mxu0 %v4894_v34  ;;  %3474 = vmatprep.subr.bf16.mxu1 %v4897_v59  ;;  %v1225_v12 = vrot.slane %v1224_v54, 1  ;;  %v1283_v0 = vadd.f32 %v1282_v52, %v6282_v35  ;;  %v1363_v23 = vadd.f32 %v1362_v55, %v1361_v14  ;;  %v1458_v21 = vmul.f32 0.125, %v1450_v29  ;;  %v4906_v52 = vld [vmem:[%s7057_s3 + $0x3e4] ss:$16 sps:$4 sm:$0xff]   ;;  %v4904_v39 = vld [vmem:[%s7057_s3 + $0x3e0] ss:$16 sps:$4 sm:$0xff]  }
 0x192   :  { %5156 = vrsqrt.f32 %v1527_v53  ;;  %v1298_v40 = vmul.f32 0.125, %v1290_v2  ;;  %v1219_v16 = vadd.f32 %v1218_v8, %v6303_v61  ;;  %v1457_v60 = vmul.f32 0.125, %v1443_v33  ;;  %v4909_v61 = vld [vmem:[%s7057_s3 + $0x3ec] ss:$16 sps:$4 sm:$0xff]   ;;  %v4912_v59 = vld [vmem:[%s7057_s3 + $0x404] ss:$16 sps:$4 sm:$0xff]  }
 0x193   :  { %v1226_v42 = vadd.f32 %v1225_v12, %v1224_v54  ;;  %v1297_v36 = vmul.f32 0.125, %v1283_v0  ;;  %v1378_v35 = vmul.f32 0.125, %v1370_v27  ;;  %v1377_v28 = vmul.f32 0.125, %v1363_v23  ;;  %v4915_v41 = vld [vmem:[%s7057_s3 + $0x40c] ss:$16 sps:$4 sm:$0xff]  }
 0x194   :  { %3303 = vmatpush1.bf16.msra.mxu0 %v4892_v20  ;;  %3475 = vmatpush1.bf16.msra.mxu1 %v4895_v24  ;;  %v1506_v43 = vmul.f32 %v1298_v40, %v1298_v40  ;;  %v1562_v3 = vmul.f32 0.0, %v1298_v40  ;;  %v1233_v6 = vmul.f32 0.125, %v1219_v16  ;;  %v4910_v33 = vld [vmem:[%s7057_s3 + $0x400] ss:$16 sps:$4 sm:$0xff]   ;;  %v4913_v53 = vld [vmem:[%s7057_s3 + $0x408] ss:$16 sps:$4 sm:$0xff]  }
 0x195   :  { %3304 = vmatprep.subr.bf16.mxu0 %v4900_v7  ;;  %3476 = vmatprep.subr.bf16.mxu1 %v4903_v47  ;;  %v1234_v14 = vmul.f32 0.125, %v1226_v42  ;;  %v1505_v13 = vmul.f32 %v1297_v36, %v1297_v36  ;;  %v1561_v25 = vmul.f32 0.0, %v1297_v36  ;;  %v4918_v0 = vld [vmem:[%s7057_s3 + $0x424] ss:$16 sps:$4 sm:$0xff]   ;;  %v4933_v17 = vld [vmem:[%s7057_s3 + $0x46c] ss:$16 sps:$4 sm:$0xff]  }
 0x196   :  { %v1514_v46 = vsub.f32 %v1458_v21, %v1506_v43  ;;  %v1465_v56 = vmul.f32 %v1233_v6, %v1233_v6  ;;  %v1553_v37 = vmul.f32 0.0, %v1233_v6  ;;  %v4925_v43 = vld [vmem:[%s7057_s3 + $0x448] ss:$16 sps:$4 sm:$0xff]   ;;  %v4930_v62 = vld [vmem:[%s7057_s3 + $0x464] ss:$16 sps:$4 sm:$0xff]  }
 0x197   :  { %v1466_v38 = vmul.f32 %v1234_v14, %v1234_v14  ;;  %v1554_v26 = vmul.f32 0.0, %v1234_v14  ;;  %v6376_v18 = vadd.f32 %v1562_v3, %v1234_v14  ;;  %v1513_v58 = vsub.f32 %v1457_v60, %v1505_v13  ;;  %v4922_v14 = vld [vmem:[%s7057_s3 + $0x440] ss:$16 sps:$4 sm:$0xff]   ;;  %v4931_v13 = vld [vmem:[%s7057_s3 + $0x468] ss:$16 sps:$4 sm:$0xff]  }
 0x198   :  { %3305 = vmatpush1.bf16.msra.mxu0 %v4898_v10  ;;  %3477 = vmatpush1.bf16.msra.mxu1 %v4901_v49  ;;  %v6384_v34 = vadd.f32 %v1561_v25, %v1233_v6  ;;  %v1522_v51 = vmax.f32 %v1514_v46, 0.0  ;;  %v1473_v54 = vsub.f32 %v1377_v28, %v1465_v56  ;;  %v6399_v24 = vadd.f32 %v1553_v37, %v1297_v36  ;;  %v4928_v3 = vld [vmem:[%s7057_s3 + $0x460] ss:$16 sps:$4 sm:$0xff]   ;;  %v4936_v25 = vld [vmem:[%s7057_s3 + $0x484] ss:$16 sps:$4 sm:$0xff]  }
 0x199   :  { %3306 = vmatprep.subr.bf16.mxu0 %v4906_v52  ;;  %3478 = vmatprep.subr.bf16.mxu1 %v4909_v61  ;;  %v1474_v55 = vsub.f32 %v1378_v35, %v1466_v38  ;;  %v6392_v29 = vadd.f32 %v1554_v26, %v1298_v40  ;;  %v1594_v44 = vsub.f32 %v6208_v19, %v6376_v18  ;;  %v5155_v50 = vpop.eup %5154  ;;  %v1521_v20 = vmax.f32 %v1513_v58, 0.0  ;;  %v4921_v40 = vld [vmem:[%s7057_s3 + $0x42c] ss:$16 sps:$4 sm:$0xff]   ;;  %v4916_v52 = vld [vmem:[%s7057_s3 + $0x420] ss:$16 sps:$4 sm:$0xff]  }
 0x19a   :  { %v1593_v27 = vsub.f32 %v6167_v5, %v6384_v34  ;;  %v1615_v7 = vmul.f32 0.0, %v5155_v50  ;;  %v1530_v12 = vadd.f32 1e-05, %v1522_v51  ;;  %v1481_v23 = vmax.f32 %v1473_v54, 0.0  ;;  %v4919_v61 = vld [vmem:[%s7057_s3 + $0x428] ss:$16 sps:$4 sm:$0xff]  }
 0x19b   :  { %v1482_v47 = vmax.f32 %v1474_v55, 0.0  ;;  %v1602_v2 = vsub.f32 %v6253_v63, %v6392_v29  ;;  %v1529_v21 = vadd.f32 1e-05, %v1521_v20  ;;  %v1601_v42 = vsub.f32 %v6218_v31, %v6399_v24  ;;  %v4939_v38 = vld [vmem:[%s7057_s3 + $0x48c] ss:$16 sps:$4 sm:$0xff]  }
 0x19c   :  { %v5157_v8 = vpop.eup %5156  ;;  %3307 = vmatpush1.bf16.msra.mxu0 %v4904_v39  ;;  %3479 = vmatpush1.bf16.msra.mxu1 %v4907_v30  ;;  %5158 = vrsqrt.f32 %v1530_v12  ;;  %v1489_v49 = vadd.f32 1e-05, %v1481_v23  ;;  %v4934_v37 = vld [vmem:[%s7057_s3 + $0x480] ss:$16 sps:$4 sm:$0xff]   ;;  %v4942_v51 = vld [vmem:[%s7057_s3 + $0x4a4] ss:$16 sps:$4 sm:$0xff]  }
 0x19d   :  { %3319 = vmatprep.subr.bf16.mxu0 %v4912_v59  ;;  %3491 = vmatprep.subr.bf16.mxu1 %v4915_v41  ;;  %v1623_v16 = vmul.f32 0.0, %v5157_v8  ;;  %v1647_v36 = vadd.f32 %v5157_v8, %v1615_v7  ;;  %v1490_v10 = vadd.f32 1e-05, %v1482_v47  ;;  %5160 = vrsqrt.f32 %v1529_v21  ;;  %v4937_v59 = vld [vmem:[%s7057_s3 + $0x488] ss:$16 sps:$4 sm:$0xff]  }
 0x19e   :  { %v4943_v20 = vld [vmem:[%s7057_s3 + $0x4a8] ss:$16 sps:$4 sm:$0xff]   ;;  %v4948_v63 = vld [vmem:[%s7057_s3 + $0x4c4] ss:$16 sps:$4 sm:$0xff]   ;;  %v4951_v31 = vld [vmem:[%s7057_s3 + $0x4cc] ss:$16 sps:$4 sm:$0xff]  }
 0x19f   :  { %3309 = vmatmul.mubr.bf16.vlgmr.msra.gmra.mrb[8].mxu0 %v6186_v57  ;;  %3481 = vmatmul.mubr.bf16.vlgmr.msra.gmra.mrb[8].mxu1 %v6186_v57  ;;  %v1639_v60 = vadd.f32 %v5155_v50, %v1623_v16  ;;  %v1663_v35 = vmul.f32 %v1647_v36, %v1599_v32  ;;  %5162 = vrsqrt.f32 %v1490_v10  ;;  %v4924_v57 = vld [vmem:[%s7057_s3 + $0x444] ss:$16 sps:$4 sm:$0xff]   ;;  %v4945_v50 = vld [vmem:[%s7057_s3 + $0x4ac] ss:$16 sps:$4 sm:$0xff]   ;;  %v4946_v29 = vld [vmem:[%s7057_s3 + $0x4c0] ss:$16 sps:$4 sm:$0xff]  }
 0x1a0   :  { %3320 = vmatpush1.bf16.msra.mxu0 %v4910_v33  ;;  %3492 = vmatpush1.bf16.msra.mxu1 %v4913_v53  ;;  %5164 = vrsqrt.f32 %v1489_v49  ;;  %v4949_v24 = vld [vmem:[%s7057_s3 + $0x4c8] ss:$16 sps:$4 sm:$0xff]   ;;  %v4957_v53 = vld [vmem:[%s7057_s3 + $0x4ec] ss:$16 sps:$4 sm:$0xff]   ;;  %v4952_v7 = vld [vmem:[%s7057_s3 + $0x4e0] ss:$16 sps:$4 sm:$0xff]  }
 0x1a1   :  { %3321 = vmatprep.subr.bf16.mxu0 %v4918_v0  ;;  %3493 = vmatprep.subr.bf16.mxu1 %v4921_v40  ;;  %v1655_v1 = vmul.f32 %v1639_v60, %v1591_v45  ;;  %v4955_v47 = vld [vmem:[%s7057_s3 + $0x4e8] ss:$16 sps:$4 sm:$0xff]   ;;  %v4960_v12 = vld [vmem:[%s7057_s3 + $0x504] ss:$16 sps:$4 sm:$0xff]   ;;  %v4958_v8 = vld [vmem:[%s7057_s3 + $0x500] ss:$16 sps:$4 sm:$0xff]  }
 0x1a2   :  { %3351 = vmatprep.mubr.bf16.mxu0 %v6341_v22  ;;  %3523 = vmatprep.mubr.bf16.mxu1 %v6341_v22  ;;  %v4961_v0 = vld [vmem:[%s7057_s3 + $0x508] ss:$16 sps:$4 sm:$0xff]   ;;  %v4966_v23 = vld [vmem:[%s7057_s3 + $0x524] ss:$16 sps:$4 sm:$0xff]   ;;  %v4969_v21 = vld [vmem:[%s7057_s3 + $0x52c] ss:$16 sps:$4 sm:$0xff]  }
 0x1a3   :  { %v6438_v32 = vpack.c.bf16 %v1663_v35, %v1655_v1  ;;  %v4967_v40 = vld [vmem:[%s7057_s3 + $0x528] ss:$16 sps:$4 sm:$0xff]   ;;  %v4972_v16 = vld [vmem:[%s7057_s3 + $0x544] ss:$16 sps:$4 sm:$0xff]   ;;  %v4975_v36 = vld [vmem:[%s7057_s3 + $0x54c] ss:$16 sps:$4 sm:$0xff]  }
 0x1a4   :  { %3322 = vmatpush1.bf16.msra.mxu0 %v4916_v52  ;;  %3494 = vmatpush1.bf16.msra.mxu1 %v4919_v61  ;;  %v4970_v10 = vld [vmem:[%s7057_s3 + $0x540] ss:$16 sps:$4 sm:$0xff]   ;;  %v4973_v49 = vld [vmem:[%s7057_s3 + $0x548] ss:$16 sps:$4 sm:$0xff]   ;;  %v4978_v60 = vld [vmem:[%s7057_s3 + $0x564] ss:$16 sps:$4 sm:$0xff]  }
 0x1a5   :  { %3323 = vmatprep.subr.bf16.mxu0 %v4924_v57  ;;  %3495 = vmatprep.subr.bf16.mxu1 %v4927_v48  ;;  %v4981_v35 = vld [vmem:[%s7057_s3 + $0x56c] ss:$16 sps:$4 sm:$0xff]   ;;  %v4976_v52 = vld [vmem:[%s7057_s3 + $0x560] ss:$16 sps:$4 sm:$0xff]   ;;  %v4979_v61 = vld [vmem:[%s7057_s3 + $0x568] ss:$16 sps:$4 sm:$0xff]  }
 0x1a6   :  { %v5159_v22 = vpop.eup %5158  ;;  %v4984_v57 = vld [vmem:[%s7057_s3 + $0x584] ss:$16 sps:$4 sm:$0xff]   ;;  %v4987_v48 = vld [vmem:[%s7057_s3 + $0x58c] ss:$16 sps:$4 sm:$0xff]   ;;  %v4982_v1 = vld [vmem:[%s7057_s3 + $0x580] ss:$16 sps:$4 sm:$0xff]  }
 0x1a7   :  { %v5161_v45 = vpop.eup %5160  ;;  %v1626_v28 = vmul.f32 0.0, %v5159_v22 }
 0x1a8   :  { %3324 = vmatpush1.bf16.msra.mxu0 %v4922_v14  ;;  %3496 = vmatpush1.bf16.msra.mxu1 %v4925_v43  ;;  %v1625_v46 = vmul.f32 0.0, %v5161_v45  ;;  %v4985_v14 = vld [vmem:[%s7057_s3 + $0x588] ss:$16 sps:$4 sm:$0xff]   ;;  %v4990_v43 = vld [vmem:[%s7057_s3 + $0x5a4] ss:$16 sps:$4 sm:$0xff]  }
 0x1a9   :  { %v5163_v6 = vpop.eup %5162  ;;  %3325 = vmatprep.subr.bf16.mxu0 %v4930_v62  ;;  %3497 = vmatprep.subr.bf16.mxu1 %v4933_v17  ;;  %v4993_v62 = vld [vmem:[%s7057_s3 + $0x5ac] ss:$16 sps:$4 sm:$0xff]   ;;  %v4988_v17 = vld [vmem:[%s7057_s3 + $0x5a0] ss:$16 sps:$4 sm:$0xff]  }
 0x1aa   :  { %v5165_v26 = vpop.eup %5164  ;;  %v1618_v39 = vmul.f32 0.0, %v5163_v6  ;;  %v1642_v30 = vadd.f32 %v5163_v6, %v1626_v28  ;;  %v4997_v28 = vld [vmem:[%s7057_s3 + $0x5c8] ss:$16 sps:$4 sm:$0xff]   ;;  %v5002_v6 = vld [vmem:[%s7057_s3 + $0x5e4] ss:$16 sps:$4 sm:$0xff]  }
 0x1ab   :  { %v1617_v56 = vmul.f32 0.0, %v5165_v26  ;;  %v1641_v58 = vadd.f32 %v5165_v26, %v1625_v46  ;;  %v5003_v46 = vld [vmem:[%s7057_s3 + $0x5e8] ss:$16 sps:$4 sm:$0xff]   ;;  %v5008_v26 = vld [vmem:[%s7057_s3 + $0x604] ss:$16 sps:$4 sm:$0xff]  }
 0x1ac   :  { %3326 = vmatpush1.bf16.msra.mxu0 %v4928_v3  ;;  %3498 = vmatpush1.bf16.msra.mxu1 %v4931_v13  ;;  %v1650_v41 = vadd.f32 %v5159_v22, %v1618_v39  ;;  %v1658_v55 = vmul.f32 %v1642_v30, %v1594_v44  ;;  %v4940_v44 = vld [vmem:[%s7057_s3 + $0x4a0] ss:$16 sps:$4 sm:$0xff]   ;;  %v4991_v22 = vld [vmem:[%s7057_s3 + $0x5a8] ss:$16 sps:$4 sm:$0xff]   ;;  %v4999_v3 = vld [vmem:[%s7057_s3 + $0x5cc] ss:$16 sps:$4 sm:$0xff]  }
 0x1ad   :  { %3327 = vmatprep.subr.bf16.mxu0 %v4936_v25  ;;  %3499 = vmatprep.subr.bf16.mxu1 %v4939_v38  ;;  %v1649_v33 = vadd.f32 %v5161_v45, %v1617_v56  ;;  %v1657_v54 = vmul.f32 %v1641_v58, %v1593_v27  ;;  %v4954_v27 = vld [vmem:[%s7057_s3 + $0x4e4] ss:$16 sps:$4 sm:$0xff]   ;;  %v4994_v13 = vld [vmem:[%s7057_s3 + $0x5c0] ss:$16 sps:$4 sm:$0xff]   ;;  %v5005_v25 = vld [vmem:[%s7057_s3 + $0x5ec] ss:$16 sps:$4 sm:$0xff]  }
 0x1ae   :  { %v1666_v19 = vmul.f32 %v1650_v41, %v1602_v2  ;;  %v4963_v2 = vld [vmem:[%s7057_s3 + $0x50c] ss:$16 sps:$4 sm:$0xff]   ;;  %v4996_v45 = vld [vmem:[%s7057_s3 + $0x5c4] ss:$16 sps:$4 sm:$0xff]   ;;  %v5000_v38 = vld [vmem:[%s7057_s3 + $0x5e0] ss:$16 sps:$4 sm:$0xff]  }
 0x1af   :  { %v1665_v18 = vmul.f32 %v1649_v33, %v1601_v42  ;;  %v4964_v42 = vld [vmem:[%s7057_s3 + $0x520] ss:$16 sps:$4 sm:$0xff]   ;;  %v5011_v39 = vld [vmem:[%s7057_s3 + $0x60c] ss:$16 sps:$4 sm:$0xff]   ;;  %v5009_v56 = vld [vmem:[%s7057_s3 + $0x608] ss:$16 sps:$4 sm:$0xff]  }
 0x1b0   :  { %3328 = vmatpush1.bf16.msra.mxu0 %v4934_v37  ;;  %3500 = vmatpush1.bf16.msra.mxu1 %v4937_v59  ;;  %v6494_v5 = vpack.c.bf16 %v1666_v19, %v1658_v55  ;;  %v5006_v30 = vld [vmem:[%s7057_s3 + $0x600] ss:$16 sps:$4 sm:$0xff]   ;;  %v5014_v58 = vld [vmem:[%s7057_s3 + $0x624] ss:$16 sps:$4 sm:$0xff]   ;;  %v5017_v37 = vld [vmem:[%s7057_s3 + $0x62c] ss:$16 sps:$4 sm:$0xff]  }
 0x1b1   :  { %3329 = vmatprep.subr.bf16.mxu0 %v4942_v51  ;;  %3501 = vmatprep.subr.bf16.mxu1 %v4945_v50  ;;  %v6502_v34 = vpack.c.bf16 %v1665_v18, %v1657_v54  ;;  %v5012_v59 = vld [vmem:[%s7057_s3 + $0x620] ss:$16 sps:$4 sm:$0xff]   ;;  %v5015_v41 = vld [vmem:[%s7057_s3 + $0x628] ss:$16 sps:$4 sm:$0xff]   ;;  %v5020_v55 = vld [vmem:[%s7057_s3 + $0x644] ss:$16 sps:$4 sm:$0xff]  }
 0x1b2   :  { %v5018_v51 = vld [vmem:[%s7057_s3 + $0x640] ss:$16 sps:$4 sm:$0xff]   ;;  %v5021_v50 = vld [vmem:[%s7057_s3 + $0x648] ss:$16 sps:$4 sm:$0xff]   ;;  %v5026_v33 = vld [vmem:[%s7057_s3 + $0x664] ss:$16 sps:$4 sm:$0xff]  }
 0x1b3   :  { %v5029_v54 = vld [vmem:[%s7057_s3 + $0x66c] ss:$16 sps:$4 sm:$0xff]   ;;  %v5024_v19 = vld [vmem:[%s7057_s3 + $0x660] ss:$16 sps:$4 sm:$0xff]   ;;  %v5027_v18 = vld [vmem:[%s7057_s3 + $0x668] ss:$16 sps:$4 sm:$0xff]  }
 0x1b4   :  { %3330 = vmatpush1.bf16.msra.mxu0 %v4940_v44  ;;  %3502 = vmatpush1.bf16.msra.mxu1 %v4943_v20  ;;  %v5032_v44 = vld [vmem:[%s7057_s3 + $0x684] ss:$16 sps:$4 sm:$0xff]   ;;  %v5035_v20 = vld [vmem:[%s7057_s3 + $0x68c] ss:$16 sps:$4 sm:$0xff]  }
 0x1b5   :  { %3331 = vmatprep.subr.bf16.mxu0 %v4948_v63  ;;  %3503 = vmatprep.subr.bf16.mxu1 %v4951_v31  ;;  %v5033_v63 = vld [vmem:[%s7057_s3 + $0x688] ss:$16 sps:$4 sm:$0xff]   ;;  %v5038_v31 = vld [vmem:[%s7057_s3 + $0x6a4] ss:$16 sps:$4 sm:$0xff]  }
 0x1b8   :  { %3332 = vmatpush1.bf16.msra.mxu0 %v4946_v29  ;;  %3504 = vmatpush1.bf16.msra.mxu1 %v4949_v24  ;;  %v5041_v29 = vld [vmem:[%s7057_s3 + $0x6ac] ss:$16 sps:$4 sm:$0xff]   ;;  %v5036_v24 = vld [vmem:[%s7057_s3 + $0x6a0] ss:$16 sps:$4 sm:$0xff]  }
 0x1b9   :  { %3333 = vmatprep.subr.bf16.mxu0 %v4954_v27  ;;  %3505 = vmatprep.subr.bf16.mxu1 %v4957_v53  ;;  %v5039_v27 = vld [vmem:[%s7057_s3 + $0x6a8] ss:$16 sps:$4 sm:$0xff]   ;;  %v5044_v53 = vld [vmem:[%s7057_s3 + $0x6c4] ss:$16 sps:$4 sm:$0xff]  }
 0x1bc   :  { %3334 = vmatpush1.bf16.msra.mxu0 %v4952_v7  ;;  %3506 = vmatpush1.bf16.msra.mxu1 %v4955_v47  ;;  %v5047_v7 = vld [vmem:[%s7057_s3 + $0x6cc] ss:$16 sps:$4 sm:$0xff]   ;;  %v5042_v47 = vld [vmem:[%s7057_s3 + $0x6c0] ss:$16 sps:$4 sm:$0xff]  }
 0x1bd   :  { %3335 = vmatprep.subr.bf16.mxu0 %v4960_v12  ;;  %3507 = vmatprep.subr.bf16.mxu1 %v4963_v2  ;;  %v5045_v12 = vld [vmem:[%s7057_s3 + $0x6c8] ss:$16 sps:$4 sm:$0xff]   ;;  %v5050_v2 = vld [vmem:[%s7057_s3 + $0x6e4] ss:$16 sps:$4 sm:$0xff]  }
 0x1c0   :  { %3336 = vmatpush1.bf16.msra.mxu0 %v4958_v8  ;;  %3508 = vmatpush1.bf16.msra.mxu1 %v4961_v0  ;;  %v5053_v8 = vld [vmem:[%s7057_s3 + $0x6ec] ss:$16 sps:$4 sm:$0xff]   ;;  %v5048_v0 = vld [vmem:[%s7057_s3 + $0x6e0] ss:$16 sps:$4 sm:$0xff]  }
 0x1c1   :  { %3337 = vmatprep.subr.bf16.mxu0 %v4966_v23  ;;  %3509 = vmatprep.subr.bf16.mxu1 %v4969_v21  ;;  %v5051_v23 = vld [vmem:[%s7057_s3 + $0x6e8] ss:$16 sps:$4 sm:$0xff]   ;;  %v5056_v21 = vld [vmem:[%s7057_s3 + $0x704] ss:$16 sps:$4 sm:$0xff]  }
 0x1c4   :  { %3338 = vmatpush1.bf16.msra.mxu0 %v4964_v42  ;;  %3510 = vmatpush1.bf16.msra.mxu1 %v4967_v40  ;;  %v5059_v42 = vld [vmem:[%s7057_s3 + $0x70c] ss:$16 sps:$4 sm:$0xff]   ;;  %v5054_v40 = vld [vmem:[%s7057_s3 + $0x700] ss:$16 sps:$4 sm:$0xff]  }
 0x1c5   :  { %3339 = vmatprep.subr.bf16.mxu0 %v4972_v16  ;;  %3511 = vmatprep.subr.bf16.mxu1 %v4975_v36  ;;  %v5057_v16 = vld [vmem:[%s7057_s3 + $0x708] ss:$16 sps:$4 sm:$0xff]   ;;  %v5062_v36 = vld [vmem:[%s7057_s3 + $0x724] ss:$16 sps:$4 sm:$0xff]  }
 0x1c8   :  { %3340 = vmatpush1.bf16.msra.mxu0 %v4970_v10  ;;  %3512 = vmatpush1.bf16.msra.mxu1 %v4973_v49  ;;  %v5065_v10 = vld [vmem:[%s7057_s3 + $0x72c] ss:$16 sps:$4 sm:$0xff]   ;;  %v5060_v49 = vld [vmem:[%s7057_s3 + $0x720] ss:$16 sps:$4 sm:$0xff]  }
 0x1c9   :  { %3341 = vmatprep.subr.bf16.mxu0 %v4978_v60  ;;  %3513 = vmatprep.subr.bf16.mxu1 %v4981_v35  ;;  %v5063_v60 = vld [vmem:[%s7057_s3 + $0x728] ss:$16 sps:$4 sm:$0xff]   ;;  %v5068_v35 = vld [vmem:[%s7057_s3 + $0x744] ss:$16 sps:$4 sm:$0xff]  }
 0x1cc   :  { %3342 = vmatpush1.bf16.msra.mxu0 %v4976_v52  ;;  %3514 = vmatpush1.bf16.msra.mxu1 %v4979_v61  ;;  %v5071_v52 = vld [vmem:[%s7057_s3 + $0x74c] ss:$16 sps:$4 sm:$0xff]   ;;  %v5066_v61 = vld [vmem:[%s7057_s3 + $0x740] ss:$16 sps:$4 sm:$0xff]  }
 0x1cd   :  { %3343 = vmatprep.subr.bf16.mxu0 %v4984_v57  ;;  %3515 = vmatprep.subr.bf16.mxu1 %v4987_v48  ;;  %v5069_v57 = vld [vmem:[%s7057_s3 + $0x748] ss:$16 sps:$4 sm:$0xff]   ;;  %v5074_v48 = vld [vmem:[%s7057_s3 + $0x764] ss:$16 sps:$4 sm:$0xff]  }
 0x1d0   :  { %3344 = vmatpush1.bf16.msra.mxu0 %v4982_v1  ;;  %3516 = vmatpush1.bf16.msra.mxu1 %v4985_v14  ;;  %v5077_v1 = vld [vmem:[%s7057_s3 + $0x76c] ss:$16 sps:$4 sm:$0xff]   ;;  %v5072_v14 = vld [vmem:[%s7057_s3 + $0x760] ss:$16 sps:$4 sm:$0xff]  }
 0x1d1   :  { %3345 = vmatprep.subr.bf16.mxu0 %v4990_v43  ;;  %3517 = vmatprep.subr.bf16.mxu1 %v4993_v62  ;;  %v5075_v43 = vld [vmem:[%s7057_s3 + $0x768] ss:$16 sps:$4 sm:$0xff]   ;;  %v5080_v62 = vld [vmem:[%s7057_s3 + $0x784] ss:$16 sps:$4 sm:$0xff]  }
 0x1d4   :  { %3346 = vmatpush1.bf16.msra.mxu0 %v4988_v17  ;;  %3518 = vmatpush1.bf16.msra.mxu1 %v4991_v22  ;;  %v5083_v17 = vld [vmem:[%s7057_s3 + $0x78c] ss:$16 sps:$4 sm:$0xff]   ;;  %v5078_v22 = vld [vmem:[%s7057_s3 + $0x780] ss:$16 sps:$4 sm:$0xff]  }
 0x1d5   :  { %3347 = vmatprep.subr.bf16.mxu0 %v4996_v45  ;;  %3519 = vmatprep.subr.bf16.mxu1 %v4999_v3  ;;  %v5081_v45 = vld [vmem:[%s7057_s3 + $0x788] ss:$16 sps:$4 sm:$0xff]   ;;  %v5086_v3 = vld [vmem:[%s7057_s3 + $0x7a4] ss:$16 sps:$4 sm:$0xff]  }
 0x1d8   :  { %3348 = vmatpush1.bf16.msra.mxu0 %v4994_v13  ;;  %3520 = vmatpush1.bf16.msra.mxu1 %v4997_v28  ;;  %v5089_v13 = vld [vmem:[%s7057_s3 + $0x7ac] ss:$16 sps:$4 sm:$0xff]   ;;  %v5084_v28 = vld [vmem:[%s7057_s3 + $0x7a0] ss:$16 sps:$4 sm:$0xff]  }
 0x1d9   :  { %3349 = vmatprep.subr.bf16.mxu0 %v5002_v6  ;;  %3521 = vmatprep.subr.bf16.mxu1 %v5005_v25  ;;  %v5087_v6 = vld [vmem:[%s7057_s3 + $0x7a8] ss:$16 sps:$4 sm:$0xff]   ;;  %v5092_v25 = vld [vmem:[%s7057_s3 + $0x7c4] ss:$16 sps:$4 sm:$0xff]  }
 0x1dc   :  { %3350 = vmatpush1.bf16.msra.mxu0 %v5000_v38  ;;  %3522 = vmatpush1.bf16.msra.mxu1 %v5003_v46  ;;  %v5095_v38 = vld [vmem:[%s7057_s3 + $0x7cc] ss:$16 sps:$4 sm:$0xff]   ;;  %v5090_v46 = vld [vmem:[%s7057_s3 + $0x7c0] ss:$16 sps:$4 sm:$0xff]  }
 0x1dd   :  { %3362 = vmatprep.subr.bf16.mxu0 %v5008_v26  ;;  %3534 = vmatprep.subr.bf16.mxu1 %v5011_v39  ;;  %v5093_v26 = vld [vmem:[%s7057_s3 + $0x7c8] ss:$16 sps:$4 sm:$0xff]   ;;  %v5098_v39 = vld [vmem:[%s7057_s3 + $0x7e4] ss:$16 sps:$4 sm:$0xff]  }
 0x1df   :  { %3352 = vmatmul.mubr.bf16.vlgmr.msra.gmra.mrb[8].mxu0 %v6438_v32  ;;  %3524 = vmatmul.mubr.bf16.vlgmr.msra.gmra.mrb[8].mxu1 %v6438_v32  ;;  %v5023_v32 = vld [vmem:[%s7057_s3 + $0x64c] ss:$16 sps:$4 sm:$0xff]  }
 0x1e0   :  { %3363 = vmatpush1.bf16.msra.mxu0 %v5006_v30  ;;  %3535 = vmatpush1.bf16.msra.mxu1 %v5009_v56  ;;  %v5101_v30 = vld [vmem:[%s7057_s3 + $0x7ec] ss:$16 sps:$4 sm:$0xff]   ;;  %v5096_v56 = vld [vmem:[%s7057_s3 + $0x7e0] ss:$16 sps:$4 sm:$0xff]  }
 0x1e1   :  { %3364 = vmatprep.subr.bf16.mxu0 %v5014_v58  ;;  %3536 = vmatprep.subr.bf16.mxu1 %v5017_v37  ;;  %v5099_v58 = vld [vmem:[%s7057_s3 + $0x7e8] ss:$16 sps:$4 sm:$0xff]   ;;  %v5102_v37 = vld [vmem:[%s7059_s5 + $0x40] sm:$0xff]  }
 0x1e2   :  { %3394 = vmatprep.mubr.bf16.mxu0 %v6494_v5  ;;  %3566 = vmatprep.mubr.bf16.mxu1 %v6494_v5  ;;  %v5030_v5 = vld [vmem:[%s7057_s3 + $0x680] ss:$16 sps:$4 sm:$0xff]  }
 0x1e4   :  { %3365 = vmatpush1.bf16.msra.mxu0 %v5012_v59  ;;  %3537 = vmatpush1.bf16.msra.mxu1 %v5015_v41  ;;  %v5103_v59 = vld [vmem:[%s7059_s5 + $0xc0] sm:$0xff]  }
 0x1e5   :  { %3366 = vmatprep.subr.bf16.mxu0 %v5020_v55  ;;  %3538 = vmatprep.subr.bf16.mxu1 %v5023_v32  ;;  %v5104_v41 = vld [vmem:[%s7059_s5] sm:$0xff]   ;;  %v5107_v32 = vld [vmem:[%s7059_s5 + $0xc8] sm:$0xff]  }
 0x1e6   :  { %v5105_v55 = vld [vmem:[%s7059_s5 + $0x80] sm:$0xff]  }
 0x1e8   :  { %3367 = vmatpush1.bf16.msra.mxu0 %v5018_v51  ;;  %3539 = vmatpush1.bf16.msra.mxu1 %v5021_v50  ;;  %v5108_v51 = vld [vmem:[%s7059_s5 + $0x8] sm:$0xff]  }
 0x1e9   :  { %3368 = vmatprep.subr.bf16.mxu0 %v5026_v33  ;;  %3540 = vmatprep.subr.bf16.mxu1 %v5029_v54  ;;  %v5109_v50 = vld [vmem:[%s7059_s5 + $0x88] sm:$0xff]   ;;  %v5110_v33 = vld [vmem:[%s7059_s5 + $0x50] sm:$0xff]  }
 0x1ea   :  { %v5111_v54 = vld [vmem:[%s7059_s5 + $0xd0] sm:$0xff]  }
 0x1ec   :  { %3369 = vmatpush1.bf16.msra.mxu0 %v5024_v19  ;;  %3541 = vmatpush1.bf16.msra.mxu1 %v5027_v18  ;;  %v5112_v19 = vld [vmem:[%s7059_s5 + $0x10] sm:$0xff]  }
 0x1ed   :  { %3370 = vmatprep.subr.bf16.mxu0 %v5032_v44  ;;  %3542 = vmatprep.subr.bf16.mxu1 %v5035_v20  ;;  %v5113_v18 = vld [vmem:[%s7059_s5 + $0x90] sm:$0xff]   ;;  %v5114_v44 = vld [vmem:[%s7059_s5 + $0x58] sm:$0xff]  }
 0x1ee   :  { %v5115_v20 = vld [vmem:[%s7059_s5 + $0xd8] sm:$0xff]  }
 0x1f0   :  { %3371 = vmatpush1.bf16.msra.mxu0 %v5030_v5  ;;  %3543 = vmatpush1.bf16.msra.mxu1 %v5033_v63  ;;  %v5116_v5 = vld [vmem:[%s7059_s5 + $0x18] sm:$0xff]  }
 0x1f1   :  { %3372 = vmatprep.subr.bf16.mxu0 %v5038_v31  ;;  %3544 = vmatprep.subr.bf16.mxu1 %v5041_v29  ;;  %v5117_v63 = vld [vmem:[%s7059_s5 + $0x98] sm:$0xff]   ;;  %v5118_v31 = vld [vmem:[%s7059_s5 + $0x60] sm:$0xff]  }
 0x1f2   :  { %v5119_v29 = vld [vmem:[%s7059_s5 + $0xe0] sm:$0xff]  }
 0x1f4   :  { %3373 = vmatpush1.bf16.msra.mxu0 %v5036_v24  ;;  %3545 = vmatpush1.bf16.msra.mxu1 %v5039_v27  ;;  %v5120_v24 = vld [vmem:[%s7059_s5 + $0x20] sm:$0xff]  }
 0x1f5   :  { %3374 = vmatprep.subr.bf16.mxu0 %v5044_v53  ;;  %3546 = vmatprep.subr.bf16.mxu1 %v5047_v7  ;;  %v5121_v27 = vld [vmem:[%s7059_s5 + $0xa0] sm:$0xff]   ;;  %v5122_v53 = vld [vmem:[%s7059_s5 + $0x68] sm:$0xff]  }
 0x1f6   :  { %v5123_v7 = vld [vmem:[%s7059_s5 + $0xe8] sm:$0xff]  }
 0x1f8   :  { %3375 = vmatpush1.bf16.msra.mxu0 %v5042_v47  ;;  %3547 = vmatpush1.bf16.msra.mxu1 %v5045_v12  ;;  %v5124_v47 = vld [vmem:[%s7059_s5 + $0x28] sm:$0xff]  }
 0x1f9   :  { %3376 = vmatprep.subr.bf16.mxu0 %v5050_v2  ;;  %3548 = vmatprep.subr.bf16.mxu1 %v5053_v8  ;;  %v5125_v12 = vld [vmem:[%s7059_s5 + $0xa8] sm:$0xff]   ;;  %v5126_v2 = vld [vmem:[%s7059_s5 + $0x70] sm:$0xff]  }
 0x1fa   :  { %v5127_v8 = vld [vmem:[%s7059_s5 + $0xf0] sm:$0xff]  }
 0x1fc   :  { %3377 = vmatpush1.bf16.msra.mxu0 %v5048_v0  ;;  %3549 = vmatpush1.bf16.msra.mxu1 %v5051_v23  ;;  %v5128_v0 = vld [vmem:[%s7059_s5 + $0x30] sm:$0xff]  }
 0x1fd   :  { %3378 = vmatprep.subr.bf16.mxu0 %v5056_v21  ;;  %3550 = vmatprep.subr.bf16.mxu1 %v5059_v42  ;;  %v5129_v23 = vld [vmem:[%s7059_s5 + $0xb0] sm:$0xff]   ;;  %v5130_v21 = vld [vmem:[%s7059_s5 + $0x78] sm:$0xff]  }
 0x1fe   :  { %v5131_v42 = vld [vmem:[%s7059_s5 + $0xf8] sm:$0xff]  }
 0x200   :  { %3379 = vmatpush1.bf16.msra.mxu0 %v5054_v40  ;;  %3551 = vmatpush1.bf16.msra.mxu1 %v5057_v16  ;;  %v5132_v40 = vld [vmem:[%s7059_s5 + $0x38] sm:$0xff]  }
 0x201   :  { %3380 = vmatprep.subr.bf16.mxu0 %v5062_v36  ;;  %3552 = vmatprep.subr.bf16.mxu1 %v5065_v10  ;;  %v5133_v16 = vld [vmem:[%s7059_s5 + $0xb8] sm:$0xff]   ;;  %v1931_v36 = vld [vmem:[%s7060_s4] sm:$0xf] }
 0x202   :  { %v1936_v10 = vrot.slane %v1931_v36, %v5827_v9 }
 0x204   :  { %3381 = vmatpush1.bf16.msra.mxu0 %v5060_v49  ;;  %3553 = vmatpush1.bf16.msra.mxu1 %v5063_v60  ;;  %v1944_v49 = vrot.slane %v1931_v36, %v5847_v15  ;;  %v1940_v60 = vrot.slane %v1931_v36, %v5835_v11 }
 0x205   :  { %3382 = vmatprep.subr.bf16.mxu0 %v5068_v35  ;;  %3554 = vmatprep.subr.bf16.mxu1 %v5071_v52  ;;  %v1948_v35 = vrot.slane %v1931_v36, %v5850_v4 }
 0x208   :  { %3383 = vmatpush1.bf16.msra.mxu0 %v5066_v61  ;;  %3555 = vmatpush1.bf16.msra.mxu1 %v5069_v57 }
 0x209   :  { %3384 = vmatprep.subr.bf16.mxu0 %v5074_v48  ;;  %3556 = vmatprep.subr.bf16.mxu1 %v5077_v1 }
 0x20c   :  { %3385 = vmatpush1.bf16.msra.mxu0 %v5072_v14  ;;  %3557 = vmatpush1.bf16.msra.mxu1 %v5075_v43 }
 0x20d   :  { %3386 = vmatprep.subr.bf16.mxu0 %v5080_v62  ;;  %3558 = vmatprep.subr.bf16.mxu1 %v5083_v17 }
 0x210   :  { %3387 = vmatpush1.bf16.msra.mxu0 %v5078_v22  ;;  %3559 = vmatpush1.bf16.msra.mxu1 %v5081_v45 }
 0x211   :  { %3388 = vmatprep.subr.bf16.mxu0 %v5086_v3  ;;  %3560 = vmatprep.subr.bf16.mxu1 %v5089_v13 }
 0x214   :  { %3389 = vmatpush1.bf16.msra.mxu0 %v5084_v28  ;;  %3561 = vmatpush1.bf16.msra.mxu1 %v5087_v6 }
 0x215   :  { %3390 = vmatprep.subr.bf16.mxu0 %v5092_v25  ;;  %3562 = vmatprep.subr.bf16.mxu1 %v5095_v38 }
 0x218   :  { %3391 = vmatpush1.bf16.msra.mxu0 %v5090_v46  ;;  %3563 = vmatpush1.bf16.msra.mxu1 %v5093_v26 }
 0x219   :  { %3392 = vmatprep.subr.bf16.mxu0 %v5098_v39  ;;  %3564 = vmatprep.subr.bf16.mxu1 %v5101_v30 }
 0x21c   :  { %3393 = vmatpush1.bf16.msra.mxu0 %v5096_v56  ;;  %3565 = vmatpush1.bf16.msra.mxu1 %v5099_v58 }
 0x21d   :  { %4639 = vmatprep.subr.bf16.mxu0 %v5102_v37  ;;  %4661 = vmatprep.subr.bf16.mxu1 %v5103_v59 }
 0x21f   :  { %3395 = vmatmul.mubr.bf16.vlgmr.msra.gmra.mrb[8].mxu0 %v6502_v34  ;;  %3567 = vmatmul.mubr.bf16.vlgmr.msra.gmra.mrb[8].mxu1 %v6502_v34  ;;  %v5106_v34 = vld [vmem:[%s7059_s5 + $0x48] sm:$0xff]  }
 0x220   :  { %4640 = vmatpush3.bf16.msra.mxu0 %v5104_v41  ;;  %4662 = vmatpush3.bf16.msra.mxu1 %v5105_v55 }
 0x221   :  { %4641 = vmatprep.subr.bf16.mxu0 %v5106_v34  ;;  %4663 = vmatprep.subr.bf16.mxu1 %v5107_v32 }
 0x224   :  { %4642 = vmatpush3.bf16.msra.mxu0 %v5108_v51  ;;  %4664 = vmatpush3.bf16.msra.mxu1 %v5109_v50 }
 0x225   :  { %4643 = vmatprep.subr.bf16.mxu0 %v5110_v33  ;;  %4665 = vmatprep.subr.bf16.mxu1 %v5111_v54 }
 0x228   :  { %4644 = vmatpush3.bf16.msra.mxu0 %v5112_v19  ;;  %4666 = vmatpush3.bf16.msra.mxu1 %v5113_v18 }
 0x229   :  { %4645 = vmatprep.subr.bf16.mxu0 %v5114_v44  ;;  %4667 = vmatprep.subr.bf16.mxu1 %v5115_v20 }
 0x22c   :  { %4646 = vmatpush3.bf16.msra.mxu0 %v5116_v5  ;;  %4668 = vmatpush3.bf16.msra.mxu1 %v5117_v63 }
 0x22d   :  { %4647 = vmatprep.subr.bf16.mxu0 %v5118_v31  ;;  %4669 = vmatprep.subr.bf16.mxu1 %v5119_v29 }
 0x230   :  { %4648 = vmatpush3.bf16.msra.mxu0 %v5120_v24  ;;  %4670 = vmatpush3.bf16.msra.mxu1 %v5121_v27 }
 0x231   :  { %4649 = vmatprep.subr.bf16.mxu0 %v5122_v53  ;;  %4671 = vmatprep.subr.bf16.mxu1 %v5123_v7 }
 0x234   :  { %4650 = vmatpush3.bf16.msra.mxu0 %v5124_v47  ;;  %4672 = vmatpush3.bf16.msra.mxu1 %v5125_v12 }
 0x235   :  { %4651 = vmatprep.subr.bf16.mxu0 %v5126_v2  ;;  %4673 = vmatprep.subr.bf16.mxu1 %v5127_v8 }
 0x238   :  { %4652 = vmatpush3.bf16.msra.mxu0 %v5128_v0  ;;  %4674 = vmatpush3.bf16.msra.mxu1 %v5129_v23 }
 0x239   :  { %4653 = vmatprep.subr.bf16.mxu0 %v5130_v21  ;;  %4675 = vmatprep.subr.bf16.mxu1 %v5131_v42 }
 0x23c   :  { %4654 = vmatpush3.bf16.msra.mxu0 %v5132_v40  ;;  %4676 = vmatpush3.bf16.msra.mxu1 %v5133_v16 }
 0x2f2   :  { %v3396_v52 = vpop.f32.mrb[8].mxu0  ;;  %v3568_v61 = vpop.f32.mrb[8].mxu1 }
 0x2f3   :  { %v4683_v57 = vadd.f32 %v3396_v52, %v1936_v10  ;;  %v4687_v48 = vadd.f32 %v3568_v61, %v1944_v49  ;;  %v3398_v1 = vpop.f32.mrb[9].mxu0  ;;  %v3570_v14 = vpop.f32.mrb[9].mxu1 }
 0x2f4   :  { %v4684_v43 = vadd.f32 %v3398_v1, %v1940_v60  ;;  %v4688_v62 = vadd.f32 %v3570_v14, %v1948_v35  ;;  %v3400_v17 = vpop.f32.mrb[10].mxu0  ;;  %v3572_v22 = vpop.f32.mrb[10].mxu1 }
 0x2f5   :  { %v6919_v45 = vmax.f32 %v4683_v57, 0.0  ;;  %v6921_v3 = vmax.f32 %v4687_v48, 0.0  ;;  %v4685_v9 = vadd.f32 %v3400_v17, %v1936_v10  ;;  %v4689_v15 = vadd.f32 %v3572_v22, %v1944_v49  ;;  %v3402_v13 = vpop.f32.mrb[11].mxu0  ;;  %v3574_v11 = vpop.f32.mrb[11].mxu1 }
 0x2f6   :  { %v6923_v28 = vmax.f32 %v4684_v43, 0.0  ;;  %v6925_v4 = vmax.f32 %v4688_v62, 0.0  ;;  %v4686_v6 = vadd.f32 %v3402_v13, %v1940_v60  ;;  %v4690_v25 = vadd.f32 %v3574_v11, %v1948_v35 }
 0x2f7   :  { %v3593_v38 = vmul.f32 0.0, %v6919_v45  ;;  %v3665_v46 = vmul.f32 %v6919_v45, %v6919_v45  ;;  %v3595_v26 = vmul.f32 0.0, %v6921_v3  ;;  %v3667_v39 = vmul.f32 %v6921_v3, %v6921_v3 }
 0x2f8   :  { %v3594_v30 = vmul.f32 0.0, %v6923_v28  ;;  %v6936_v56 = vmul.f32 %v6923_v28, %v6923_v28  ;;  %v6939_v58 = vmul.f32 0.0, %v6925_v4  ;;  %v6943_v37 = vmul.f32 %v6925_v4, %v6925_v4 }
 0x2f9   :  { %v3705_v59 = vmul.f32 %v3593_v38, %v6919_v45  ;;  %v3707_v41 = vmul.f32 %v3595_v26, %v6921_v3  ;;  %v6947_v55 = vmax.f32 %v4685_v9, 0.0  ;;  %v6949_v34 = vmax.f32 %v4689_v15, 0.0 }
 0x2fa   :  { %v6952_v32 = vmul.f32 %v3594_v30, %v6923_v28  ;;  %v6956_v51 = vmul.f32 %v6939_v58, %v6925_v4  ;;  %v6958_v50 = vmax.f32 %v4686_v6, 0.0  ;;  %v6960_v33 = vmax.f32 %v4690_v25, 0.0 }
 0x2fb   :  { %v3589_v54 = vmul.f32 0.0, %v6947_v55  ;;  %v3633_v19 = vadd.f32 %v3593_v38, %v6947_v55  ;;  %v3709_v18 = vmul.f32 %v6947_v55, %v6947_v55  ;;  %v3591_v44 = vmul.f32 0.0, %v6949_v34 }
 0x2fc   :  { %v3647_v20 = vadd.f32 %v3595_v26, %v6949_v34  ;;  %v3711_v5 = vmul.f32 %v6949_v34, %v6949_v34  ;;  %v3590_v63 = vmul.f32 0.0, %v6958_v50  ;;  %v3640_v31 = vadd.f32 %v3594_v30, %v6958_v50 }
 0x2fd   :  { %v3601_v29 = vadd.f32 %v3589_v54, %v6919_v45  ;;  %v3634_v24 = vrot.slane %v3633_v19, 4  ;;  %v3669_v27 = vmul.f32 %v3589_v54, %v6947_v55  ;;  %v3713_v53 = vadd.f32 %v3709_v18, %v3705_v59 }
 0x2fe   :  { %v3615_v7 = vadd.f32 %v3591_v44, %v6921_v3  ;;  %v3648_v47 = vrot.slane %v3647_v20, 4  ;;  %v3671_v12 = vmul.f32 %v3591_v44, %v6949_v34  ;;  %v3727_v2 = vadd.f32 %v3711_v5, %v3707_v41 }
 0x2ff   :  { %v3602_v8 = vrot.slane %v3601_v29, 4  ;;  %v3635_v0 = vadd.f32 %v3634_v24, %v3633_v19  ;;  %v3673_v23 = vadd.f32 %v3669_v27, %v3665_v46  ;;  %v3714_v21 = vrot.slane %v3713_v53, 4 }
 0x300   :  { %v3616_v42 = vrot.slane %v3615_v7, 4  ;;  %v3649_v40 = vadd.f32 %v3648_v47, %v3647_v20  ;;  %v3687_v16 = vadd.f32 %v3671_v12, %v3667_v39  ;;  %v3728_v36 = vrot.slane %v3727_v2, 4 }
 0x301   :  { %v3603_v10 = vadd.f32 %v3602_v8, %v3601_v29  ;;  %v3636_v49 = vrot.slane %v3635_v0, 2  ;;  %v3674_v60 = vrot.slane %v3673_v23, 4  ;;  %v3715_v35 = vadd.f32 %v3714_v21, %v3713_v53 }
 0x302   :  { %v3617_v52 = vadd.f32 %v3616_v42, %v3615_v7  ;;  %v3650_v61 = vrot.slane %v3649_v40, 2  ;;  %v3688_v57 = vrot.slane %v3687_v16, 4  ;;  %v3729_v48 = vadd.f32 %v3728_v36, %v3727_v2 }
 0x303   :  { %v3604_v1 = vrot.slane %v3603_v10, 2  ;;  %v6976_v14 = vadd.f32 %v3636_v49, %v3635_v0  ;;  %v3675_v43 = vadd.f32 %v3674_v60, %v3673_v23  ;;  %v3716_v62 = vrot.slane %v3715_v35, 2 }
 0x304   :  { %v3618_v17 = vrot.slane %v3617_v52, 2  ;;  %v6978_v22 = vadd.f32 %v3650_v61, %v3649_v40  ;;  %v3689_v9 = vadd.f32 %v3688_v57, %v3687_v16  ;;  %v3730_v15 = vrot.slane %v3729_v48, 2 }
 0x305   :  { %v6980_v13 = vadd.f32 %v3604_v1, %v3603_v10  ;;  %v3638_v11 = vrot.slane %v6976_v14, 1  ;;  %v3676_v6 = vrot.slane %v3675_v43, 2  ;;  %v3717_v25 = vadd.f32 %v3716_v62, %v3715_v35 }
 0x306   :  { %v6983_v38 = vadd.f32 %v3618_v17, %v3617_v52  ;;  %v3652_v46 = vrot.slane %v6978_v22, 1  ;;  %v3690_v26 = vrot.slane %v3689_v9, 2  ;;  %v3731_v39 = vadd.f32 %v3730_v15, %v3729_v48 }
 0x307   :  { %v3677_v30 = vadd.f32 %v3676_v6, %v3675_v43  ;;  %v3718_v59 = vrot.slane %v3717_v25, 1  ;;  %v3608_v41 = vadd.f32 %v3590_v63, %v6923_v28  ;;  %v3641_v54 = vrot.slane %v3640_v31, 4 }
 0x308   :  { %v3691_v19 = vadd.f32 %v3690_v26, %v3689_v9  ;;  %v3732_v18 = vrot.slane %v3731_v39, 1  ;;  %v3670_v44 = vmul.f32 %v3590_v63, %v6958_v50  ;;  %v3710_v20 = vmul.f32 %v6958_v50, %v6958_v50 }
 0x309   :  { %v3678_v5 = vrot.slane %v3677_v30, 1  ;;  %v3719_v29 = vadd.f32 %v3718_v59, %v3717_v25  ;;  %v3609_v24 = vrot.slane %v3608_v41, 4  ;;  %v3642_v27 = vadd.f32 %v3641_v54, %v3640_v31 }
 0x30a   :  { %v3692_v53 = vrot.slane %v3691_v19, 1  ;;  %v3733_v7 = vadd.f32 %v3732_v18, %v3731_v39  ;;  %v3680_v47 = vadd.f32 %v3670_v44, %v6936_v56  ;;  %v3720_v12 = vadd.f32 %v3710_v20, %v6952_v32 }
 0x30b   :  { %v3679_v2 = vadd.f32 %v3678_v5, %v3677_v30  ;;  %v6992_v8 = vmul.f32 0.125, %v3719_v29  ;;  %v3610_v0 = vadd.f32 %v3609_v24, %v3608_v41  ;;  %v3643_v23 = vrot.slane %v3642_v27, 2 }
 0x30c   :  { %v3693_v21 = vadd.f32 %v3692_v53, %v3691_v19  ;;  %v6994_v63 = vmul.f32 0.125, %v3733_v7  ;;  %v3681_v42 = vrot.slane %v3680_v47, 4  ;;  %v3721_v40 = vrot.slane %v3720_v12, 4 }
 0x30d   :  { %v6996_v16 = vmul.f32 0.125, %v3679_v2  ;;  %v3592_v31 = vmul.f32 0.0, %v6960_v33  ;;  %v3654_v36 = vadd.f32 %v6939_v58, %v6960_v33  ;;  %v3712_v56 = vmul.f32 %v6960_v33, %v6960_v33 }
 0x30e   :  { %v7003_v32 = vmul.f32 0.125, %v3693_v21  ;;  %v3682_v10 = vadd.f32 %v3681_v42, %v3680_v47  ;;  %v3722_v49 = vadd.f32 %v3721_v40, %v3720_v12  ;;  %v3611_v60 = vrot.slane %v3610_v0, 2 }
 0x30f   :  { %v3622_v35 = vadd.f32 %v3592_v31, %v6925_v4  ;;  %v3655_v52 = vrot.slane %v3654_v36, 4  ;;  %v3672_v61 = vmul.f32 %v3592_v31, %v6960_v33  ;;  %v3734_v57 = vadd.f32 %v3712_v56, %v6956_v51 }
 0x310   :  { %v3683_v48 = vrot.slane %v3682_v10, 2  ;;  %v3723_v1 = vrot.slane %v3722_v49, 2  ;;  %v3612_v43 = vadd.f32 %v3611_v60, %v3610_v0  ;;  %v3644_v62 = vadd.f32 %v3643_v23, %v3642_v27 }
 0x311   :  { %v3623_v58 = vrot.slane %v3622_v35, 4  ;;  %v3656_v17 = vadd.f32 %v3655_v52, %v3654_v36  ;;  %v3694_v9 = vadd.f32 %v3672_v61, %v6943_v37  ;;  %v3735_v15 = vrot.slane %v3734_v57, 4 }
 0x312   :  { %v3684_v6 = vadd.f32 %v3683_v48, %v3682_v10  ;;  %v3724_v25 = vadd.f32 %v3723_v1, %v3722_v49  ;;  %v3613_v26 = vrot.slane %v3612_v43, 1  ;;  %v3645_v39 = vrot.slane %v3644_v62, 1 }
 0x313   :  { %v3624_v30 = vadd.f32 %v3623_v58, %v3622_v35  ;;  %v3657_v59 = vrot.slane %v3656_v17, 2  ;;  %v3695_v41 = vrot.slane %v3694_v9, 4  ;;  %v3736_v54 = vadd.f32 %v3735_v15, %v3734_v57 }
 0x314   :  { %v3685_v19 = vrot.slane %v3684_v6, 1  ;;  %v3725_v18 = vrot.slane %v3724_v25, 1  ;;  %v3614_v51 = vadd.f32 %v3613_v26, %v3612_v43  ;;  %v3646_v44 = vadd.f32 %v3645_v39, %v3644_v62 }
 0x315   :  { %v3696_v20 = vadd.f32 %v3695_v41, %v3694_v9  ;;  %v3737_v5 = vrot.slane %v3736_v54, 2  ;;  %v3625_v29 = vrot.slane %v3624_v30, 2  ;;  %v3658_v24 = vadd.f32 %v3657_v59, %v3656_v17 }
 0x316   :  { %v3686_v27 = vadd.f32 %v3685_v19, %v3684_v6  ;;  %v3726_v53 = vadd.f32 %v3725_v18, %v3724_v25  ;;  %v3630_v37 = vmul.f32 0.125, %v3614_v51  ;;  %v3662_v7 = vmul.f32 0.125, %v3646_v44 }
 0x317   :  { %v3697_v47 = vrot.slane %v3696_v20, 2  ;;  %v3738_v12 = vadd.f32 %v3737_v5, %v3736_v54  ;;  %v3626_v2 = vadd.f32 %v3625_v29, %v3624_v30  ;;  %v3659_v0 = vrot.slane %v3658_v24, 1 }
 0x318   :  { %v3702_v23 = vmul.f32 0.125, %v3686_v27  ;;  %v3742_v21 = vmul.f32 0.125, %v3726_v53  ;;  %v3746_v42 = vmul.f32 %v3630_v37, %v3630_v37  ;;  %v3766_v40 = vmul.f32 %v3662_v7, %v3662_v7 }
 0x319   :  { %v3698_v31 = vadd.f32 %v3697_v47, %v3696_v20  ;;  %v3739_v36 = vrot.slane %v3738_v12, 1  ;;  %v3790_v56 = vmul.f32 0.0, %v3630_v37  ;;  %v3794_v10 = vmul.f32 0.0, %v3662_v7 }
 0x31a   :  { %v3750_v49 = vsub.f32 %v3702_v23, %v3746_v42  ;;  %v3770_v60 = vsub.f32 %v3742_v21, %v3766_v40  ;;  %v3627_v35 = vrot.slane %v3626_v2, 1  ;;  %v3660_v52 = vadd.f32 %v3659_v0, %v3658_v24 }
 0x31b   :  { %v3699_v61 = vrot.slane %v3698_v31, 1  ;;  %v3740_v57 = vadd.f32 %v3739_v36, %v3738_v12  ;;  %v7009_v48 = vadd.f32 %v3794_v10, %v3630_v37  ;;  %v7011_v1 = vadd.f32 %v3790_v56, %v3662_v7 }
 0x31c   :  { %v3754_v43 = vmax.f32 %v3750_v49, 0.0  ;;  %v3774_v62 = vmax.f32 %v3770_v60, 0.0  ;;  %v3628_v58 = vadd.f32 %v3627_v35, %v3626_v2  ;;  %v3664_v17 = vmul.f32 0.125, %v3660_v52 }
 0x31d   :  { %v3700_v9 = vadd.f32 %v3699_v61, %v3698_v31  ;;  %v3744_v15 = vmul.f32 0.125, %v3740_v57  ;;  %v3810_v6 = vsub.f32 %v6923_v28, %v7009_v48  ;;  %v3814_v25 = vsub.f32 %v6958_v50, %v7011_v1 }
 0x31e   :  { %v3758_v26 = vadd.f32 1e-05, %v3754_v43  ;;  %v3778_v39 = vadd.f32 1e-05, %v3774_v62  ;;  %v3632_v30 = vmul.f32 0.125, %v3628_v58  ;;  %v3768_v59 = vmul.f32 %v3664_v17, %v3664_v17 }
 0x31f   :  { %v3704_v41 = vmul.f32 0.125, %v3700_v9  ;;  %v3796_v54 = vmul.f32 0.0, %v3664_v17  ;;  %v3606_v19 = vrot.slane %v6980_v13, 1  ;;  %v3639_v18 = vadd.f32 %v3638_v11, %v6976_v14 }
 0x320   :  { %5166 = vrsqrt.f32 %v3758_v26  ;;  %v3748_v51 = vmul.f32 %v3632_v30, %v3632_v30  ;;  %v3772_v44 = vsub.f32 %v3744_v15, %v3768_v59  ;;  %v3792_v20 = vmul.f32 0.0, %v3632_v30 }
 0x321   :  { %5168 = vrsqrt.f32 %v3778_v39  ;;  %v7021_v5 = vadd.f32 %v3796_v54, %v3632_v30  ;;  %v3607_v29 = vadd.f32 %v3606_v19, %v6980_v13  ;;  %v3661_v24 = vmul.f32 0.125, %v3639_v18 }
 0x322   :  { %v3752_v27 = vsub.f32 %v3704_v41, %v3748_v51  ;;  %v3776_v53 = vmax.f32 %v3772_v44, 0.0  ;;  %v7024_v37 = vadd.f32 %v3792_v20, %v3664_v17  ;;  %v3620_v7 = vrot.slane %v6983_v38, 1 }
 0x323   :  { %v3812_v47 = vsub.f32 %v6925_v4, %v7021_v5  ;;  %v3629_v14 = vmul.f32 0.125, %v3607_v29  ;;  %v3765_v11 = vmul.f32 %v3661_v24, %v3661_v24  ;;  %v3793_v12 = vmul.f32 0.0, %v3661_v24 }
 0x324   :  { %v3756_v2 = vmax.f32 %v3752_v27, 0.0  ;;  %v3780_v0 = vadd.f32 1e-05, %v3776_v53  ;;  %v3816_v23 = vsub.f32 %v6960_v33, %v7024_v37  ;;  %v3621_v13 = vadd.f32 %v3620_v7, %v6983_v38 }
 0x325   :  { %v3745_v21 = vmul.f32 %v3629_v14, %v3629_v14  ;;  %v3769_v42 = vsub.f32 %v6992_v8, %v3765_v11  ;;  %v3789_v40 = vmul.f32 0.0, %v3629_v14  ;;  %v3801_v31 = vadd.f32 %v3793_v12, %v3629_v14 }
 0x326   :  { %v3760_v36 = vadd.f32 1e-05, %v3756_v2  ;;  %5170 = vrsqrt.f32 %v3780_v0  ;;  %v3631_v56 = vmul.f32 0.125, %v3621_v13  ;;  %v3653_v4 = vadd.f32 %v3652_v46, %v6978_v22 }
 0x327   :  { %v3749_v10 = vsub.f32 %v6996_v16, %v3745_v21  ;;  %v3773_v49 = vmax.f32 %v3769_v42, 0.0  ;;  %v3805_v60 = vadd.f32 %v3789_v40, %v3661_v24  ;;  %v3809_v33 = vsub.f32 %v6919_v45, %v3801_v31 }
 0x328   :  { %5172 = vrsqrt.f32 %v3760_v36  ;;  %v3663_v38 = vmul.f32 0.125, %v3653_v4  ;;  %v3747_v35 = vmul.f32 %v3631_v56, %v3631_v56  ;;  %v3791_v52 = vmul.f32 0.0, %v3631_v56  ;;  %v4606_v36 = vld [vmem:[%s7061_s6] ss:$0 sm:$0xff] }
 0x329   :  { %v3753_v8 = vmax.f32 %v3749_v10, 0.0  ;;  %v3777_v61 = vadd.f32 1e-05, %v3773_v49  ;;  %v3813_v57 = vsub.f32 %v6947_v55, %v3805_v60 }
 0x32a   :  { %v5167_v43 = vpop.eup %5166  ;;  %v3751_v62 = vsub.f32 %v7003_v32, %v3747_v35  ;;  %v3767_v58 = vmul.f32 %v3663_v38, %v3663_v38  ;;  %v3795_v17 = vmul.f32 0.0, %v3663_v38  ;;  %v3807_v22 = vadd.f32 %v3791_v52, %v3663_v38 }
 0x32b   :  { %v5169_v46 = vpop.eup %5168  ;;  %v3822_v16 = vmul.f32 0.0, %v5167_v43  ;;  %v3757_v9 = vadd.f32 1e-05, %v3753_v8  ;;  %5174 = vrsqrt.f32 %v3777_v61 }
 0x32c   :  { %v3826_v15 = vmul.f32 0.0, %v5169_v46  ;;  %v3755_v45 = vmax.f32 %v3751_v62, 0.0  ;;  %v3771_v26 = vsub.f32 %v6994_v63, %v3767_v58  ;;  %v3803_v39 = vadd.f32 %v3795_v17, %v3631_v56 }
 0x32d   :  { %v3838_v30 = vadd.f32 %v5169_v46, %v3822_v16  ;;  %5176 = vrsqrt.f32 %v3757_v9  ;;  %v3815_v59 = vsub.f32 %v6949_v34, %v3807_v22 }
 0x32e   :  { %v3834_v55 = vadd.f32 %v5167_v43, %v3826_v15  ;;  %v3759_v41 = vadd.f32 1e-05, %v3755_v45  ;;  %v3775_v54 = vmax.f32 %v3771_v26, 0.0  ;;  %v3811_v32 = vsub.f32 %v6921_v3, %v3803_v39 }
 0x32f   :  { %v3846_v19 = vmul.f32 %v3838_v30, %v3814_v25 }
 0x330   :  { %v5171_v18 = vpop.eup %5170  ;;  %v3842_v51 = vmul.f32 %v3834_v55, %v3810_v6  ;;  %5178 = vrsqrt.f32 %v3759_v41  ;;  %v3779_v63 = vadd.f32 1e-05, %v3775_v54 }
 0x331   :  { %v3828_v44 = vmul.f32 0.0, %v5171_v18 }
 0x332   :  { %v5173_v20 = vpop.eup %5172  ;;  %v3850_v5 = vpack.c.bf16 %v3846_v19, %v3842_v51  ;;  %5180 = vrsqrt.f32 %v3779_v63 }
 0x333   :  { %v3824_v34 = vmul.f32 0.0, %v5173_v20  ;;  %v3836_v29 = vadd.f32 %v5173_v20, %v3828_v44 }
 0x334   :  { %4148 = vmatprep.mubr.bf16.mxu0 %v3850_v5 }
 0x335   :  { %v5175_v24 = vpop.eup %5174  ;;  %v3840_v3 = vadd.f32 %v5171_v18, %v3824_v34  ;;  %v3844_v27 = vmul.f32 %v3836_v29, %v3812_v47 }
 0x336   :  { %v3825_v53 = vmul.f32 0.0, %v5175_v24 }
 0x337   :  { %v5177_v50 = vpop.eup %5176  ;;  %v3848_v1 = vmul.f32 %v3840_v3, %v3816_v23 }
 0x338   :  { %v3821_v25 = vmul.f32 0.0, %v5177_v50  ;;  %v3833_v37 = vadd.f32 %v5177_v50, %v3825_v53 }
 0x339   :  { %v3852_v7 = vpack.c.bf16 %v3848_v1, %v3844_v27 }
 0x33a   :  { %v5179_v28 = vpop.eup %5178  ;;  %v3837_v48 = vadd.f32 %v5175_v24, %v3821_v25  ;;  %v3841_v6 = vmul.f32 %v3833_v37, %v3809_v33 }
 0x33b   :  { %4189 = vmatprep.mubr.bf16.mxu1 %v3852_v7  ;;  %v3823_v14 = vmul.f32 0.0, %v5179_v28 }
 0x33c   :  { %v5181_v11 = vpop.eup %5180  ;;  %v3845_v12 = vmul.f32 %v3837_v48, %v3813_v57 }
 0x33d   :  { %v3827_v2 = vmul.f32 0.0, %v5181_v11  ;;  %v3839_v0 = vadd.f32 %v5181_v11, %v3823_v14 }
 0x33e   :  { %v3849_v13 = vpack.c.bf16 %v3845_v12, %v3841_v6 }
 0x33f   :  { %v3835_v21 = vadd.f32 %v5179_v28, %v3827_v2  ;;  %v3847_v42 = vmul.f32 %v3839_v0, %v3815_v59 }
 0x340   :  { %4149 = vmatmul.mubr.bf16.vlgmr.msra.gmra.mrb[12].mxu0 %v3849_v13 }
 0x341   :  { %v3843_v47 = vmul.f32 %v3835_v21, %v3811_v32 }
 0x343   :  { %v3851_v40 = vpack.c.bf16 %v3847_v42, %v3843_v47 }
 0x345   :  { %4190 = vmatmul.mubr.bf16.vlgmr.msra.gmra.mrb[12].mxu1 %v3851_v40 }
 0x413   :  { %v4655_v23 = vpop.f32.mrb[12].mxu0 }
 0x414   :  { %v4656_v31 = vpop.f32.mrb[13].mxu0 }
 0x415   :  { %v4657_v56 = vadd.f32 %v4656_v31, %v4655_v23  ;;  %v4658_v4 = vpop.f32.mrb[14].mxu0 }
 0x416   :  { %v4659_v10 = vpop.f32.mrb[15].mxu0 }
 0x417   :  { %v4660_v49 = vadd.f32 %v4659_v10, %v4658_v4  ;;  %v4151_v33 = vadd.f32 %v4657_v56, %v4606_v36 }
 0x418   :  { %v4677_v60 = vpop.f32.mrb[12].mxu1 }
 0x419   :  { %v4678_v38 = vpop.f32.mrb[13].mxu1  ;;  %v4154_v8 = vadd.f32 %v4660_v49, %v4606_v36 }
 0x41a   :  { %v4679_v35 = vadd.f32 %v4678_v38, %v4677_v60  ;;  %v4680_v52 = vpop.f32.mrb[14].mxu1 }
 0x41b   :  { %v4681_v61 = vpop.f32.mrb[15].mxu1 }
 0x41c   :  { %v4682_v57 = vadd.f32 %v4681_v61, %v4680_v52  ;;  %v4192_v43 = vadd.f32 %v4679_v35, %v4151_v33 }
 0x41e   :  { %v4198_v62 = vmax.f32 %v4192_v43, 0.0  ;;  %v4195_v58 = vadd.f32 %v4682_v57, %v4154_v8 }
 0x420   :  { %v4203_v17 = vmul.f32 %v4198_v62, %v4198_v62  ;;  %v4199_v22 = vmax.f32 %v4195_v58, 0.0 }
 0x422   :  { %4204 = vadd.xlane.f32.xlu0 %v4203_v17  ;;  %v4200_v46 = vmul.f32 %v4199_v22, %v4198_v62  ;;  %v4206_v16 = vmul.f32 %v4199_v22, %v4199_v22 }
 0x424   :  { %4201 = vadd.xlane.f32.xlu1 %v4200_v46 }
 0x426   :  { %4207 = vadd.xlane.f32.xlu0 %v4206_v16 }
 0x4af   :  { %v4205_v9 = vpop.xlane.xlu0 %4204 }
 0x4b1   :  { %v4202_v30 = vpop.xlane.xlu1 %4201 }
 0x4b3   :  { %v4208_v15 = vpop.xlane.xlu0 %4207 }
 0x4b4   :  { %v4209_v45 = vmul.f32 %v4208_v15, %v4205_v9 }
 0x4b6   :  { %v4210_v26 = vmax.f32 %v4209_v45, 1e-16 }
 0x4b8   :  { %5182 = vrsqrt.f32 %v4210_v26 }
 0x4c2   :  { %v5183_v39 = vpop.eup %5182 }
 0x4c3   :  { %v4212_v59 = vmul.f32 %v5183_v39, %v4202_v30 }
 0x4c5   :  { %4214 = vst.msk [vmem:[%s7062_s7] sm:$0xff] %vm4213_vm0, %v4212_v59 }

</bundles_post_ra>
